<compile_context>
chip_gen: v7x
topology: tpu7x:2x2x1
jax: 0.10.0
libtpu: 0.0.40
codegen_flags: <defaults>
</compile_context>

<pallas_src>
import jax
import jax.numpy as jnp
from jax import lax
from jax.experimental import pallas as pl
from jax.experimental.pallas import tpu as pltpu

n_embed = 384
num_heads = 6
head_size = n_embed // num_heads   # 64


def _make_mha_kernel(B, T, H, hs):
    C = H * hs

    def kernel(x_ref, wqkv_ref, wproj_ref, bproj_ref, o_ref):
        # x_ref: (B*T, C); wqkv_ref: (C, 3*C); wproj_ref: (C, C);
        # bproj_ref: (1, C); o_ref: (B*T, C)
        x = x_ref[...]

        # Q/K/V for all heads in one MXU matmul: (B*T, C) @ (C, 3*C).
        qkv = jnp.dot(x, wqkv_ref[...], preferred_element_type=jnp.float32)

        # NOTE: the PyTorch module scales by n_embed (= C), not head_size.
        scale = C ** -0.5

        # Causal mask, built once (2-D iota as required on TPU) and reused.
        row = lax.broadcasted_iota(jnp.int32, (T, T), 0)
        col = lax.broadcasted_iota(jnp.int32, (T, T), 1)
        causal = (col <= row)[None, :, :]                 # (1, T, T)

        head_outs = []
        for h in range(H):                                # static unroll (H = 6)
            qh = qkv[:, h * hs:(h + 1) * hs].reshape(B, T, hs)
            kh = qkv[:, C + h * hs:C + (h + 1) * hs].reshape(B, T, hs)
            vh = qkv[:, 2 * C + h * hs:2 * C + (h + 1) * hs].reshape(B, T, hs)

            # Batched score matmul on the MXU, contraction over head_size.
            s = jnp.einsum('btd,bsd->bts', qh, kh,
                           preferred_element_type=jnp.float32) * scale
            s = jnp.where(causal, s, -jnp.inf)

            # Numerically-stable softmax over the key axis (lane reduce -> XLU).
            m = jnp.max(s, axis=-1, keepdims=True)
            p = jnp.exp(s - m)
            denom = jnp.sum(p, axis=-1, keepdims=True)
            wei = p * pl.reciprocal(denom, approx=True)
            # TODO(synk): attention-weight dropout omitted (eval-mode semantics).

            head_outs.append(jnp.einsum('bts,bsd->btd', wei, vh,
                                        preferred_element_type=jnp.float32))

        # Concat heads along the feature axis (matches torch.cat order) and
        # apply the output projection; the (B*T, 384) store is lane-dense.
        cat = jnp.concatenate(head_outs, axis=-1).reshape(B * T, C)
        y = jnp.dot(cat, wproj_ref[...], preferred_element_type=jnp.float32)
        o_ref[...] = (y + bproj_ref[...]).astype(o_ref.dtype)
        # TODO(synk): output dropout omitted (eval-mode semantics).

    return kernel


def multi_head_attention(x, wq_t, wk_t, wv_t, wproj_t, bproj):
    """x: (B, T, C); wq_t/wk_t/wv_t: (H, C, hs); wproj_t: (C, C); bproj: (1, C)."""
    B, T, C = x.shape
    H, _, hs = wq_t.shape

    # Stack per-head weights into one (C, 3*C) QKV matrix.  Within each C-wide
    # chunk (Q | K | V), head h occupies columns [h*hs, (h+1)*hs).
    wq_all = jnp.transpose(wq_t, (1, 0, 2)).reshape(C, H * hs)
    wk_all = jnp.transpose(wk_t, (1, 0, 2)).reshape(C, H * hs)
    wv_all = jnp.transpose(wv_t, (1, 0, 2)).reshape(C, H * hs)
    wqkv = jnp.concatenate([wq_all, wk_all, wv_all], axis=1)   # (C, 3*C)

    x_flat = x.reshape(B * T, C)

    out_flat = pl.pallas_call(
        _make_mha_kernel(B, T, H, hs),
        out_shape=jax.ShapeDtypeStruct((B * T, C), jnp.float32),
        in_specs=[
            pl.BlockSpec(memory_space=pltpu.MemorySpace.VMEM),   # x_flat
            pl.BlockSpec(memory_space=pltpu.MemorySpace.VMEM),   # wqkv
            pl.BlockSpec(memory_space=pltpu.MemorySpace.VMEM),   # wproj_t
            pl.BlockSpec(memory_space=pltpu.MemorySpace.VMEM),   # bproj
        ],
        out_specs=pl.BlockSpec(memory_space=pltpu.MemorySpace.VMEM),
    )(x_flat, wqkv, wproj_t, bproj)

    return out_flat.reshape(B, T, C)


def _reference(x, wq_t, wk_t, wv_t, wproj_t, bproj):
    """Pure-JAX reference matching the PyTorch forward (dropout = identity)."""
    B, T, C = x.shape
    outs = []
    for h in range(wq_t.shape[0]):
        q = x @ wq_t[h]
        k = x @ wk_t[h]
        v = x @ wv_t[h]
        wei = (q @ jnp.swapaxes(k, -2, -1)) * (C ** -0.5)
        mask = jnp.tril(jnp.ones((T, T), dtype=bool))
        wei = jnp.where(mask[None], wei, -jnp.inf)
        wei = jax.nn.softmax(wei, axis=-1)
        outs.append(wei @ v)
    cat = jnp.concatenate(outs, axis=-1)
    return cat @ wproj_t + bproj[0]


if __name__ == "__main__":
    B, T = 2, 16
    key = jax.random.PRNGKey(0)
    kx, kq, kk, kv, kw, kb = jax.random.split(key, 6)

    x = jax.random.normal(kx, (B, T, n_embed), dtype=jnp.float32)

    # PyTorch Linear(n_embed, head_size) weight is (head_size, n_embed);
    # we store the transpose (n_embed, head_size) per head.
    scale = 0.02
    wq_t = scale * jax.random.normal(kq, (num_heads, n_embed, head_size), jnp.float32)
    wk_t = scale * jax.random.normal(kk, (num_heads, n_embed, head_size), jnp.float32)
    wv_t = scale * jax.random.normal(kv, (num_heads, n_embed, head_size), jnp.float32)
    # proj: Linear(n_embed, n_embed) with bias; store W^T (n_embed, n_embed).
    wproj_t = scale * jax.random.normal(kw, (n_embed, n_embed), jnp.float32)
    bproj = scale * jax.random.normal(kb, (1, n_embed), jnp.float32)

    out = jax.jit(multi_head_attention)(x, wq_t, wk_t, wv_t, wproj_t, bproj)
    out = jax.block_until_ready(out)

    ref = _reference(x, wq_t, wk_t, wv_t, wproj_t, bproj)
    assert out.shape == (B, T, n_embed)
    # Tolerance slightly looser than pure-f32 because the softmax denominator
    # uses the approximate EUP reciprocal.
    assert jnp.allclose(out, ref, atol=2e-3, rtol=2e-3), "mismatch vs reference"

    print("KERNEL_OK")
</pallas_src>

<mosaic_0001>
module attributes {stable_mosaic.version = 11 : i64} {
  func.func @kernel(%arg0: memref<32x384xf32, #tpu.memory_space<vmem>>, %arg1: memref<384x1152xf32, #tpu.memory_space<vmem>>, %arg2: memref<384x384xf32, #tpu.memory_space<vmem>>, %arg3: memref<1x384xf32, #tpu.memory_space<vmem>>, %arg4: memref<32x384xf32, #tpu.memory_space<vmem>>) attributes {dimension_semantics = [], scalar_prefetch = 0 : i64, scratch_operands = 0 : i64, tpu.core_type = #tpu.core_type<tc>} {
    %c0 = arith.constant 0 : index
    %c0_0 = arith.constant 0 : index
    %0 = vector.load %arg0[%c0, %c0_0] : memref<32x384xf32, #tpu.memory_space<vmem>>, vector<32x384xf32>
    %c0_1 = arith.constant 0 : index
    %c0_2 = arith.constant 0 : index
    %1 = vector.load %arg1[%c0_1, %c0_2] : memref<384x1152xf32, #tpu.memory_space<vmem>>, vector<384x1152xf32>
    %cst = arith.constant dense<0.000000e+00> : vector<32x1152xf32>
    %2 = tpu.matmul %0, %1, %cst {dimension_numbers = #tpu.dot_dimension_numbers<[1], [0], [0], [1], [0, 0, 1, 1], [], []>} : vector<32x384xf32>, vector<384x1152xf32>, vector<32x1152xf32> -> vector<32x1152xf32>
    %3 = tpu.iota {dimensions = array<i32: 0>} : vector<16x16xi32>
    %4 = tpu.iota {dimensions = array<i32: 1>} : vector<16x16xi32>
    %5 = arith.cmpi sle, %4, %3 : vector<16x16xi32>
    %6 = vector.shape_cast %5 : vector<16x16xi1> to vector<1x16x16xi1>
    %7 = vector.extract_strided_slice %2 {offsets = [0, 0], sizes = [32, 64], strides = [1, 1]} : vector<32x1152xf32> to vector<32x64xf32>
    %8 = vector.shape_cast %7 : vector<32x64xf32> to vector<2x16x64xf32>
    %9 = vector.extract_strided_slice %2 {offsets = [0, 384], sizes = [32, 64], strides = [1, 1]} : vector<32x1152xf32> to vector<32x64xf32>
    %10 = vector.shape_cast %9 : vector<32x64xf32> to vector<2x16x64xf32>
    %11 = vector.extract_strided_slice %2 {offsets = [0, 768], sizes = [32, 64], strides = [1, 1]} : vector<32x1152xf32> to vector<32x64xf32>
    %12 = vector.shape_cast %11 : vector<32x64xf32> to vector<2x16x64xf32>
    "tpu.trace_start"() <{level = 10 : i32, message = "btd,bsd->bts"}> : () -> ()
    %cst_3 = arith.constant dense<0.000000e+00> : vector<2x16x16xf32>
    %13 = tpu.matmul %8, %10, %cst_3 {dimension_numbers = #tpu.dot_dimension_numbers<[2], [2], [1], [1], [0, 0, 0, 1, 1, 1], [0], [0]>} : vector<2x16x64xf32>, vector<2x16x64xf32>, vector<2x16x16xf32> -> vector<2x16x16xf32>
    "tpu.trace_stop"() : () -> ()
    %cst_4 = arith.constant 0.0510310382 : f32
    %14 = vector.broadcast %cst_4 : f32 to vector<2x16x16xf32>
    %15 = arith.mulf %13, %14 : vector<2x16x16xf32>
    %cst_5 = arith.constant 0xFF800000 : f32
    %16 = vector.shape_cast %6 : vector<1x16x16xi1> to vector<1x16x16xi1>
    %17 = vector.broadcast %16 : vector<1x16x16xi1> to vector<2x16x16xi1>
    %18 = vector.broadcast %cst_5 : f32 to vector<2x16x16xf32>
    %19 = arith.select %17, %15, %18 : vector<2x16x16xi1>, vector<2x16x16xf32>
    %cst_6 = arith.constant dense<0xFF800000> : vector<2x16xf32>
    %20 = vector.multi_reduction <maximumf>, %19, %cst_6 [2] : vector<2x16x16xf32> to vector<2x16xf32>
    %21 = vector.shape_cast %20 : vector<2x16xf32> to vector<2x16x1xf32>
    %22 = vector.broadcast %21 : vector<2x16x1xf32> to vector<2x16x16xf32>
    %23 = arith.subf %19, %22 : vector<2x16x16xf32>
    %24 = math.exp %23 : vector<2x16x16xf32>
    %cst_7 = arith.constant dense<0.000000e+00> : vector<2x16xf32>
    %25 = vector.multi_reduction <add>, %24, %cst_7 [2] : vector<2x16x16xf32> to vector<2x16xf32>
    %26 = vector.shape_cast %25 : vector<2x16xf32> to vector<2x16x1xf32>
    %27 = tpu.reciprocal %26 {approx = true} : vector<2x16x1xf32> -> vector<2x16x1xf32>
    %28 = vector.broadcast %27 : vector<2x16x1xf32> to vector<2x16x16xf32>
    %29 = arith.mulf %24, %28 : vector<2x16x16xf32>
    "tpu.trace_start"() <{level = 10 : i32, message = "bts,bsd->btd"}> : () -> ()
    %cst_8 = arith.constant dense<0.000000e+00> : vector<2x16x64xf32>
    %30 = tpu.matmul %29, %12, %cst_8 {dimension_numbers = #tpu.dot_dimension_numbers<[2], [1], [1], [2], [0, 0, 0, 1, 1, 2], [0], [0]>} : vector<2x16x16xf32>, vector<2x16x64xf32>, vector<2x16x64xf32> -> vector<2x16x64xf32>
    "tpu.trace_stop"() : () -> ()
    %31 = vector.extract_strided_slice %2 {offsets = [0, 64], sizes = [32, 64], strides = [1, 1]} : vector<32x1152xf32> to vector<32x64xf32>
    %32 = vector.shape_cast %31 : vector<32x64xf32> to vector<2x16x64xf32>
    %33 = vector.extract_strided_slice %2 {offsets = [0, 448], sizes = [32, 64], strides = [1, 1]} : vector<32x1152xf32> to vector<32x64xf32>
    %34 = vector.shape_cast %33 : vector<32x64xf32> to vector<2x16x64xf32>
    %35 = vector.extract_strided_slice %2 {offsets = [0, 832], sizes = [32, 64], strides = [1, 1]} : vector<32x1152xf32> to vector<32x64xf32>
    %36 = vector.shape_cast %35 : vector<32x64xf32> to vector<2x16x64xf32>
    "tpu.trace_start"() <{level = 10 : i32, message = "btd,bsd->bts"}> : () -> ()
    %cst_9 = arith.constant dense<0.000000e+00> : vector<2x16x16xf32>
    %37 = tpu.matmul %32, %34, %cst_9 {dimension_numbers = #tpu.dot_dimension_numbers<[2], [2], [1], [1], [0, 0, 0, 1, 1, 1], [0], [0]>} : vector<2x16x64xf32>, vector<2x16x64xf32>, vector<2x16x16xf32> -> vector<2x16x16xf32>
    "tpu.trace_stop"() : () -> ()
    %cst_10 = arith.constant 0.0510310382 : f32
    %38 = vector.broadcast %cst_10 : f32 to vector<2x16x16xf32>
    %39 = arith.mulf %37, %38 : vector<2x16x16xf32>
    %cst_11 = arith.constant 0xFF800000 : f32
    %40 = vector.shape_cast %6 : vector<1x16x16xi1> to vector<1x16x16xi1>
    %41 = vector.broadcast %40 : vector<1x16x16xi1> to vector<2x16x16xi1>
    %42 = vector.broadcast %cst_11 : f32 to vector<2x16x16xf32>
    %43 = arith.select %41, %39, %42 : vector<2x16x16xi1>, vector<2x16x16xf32>
    %cst_12 = arith.constant dense<0xFF800000> : vector<2x16xf32>
    %44 = vector.multi_reduction <maximumf>, %43, %cst_12 [2] : vector<2x16x16xf32> to vector<2x16xf32>
    %45 = vector.shape_cast %44 : vector<2x16xf32> to vector<2x16x1xf32>
    %46 = vector.broadcast %45 : vector<2x16x1xf32> to vector<2x16x16xf32>
    %47 = arith.subf %43, %46 : vector<2x16x16xf32>
    %48 = math.exp %47 : vector<2x16x16xf32>
    %cst_13 = arith.constant dense<0.000000e+00> : vector<2x16xf32>
    %49 = vector.multi_reduction <add>, %48, %cst_13 [2] : vector<2x16x16xf32> to vector<2x16xf32>
    %50 = vector.shape_cast %49 : vector<2x16xf32> to vector<2x16x1xf32>
    %51 = tpu.reciprocal %50 {approx = true} : vector<2x16x1xf32> -> vector<2x16x1xf32>
    %52 = vector.broadcast %51 : vector<2x16x1xf32> to vector<2x16x16xf32>
    %53 = arith.mulf %48, %52 : vector<2x16x16xf32>
    "tpu.trace_start"() <{level = 10 : i32, message = "bts,bsd->btd"}> : () -> ()
    %cst_14 = arith.constant dense<0.000000e+00> : vector<2x16x64xf32>
    %54 = tpu.matmul %53, %36, %cst_14 {dimension_numbers = #tpu.dot_dimension_numbers<[2], [1], [1], [2], [0, 0, 0, 1, 1, 2], [0], [0]>} : vector<2x16x16xf32>, vector<2x16x64xf32>, vector<2x16x64xf32> -> vector<2x16x64xf32>
    "tpu.trace_stop"() : () -> ()
    %55 = vector.extract_strided_slice %2 {offsets = [0, 128], sizes = [32, 64], strides = [1, 1]} : vector<32x1152xf32> to vector<32x64xf32>
    %56 = vector.shape_cast %55 : vector<32x64xf32> to vector<2x16x64xf32>
    %57 = vector.extract_strided_slice %2 {offsets = [0, 512], sizes = [32, 64], strides = [1, 1]} : vector<32x1152xf32> to vector<32x64xf32>
    %58 = vector.shape_cast %57 : vector<32x64xf32> to vector<2x16x64xf32>
    %59 = vector.extract_strided_slice %2 {offsets = [0, 896], sizes = [32, 64], strides = [1, 1]} : vector<32x1152xf32> to vector<32x64xf32>
    %60 = vector.shape_cast %59 : vector<32x64xf32> to vector<2x16x64xf32>
    "tpu.trace_start"() <{level = 10 : i32, message = "btd,bsd->bts"}> : () -> ()
    %cst_15 = arith.constant dense<0.000000e+00> : vector<2x16x16xf32>
    %61 = tpu.matmul %56, %58, %cst_15 {dimension_numbers = #tpu.dot_dimension_numbers<[2], [2], [1], [1], [0, 0, 0, 1, 1, 1], [0], [0]>} : vector<2x16x64xf32>, vector<2x16x64xf32>, vector<2x16x16xf32> -> vector<2x16x16xf32>
    "tpu.trace_stop"() : () -> ()
    %cst_16 = arith.constant 0.0510310382 : f32
    %62 = vector.broadcast %cst_16 : f32 to vector<2x16x16xf32>
    %63 = arith.mulf %61, %62 : vector<2x16x16xf32>
    %cst_17 = arith.constant 0xFF800000 : f32
    %64 = vector.shape_cast %6 : vector<1x16x16xi1> to vector<1x16x16xi1>
    %65 = vector.broadcast %64 : vector<1x16x16xi1> to vector<2x16x16xi1>
    %66 = vector.broadcast %cst_17 : f32 to vector<2x16x16xf32>
    %67 = arith.select %65, %63, %66 : vector<2x16x16xi1>, vector<2x16x16xf32>
    %cst_18 = arith.constant dense<0xFF800000> : vector<2x16xf32>
    %68 = vector.multi_reduction <maximumf>, %67, %cst_18 [2] : vector<2x16x16xf32> to vector<2x16xf32>
    %69 = vector.shape_cast %68 : vector<2x16xf32> to vector<2x16x1xf32>
    %70 = vector.broadcast %69 : vector<2x16x1xf32> to vector<2x16x16xf32>
    %71 = arith.subf %67, %70 : vector<2x16x16xf32>
    %72 = math.exp %71 : vector<2x16x16xf32>
    %cst_19 = arith.constant dense<0.000000e+00> : vector<2x16xf32>
    %73 = vector.multi_reduction <add>, %72, %cst_19 [2] : vector<2x16x16xf32> to vector<2x16xf32>
    %74 = vector.shape_cast %73 : vector<2x16xf32> to vector<2x16x1xf32>
    %75 = tpu.reciprocal %74 {approx = true} : vector<2x16x1xf32> -> vector<2x16x1xf32>
    %76 = vector.broadcast %75 : vector<2x16x1xf32> to vector<2x16x16xf32>
    %77 = arith.mulf %72, %76 : vector<2x16x16xf32>
    "tpu.trace_start"() <{level = 10 : i32, message = "bts,bsd->btd"}> : () -> ()
    %cst_20 = arith.constant dense<0.000000e+00> : vector<2x16x64xf32>
    %78 = tpu.matmul %77, %60, %cst_20 {dimension_numbers = #tpu.dot_dimension_numbers<[2], [1], [1], [2], [0, 0, 0, 1, 1, 2], [0], [0]>} : vector<2x16x16xf32>, vector<2x16x64xf32>, vector<2x16x64xf32> -> vector<2x16x64xf32>
    "tpu.trace_stop"() : () -> ()
    %79 = vector.extract_strided_slice %2 {offsets = [0, 192], sizes = [32, 64], strides = [1, 1]} : vector<32x1152xf32> to vector<32x64xf32>
    %80 = vector.shape_cast %79 : vector<32x64xf32> to vector<2x16x64xf32>
    %81 = vector.extract_strided_slice %2 {offsets = [0, 576], sizes = [32, 64], strides = [1, 1]} : vector<32x1152xf32> to vector<32x64xf32>
    %82 = vector.shape_cast %81 : vector<32x64xf32> to vector<2x16x64xf32>
    %83 = vector.extract_strided_slice %2 {offsets = [0, 960], sizes = [32, 64], strides = [1, 1]} : vector<32x1152xf32> to vector<32x64xf32>
    %84 = vector.shape_cast %83 : vector<32x64xf32> to vector<2x16x64xf32>
    "tpu.trace_start"() <{level = 10 : i32, message = "btd,bsd->bts"}> : () -> ()
    %cst_21 = arith.constant dense<0.000000e+00> : vector<2x16x16xf32>
    %85 = tpu.matmul %80, %82, %cst_21 {dimension_numbers = #tpu.dot_dimension_numbers<[2], [2], [1], [1], [0, 0, 0, 1, 1, 1], [0], [0]>} : vector<2x16x64xf32>, vector<2x16x64xf32>, vector<2x16x16xf32> -> vector<2x16x16xf32>
    "tpu.trace_stop"() : () -> ()
    %cst_22 = arith.constant 0.0510310382 : f32
    %86 = vector.broadcast %cst_22 : f32 to vector<2x16x16xf32>
    %87 = arith.mulf %85, %86 : vector<2x16x16xf32>
    %cst_23 = arith.constant 0xFF800000 : f32
    %88 = vector.shape_cast %6 : vector<1x16x16xi1> to vector<1x16x16xi1>
    %89 = vector.broadcast %88 : vector<1x16x16xi1> to vector<2x16x16xi1>
    %90 = vector.broadcast %cst_23 : f32 to vector<2x16x16xf32>
    %91 = arith.select %89, %87, %90 : vector<2x16x16xi1>, vector<2x16x16xf32>
    %cst_24 = arith.constant dense<0xFF800000> : vector<2x16xf32>
    %92 = vector.multi_reduction <maximumf>, %91, %cst_24 [2] : vector<2x16x16xf32> to vector<2x16xf32>
    %93 = vector.shape_cast %92 : vector<2x16xf32> to vector<2x16x1xf32>
    %94 = vector.broadcast %93 : vector<2x16x1xf32> to vector<2x16x16xf32>
    %95 = arith.subf %91, %94 : vector<2x16x16xf32>
    %96 = math.exp %95 : vector<2x16x16xf32>
    %cst_25 = arith.constant dense<0.000000e+00> : vector<2x16xf32>
    %97 = vector.multi_reduction <add>, %96, %cst_25 [2] : vector<2x16x16xf32> to vector<2x16xf32>
    %98 = vector.shape_cast %97 : vector<2x16xf32> to vector<2x16x1xf32>
    %99 = tpu.reciprocal %98 {approx = true} : vector<2x16x1xf32> -> vector<2x16x1xf32>
    %100 = vector.broadcast %99 : vector<2x16x1xf32> to vector<2x16x16xf32>
    %101 = arith.mulf %96, %100 : vector<2x16x16xf32>
    "tpu.trace_start"() <{level = 10 : i32, message = "bts,bsd->btd"}> : () -> ()
    %cst_26 = arith.constant dense<0.000000e+00> : vector<2x16x64xf32>
    %102 = tpu.matmul %101, %84, %cst_26 {dimension_numbers = #tpu.dot_dimension_numbers<[2], [1], [1], [2], [0, 0, 0, 1, 1, 2], [0], [0]>} : vector<2x16x16xf32>, vector<2x16x64xf32>, vector<2x16x64xf32> -> vector<2x16x64xf32>
    "tpu.trace_stop"() : () -> ()
    %103 = vector.extract_strided_slice %2 {offsets = [0, 256], sizes = [32, 64], strides = [1, 1]} : vector<32x1152xf32> to vector<32x64xf32>
    %104 = vector.shape_cast %103 : vector<32x64xf32> to vector<2x16x64xf32>
    %105 = vector.extract_strided_slice %2 {offsets = [0, 640], sizes = [32, 64], strides = [1, 1]} : vector<32x1152xf32> to vector<32x64xf32>
    %106 = vector.shape_cast %105 : vector<32x64xf32> to vector<2x16x64xf32>
    %107 = vector.extract_strided_slice %2 {offsets = [0, 1024], sizes = [32, 64], strides = [1, 1]} : vector<32x1152xf32> to vector<32x64xf32>
    %108 = vector.shape_cast %107 : vector<32x64xf32> to vector<2x16x64xf32>
    "tpu.trace_start"() <{level = 10 : i32, message = "btd,bsd->bts"}> : () -> ()
    %cst_27 = arith.constant dense<0.000000e+00> : vector<2x16x16xf32>
    %109 = tpu.matmul %104, %106, %cst_27 {dimension_numbers = #tpu.dot_dimension_numbers<[2], [2], [1], [1], [0, 0, 0, 1, 1, 1], [0], [0]>} : vector<2x16x64xf32>, vector<2x16x64xf32>, vector<2x16x16xf32> -> vector<2x16x16xf32>
    "tpu.trace_stop"() : () -> ()
    %cst_28 = arith.constant 0.0510310382 : f32
    %110 = vector.broadcast %cst_28 : f32 to vector<2x16x16xf32>
    %111 = arith.mulf %109, %110 : vector<2x16x16xf32>
    %cst_29 = arith.constant 0xFF800000 : f32
    %112 = vector.shape_cast %6 : vector<1x16x16xi1> to vector<1x16x16xi1>
    %113 = vector.broadcast %112 : vector<1x16x16xi1> to vector<2x16x16xi1>
    %114 = vector.broadcast %cst_29 : f32 to vector<2x16x16xf32>
    %115 = arith.select %113, %111, %114 : vector<2x16x16xi1>, vector<2x16x16xf32>
    %cst_30 = arith.constant dense<0xFF800000> : vector<2x16xf32>
    %116 = vector.multi_reduction <maximumf>, %115, %cst_30 [2] : vector<2x16x16xf32> to vector<2x16xf32>
    %117 = vector.shape_cast %116 : vector<2x16xf32> to vector<2x16x1xf32>
    %118 = vector.broadcast %117 : vector<2x16x1xf32> to vector<2x16x16xf32>
    %119 = arith.subf %115, %118 : vector<2x16x16xf32>
    %120 = math.exp %119 : vector<2x16x16xf32>
    %cst_31 = arith.constant dense<0.000000e+00> : vector<2x16xf32>
    %121 = vector.multi_reduction <add>, %120, %cst_31 [2] : vector<2x16x16xf32> to vector<2x16xf32>
    %122 = vector.shape_cast %121 : vector<2x16xf32> to vector<2x16x1xf32>
    %123 = tpu.reciprocal %122 {approx = true} : vector<2x16x1xf32> -> vector<2x16x1xf32>
    %124 = vector.broadcast %123 : vector<2x16x1xf32> to vector<2x16x16xf32>
    %125 = arith.mulf %120, %124 : vector<2x16x16xf32>
    "tpu.trace_start"() <{level = 10 : i32, message = "bts,bsd->btd"}> : () -> ()
    %cst_32 = arith.constant dense<0.000000e+00> : vector<2x16x64xf32>
    %126 = tpu.matmul %125, %108, %cst_32 {dimension_numbers = #tpu.dot_dimension_numbers<[2], [1], [1], [2], [0, 0, 0, 1, 1, 2], [0], [0]>} : vector<2x16x16xf32>, vector<2x16x64xf32>, vector<2x16x64xf32> -> vector<2x16x64xf32>
    "tpu.trace_stop"() : () -> ()
    %127 = vector.extract_strided_slice %2 {offsets = [0, 320], sizes = [32, 64], strides = [1, 1]} : vector<32x1152xf32> to vector<32x64xf32>
    %128 = vector.shape_cast %127 : vector<32x64xf32> to vector<2x16x64xf32>
    %129 = vector.extract_strided_slice %2 {offsets = [0, 704], sizes = [32, 64], strides = [1, 1]} : vector<32x1152xf32> to vector<32x64xf32>
    %130 = vector.shape_cast %129 : vector<32x64xf32> to vector<2x16x64xf32>
    %131 = vector.extract_strided_slice %2 {offsets = [0, 1088], sizes = [32, 64], strides = [1, 1]} : vector<32x1152xf32> to vector<32x64xf32>
    %132 = vector.shape_cast %131 : vector<32x64xf32> to vector<2x16x64xf32>
    "tpu.trace_start"() <{level = 10 : i32, message = "btd,bsd->bts"}> : () -> ()
    %cst_33 = arith.constant dense<0.000000e+00> : vector<2x16x16xf32>
    %133 = tpu.matmul %128, %130, %cst_33 {dimension_numbers = #tpu.dot_dimension_numbers<[2], [2], [1], [1], [0, 0, 0, 1, 1, 1], [0], [0]>} : vector<2x16x64xf32>, vector<2x16x64xf32>, vector<2x16x16xf32> -> vector<2x16x16xf32>
    "tpu.trace_stop"() : () -> ()
    %cst_34 = arith.constant 0.0510310382 : f32
    %134 = vector.broadcast %cst_34 : f32 to vector<2x16x16xf32>
    %135 = arith.mulf %133, %134 : vector<2x16x16xf32>
    %cst_35 = arith.constant 0xFF800000 : f32
    %136 = vector.shape_cast %6 : vector<1x16x16xi1> to vector<1x16x16xi1>
    %137 = vector.broadcast %136 : vector<1x16x16xi1> to vector<2x16x16xi1>
    %138 = vector.broadcast %cst_35 : f32 to vector<2x16x16xf32>
    %139 = arith.select %137, %135, %138 : vector<2x16x16xi1>, vector<2x16x16xf32>
    %cst_36 = arith.constant dense<0xFF800000> : vector<2x16xf32>
    %140 = vector.multi_reduction <maximumf>, %139, %cst_36 [2] : vector<2x16x16xf32> to vector<2x16xf32>
    %141 = vector.shape_cast %140 : vector<2x16xf32> to vector<2x16x1xf32>
    %142 = vector.broadcast %141 : vector<2x16x1xf32> to vector<2x16x16xf32>
    %143 = arith.subf %139, %142 : vector<2x16x16xf32>
    %144 = math.exp %143 : vector<2x16x16xf32>
    %cst_37 = arith.constant dense<0.000000e+00> : vector<2x16xf32>
    %145 = vector.multi_reduction <add>, %144, %cst_37 [2] : vector<2x16x16xf32> to vector<2x16xf32>
    %146 = vector.shape_cast %145 : vector<2x16xf32> to vector<2x16x1xf32>
    %147 = tpu.reciprocal %146 {approx = true} : vector<2x16x1xf32> -> vector<2x16x1xf32>
    %148 = vector.broadcast %147 : vector<2x16x1xf32> to vector<2x16x16xf32>
    %149 = arith.mulf %144, %148 : vector<2x16x16xf32>
    "tpu.trace_start"() <{level = 10 : i32, message = "bts,bsd->btd"}> : () -> ()
    %cst_38 = arith.constant dense<0.000000e+00> : vector<2x16x64xf32>
    %150 = tpu.matmul %149, %132, %cst_38 {dimension_numbers = #tpu.dot_dimension_numbers<[2], [1], [1], [2], [0, 0, 0, 1, 1, 2], [0], [0]>} : vector<2x16x16xf32>, vector<2x16x64xf32>, vector<2x16x64xf32> -> vector<2x16x64xf32>
    "tpu.trace_stop"() : () -> ()
    %151 = tpu.concatenate %30, %54, %78, %102, %126, %150 in 2 : vector<2x16x64xf32>, vector<2x16x64xf32>, vector<2x16x64xf32>, vector<2x16x64xf32>, vector<2x16x64xf32>, vector<2x16x64xf32> -> vector<2x16x384xf32>
    %152 = vector.shape_cast %151 : vector<2x16x384xf32> to vector<32x384xf32>
    %c0_39 = arith.constant 0 : index
    %c0_40 = arith.constant 0 : index
    %153 = vector.load %arg2[%c0_39, %c0_40] : memref<384x384xf32, #tpu.memory_space<vmem>>, vector<384x384xf32>
    %cst_41 = arith.constant dense<0.000000e+00> : vector<32x384xf32>
    %154 = tpu.matmul %152, %153, %cst_41 {dimension_numbers = #tpu.dot_dimension_numbers<[1], [0], [0], [1], [0, 0, 1, 1], [], []>} : vector<32x384xf32>, vector<384x384xf32>, vector<32x384xf32> -> vector<32x384xf32>
    %c0_42 = arith.constant 0 : index
    %c0_43 = arith.constant 0 : index
    %155 = vector.load %arg3[%c0_42, %c0_43] : memref<1x384xf32, #tpu.memory_space<vmem>>, vector<1x384xf32>
    %156 = vector.broadcast %155 : vector<1x384xf32> to vector<32x384xf32>
    %157 = arith.addf %154, %156 : vector<32x384xf32>
    %c0_44 = arith.constant 0 : index
    %c0_45 = arith.constant 0 : index
    %158 = vector.load %arg4[%c0_44, %c0_45] : memref<32x384xf32, #tpu.memory_space<vmem>>, vector<32x384xf32>
    tpu.vector_store %arg4[%c0_44, %c0_45], %157 {strides = array<i32>} : memref<32x384xf32, #tpu.memory_space<vmem>>, vector<32x384xf32>,
    return
  }
}

</mosaic_0001>

<bundles_post_ra>
// kernel: multi_head_attention.1
= control target key start
LH: loop header
LB: loop body
LE: loop exit
PB: predicated region body
PF: predicated region fallthrough
CT: control target
= control target key end

     0   :  { %v8368_v7 = vmov 0.0   ;;  %s8363_s0 = inlined_call_operand.vmem [shape: f32[32,384], index: 0, kind: input, shape index: {}]   ;;  %s8364_s1 = inlined_call_operand.vmem [shape: f32[384,1152], index: 1, kind: input, shape index: {}]   ;;  %s8365_s2 = inlined_call_operand.vmem [shape: f32[384,384], index: 2, kind: input, shape index: {}]   ;;  %s8366_s3 = inlined_call_operand.vmem [shape: f32[1,384], index: 3, kind: input, shape index: {}]   ;;  %s8367_s4 = inlined_call_operand.hbm [shape: f32[32,384], index: 4, kind: output, shape index: {}]  }
   0x1   :  { %v31_v0 = vld [vmem:[%s8364_s1 + $0x8] sm:$0xff]  ;;  %v40_v1 = vld [vmem:[%s8364_s1 + $0x50] sm:$0xff]  ;;  %v30_v5 = vld [vmem:[%s8364_s1] sm:$0xff]  ;;  %615 = vmatprep.mubr.f32.mxu1 %v8368_v7 }
   0x2   :  { %v319_v2 = vld [vmem:[%s8364_s1 + $0x908] sm:$0xff]  ;;  %v4894_v3 = vpack.c.bf16 %v40_v1, %v31_v0  ;;  %v328_v4 = vld [vmem:[%s8364_s1 + $0x950] sm:$0xff]  ;;  %v318_v10 = vld [vmem:[%s8364_s1 + $0x900] sm:$0xff] }
   0x3   :  { %v39_v6 = vld [vmem:[%s8364_s1 + $0x48] sm:$0xff]  ;;  %v4958_v8 = vpack.c.bf16 %v328_v4, %v319_v2  ;;  %v49_v12 = vld [vmem:[%s8364_s1 + $0x98] sm:$0xff]  ;;  %v58_v14 = vld [vmem:[%s8364_s1 + $0xe0] sm:$0xff] }
   0x4   :  { %v4896_v9 = vpack.c.bf16 %v39_v6, %v30_v5  ;;  %v327_v11 = vld [vmem:[%s8364_s1 + $0x948] sm:$0xff]  ;;  %4895 = vmatprep.subr.bf16.mxu0 %v4894_v3  ;;  %v337_v15 = vld [vmem:[%s8364_s1 + $0x998] sm:$0xff]  ;;  %v346_v16 = vld [vmem:[%s8364_s1 + $0x9e0] sm:$0xff]  ;;  %v4898_v17 = vpack.c.bf16 %v58_v14, %v49_v12 }
   0x5   :  { %v4960_v13 = vpack.c.bf16 %v327_v11, %v318_v10  ;;  %4959 = vmatprep.subr.bf16.mxu1 %v4958_v8  ;;  %v4962_v18 = vpack.c.bf16 %v346_v16, %v337_v15  ;;  %v48_v19 = vld [vmem:[%s8364_s1 + $0x90] sm:$0xff]  ;;  %v57_v20 = vld [vmem:[%s8364_s1 + $0xd8] sm:$0xff]  ;;  %v67_v24 = vld [vmem:[%s8364_s1 + $0x128] sm:$0xff] }
   0x6   :  { %4897 = vmatpush1.bf16.msra.mxu0 %v4896_v9  ;;  %v336_v21 = vld [vmem:[%s8364_s1 + $0x990] sm:$0xff]  ;;  %v4900_v22 = vpack.c.bf16 %v57_v20, %v48_v19  ;;  %v345_v23 = vld [vmem:[%s8364_s1 + $0x9d8] sm:$0xff]  ;;  %v355_v28 = vld [vmem:[%s8364_s1 + $0xa28] sm:$0xff] }
   0x7   :  { %4961 = vmatpush1.bf16.msra.mxu1 %v4960_v13  ;;  %v76_v25 = vld [vmem:[%s8364_s1 + $0x170] sm:$0xff]  ;;  %4899 = vmatprep.subr.bf16.mxu0 %v4898_v17  ;;  %v4964_v26 = vpack.c.bf16 %v345_v23, %v336_v21  ;;  %v66_v30 = vld [vmem:[%s8364_s1 + $0x120] sm:$0xff]  ;;  %v75_v32 = vld [vmem:[%s8364_s1 + $0x168] sm:$0xff] }
   0x8   :  { %4963 = vmatprep.subr.bf16.mxu1 %v4962_v18  ;;  %v4902_v27 = vpack.c.bf16 %v76_v25, %v67_v24  ;;  %v364_v29 = vld [vmem:[%s8364_s1 + $0xa70] sm:$0xff]  ;;  %v354_v33 = vld [vmem:[%s8364_s1 + $0xa20] sm:$0xff]  ;;  %v363_v34 = vld [vmem:[%s8364_s1 + $0xa68] sm:$0xff]  ;;  %v4904_v35 = vpack.c.bf16 %v75_v32, %v66_v30 }
   0x9   :  { %v4966_v31 = vpack.c.bf16 %v364_v29, %v355_v28  ;;  %v85_v36 = vld [vmem:[%s8364_s1 + $0x1b8] sm:$0xff]  ;;  %v94_v37 = vld [vmem:[%s8364_s1 + $0x200] sm:$0xff]  ;;  %v4968_v39 = vpack.c.bf16 %v363_v34, %v354_v33  ;;  %v84_v42 = vld [vmem:[%s8364_s1 + $0x1b0] sm:$0xff] }
   0xa   :  { %4901 = vmatpush1.bf16.msra.mxu0 %v4900_v22  ;;  %v373_v38 = vld [vmem:[%s8364_s1 + $0xab8] sm:$0xff]  ;;  %v4906_v40 = vpack.c.bf16 %v94_v37, %v85_v36  ;;  %v382_v41 = vld [vmem:[%s8364_s1 + $0xb00] sm:$0xff]  ;;  %v372_v45 = vld [vmem:[%s8364_s1 + $0xab0] sm:$0xff] }
   0xb   :  { %4965 = vmatpush1.bf16.msra.mxu1 %v4964_v26  ;;  %4903 = vmatprep.subr.bf16.mxu0 %v4902_v27  ;;  %v93_v43 = vld [vmem:[%s8364_s1 + $0x1f8] sm:$0xff]  ;;  %v4970_v44 = vpack.c.bf16 %v382_v41, %v373_v38  ;;  %v103_v47 = vld [vmem:[%s8364_s1 + $0x248] sm:$0xff]  ;;  %v112_v48 = vld [vmem:[%s8364_s1 + $0x290] sm:$0xff] }
   0xc   :  { %4967 = vmatprep.subr.bf16.mxu1 %v4966_v31  ;;  %v381_v46 = vld [vmem:[%s8364_s1 + $0xaf8] sm:$0xff]  ;;  %v391_v49 = vld [vmem:[%s8364_s1 + $0xb48] sm:$0xff]  ;;  %v400_v50 = vld [vmem:[%s8364_s1 + $0xb90] sm:$0xff]  ;;  %v4908_v51 = vpack.c.bf16 %v93_v43, %v84_v42  ;;  %v4910_v53 = vpack.c.bf16 %v112_v48, %v103_v47 }
   0xd   :  { %v4972_v52 = vpack.c.bf16 %v381_v46, %v372_v45  ;;  %v102_v54 = vld [vmem:[%s8364_s1 + $0x240] sm:$0xff]  ;;  %v111_v55 = vld [vmem:[%s8364_s1 + $0x288] sm:$0xff]  ;;  %v4974_v57 = vpack.c.bf16 %v400_v50, %v391_v49  ;;  %v121_v59 = vld [vmem:[%s8364_s1 + $0x2d8] sm:$0xff] }
   0xe   :  { %4905 = vmatpush1.bf16.msra.mxu0 %v4904_v35  ;;  %v390_v56 = vld [vmem:[%s8364_s1 + $0xb40] sm:$0xff]  ;;  %v399_v58 = vld [vmem:[%s8364_s1 + $0xb88] sm:$0xff]  ;;  %v409_v61 = vld [vmem:[%s8364_s1 + $0xbd8] sm:$0xff]  ;;  %v4912_v63 = vpack.c.bf16 %v111_v55, %v102_v54 }
   0xf   :  { %4969 = vmatpush1.bf16.msra.mxu1 %v4968_v39  ;;  %4907 = vmatprep.subr.bf16.mxu0 %v4906_v40  ;;  %v130_v60 = vld [vmem:[%s8364_s1 + $0x320] sm:$0xff]  ;;  %v4976_v0 = vpack.c.bf16 %v399_v58, %v390_v56  ;;  %v120_v2 = vld [vmem:[%s8364_s1 + $0x2d0] sm:$0xff]  ;;  %v129_v3 = vld [vmem:[%s8364_s1 + $0x318] sm:$0xff] }
  0x10   :  { %4971 = vmatprep.subr.bf16.mxu1 %v4970_v44  ;;  %v418_v62 = vld [vmem:[%s8364_s1 + $0xc20] sm:$0xff]  ;;  %v4914_v1 = vpack.c.bf16 %v130_v60, %v121_v59  ;;  %v408_v4 = vld [vmem:[%s8364_s1 + $0xbd0] sm:$0xff]  ;;  %v417_v6 = vld [vmem:[%s8364_s1 + $0xc18] sm:$0xff]  ;;  %v4916_v12 = vpack.c.bf16 %v129_v3, %v120_v2 }
  0x11   :  { %v4978_v5 = vpack.c.bf16 %v418_v62, %v409_v61  ;;  %v139_v8 = vld [vmem:[%s8364_s1 + $0x368] sm:$0xff]  ;;  %v148_v9 = vld [vmem:[%s8364_s1 + $0x3b0] sm:$0xff]  ;;  %v4980_v13 = vpack.c.bf16 %v417_v6, %v408_v4  ;;  %v138_v15 = vld [vmem:[%s8364_s1 + $0x360] sm:$0xff] }
  0x12   :  { %4909 = vmatpush1.bf16.msra.mxu0 %v4908_v51  ;;  %v427_v10 = vld [vmem:[%s8364_s1 + $0xc68] sm:$0xff]  ;;  %v436_v11 = vld [vmem:[%s8364_s1 + $0xcb0] sm:$0xff]  ;;  %v4918_v14 = vpack.c.bf16 %v148_v9, %v139_v8  ;;  %v426_v17 = vld [vmem:[%s8364_s1 + $0xc60] sm:$0xff] }
  0x13   :  { %4973 = vmatpush1.bf16.msra.mxu1 %v4972_v52  ;;  %4911 = vmatprep.subr.bf16.mxu0 %v4910_v53  ;;  %v147_v16 = vld [vmem:[%s8364_s1 + $0x3a8] sm:$0xff]  ;;  %v4982_v18 = vpack.c.bf16 %v436_v11, %v427_v10  ;;  %v157_v20 = vld [vmem:[%s8364_s1 + $0x3f8] sm:$0xff]  ;;  %v166_v21 = vld [vmem:[%s8364_s1 + $0x440] sm:$0xff] }
  0x14   :  { %4975 = vmatprep.subr.bf16.mxu1 %v4974_v57  ;;  %v435_v19 = vld [vmem:[%s8364_s1 + $0xca8] sm:$0xff]  ;;  %v445_v22 = vld [vmem:[%s8364_s1 + $0xcf8] sm:$0xff]  ;;  %v454_v23 = vld [vmem:[%s8364_s1 + $0xd40] sm:$0xff]  ;;  %v4920_v24 = vpack.c.bf16 %v147_v16, %v138_v15  ;;  %v4922_v26 = vpack.c.bf16 %v166_v21, %v157_v20 }
  0x15   :  { %v4984_v25 = vpack.c.bf16 %v435_v19, %v426_v17  ;;  %v156_v27 = vld [vmem:[%s8364_s1 + $0x3f0] sm:$0xff]  ;;  %v165_v28 = vld [vmem:[%s8364_s1 + $0x438] sm:$0xff]  ;;  %v4986_v30 = vpack.c.bf16 %v454_v23, %v445_v22  ;;  %v175_v32 = vld [vmem:[%s8364_s1 + $0x488] sm:$0xff] }
  0x16   :  { %4913 = vmatpush1.bf16.msra.mxu0 %v4912_v63  ;;  %v444_v29 = vld [vmem:[%s8364_s1 + $0xcf0] sm:$0xff]  ;;  %v453_v31 = vld [vmem:[%s8364_s1 + $0xd38] sm:$0xff]  ;;  %v42_v35 = vld [vmem:[%s8364_s1 + $0x60] sm:$0xff]  ;;  %v4924_v36 = vpack.c.bf16 %v165_v28, %v156_v27 }
  0x17   :  { %4977 = vmatpush1.bf16.msra.mxu1 %v4976_v0  ;;  %4915 = vmatprep.subr.bf16.mxu0 %v4914_v1  ;;  %v184_v33 = vld [vmem:[%s8364_s1 + $0x4d0] sm:$0xff]  ;;  %v33_v34 = vld [vmem:[%s8364_s1 + $0x18] sm:$0xff]  ;;  %v4988_v37 = vpack.c.bf16 %v453_v31, %v444_v29  ;;  %v174_v39 = vld [vmem:[%s8364_s1 + $0x480] sm:$0xff] }
  0x18   :  { %4979 = vmatprep.subr.bf16.mxu1 %v4978_v5  ;;  %v4926_v38 = vpack.c.bf16 %v184_v33, %v175_v32  ;;  %v183_v40 = vld [vmem:[%s8364_s1 + $0x4c8] sm:$0xff]  ;;  %v32_v41 = vld [vmem:[%s8364_s1 + $0x10] sm:$0xff]  ;;  %v4990_v42 = vpack.c.bf16 %v42_v35, %v33_v34  ;;  %v41_v43 = vld [vmem:[%s8364_s1 + $0x58] sm:$0xff] }
  0x19   :  { %v193_v44 = vld [vmem:[%s8364_s1 + $0x518] sm:$0xff]  ;;  %v202_v45 = vld [vmem:[%s8364_s1 + $0x560] sm:$0xff]  ;;  %v51_v46 = vld [vmem:[%s8364_s1 + $0xa8] sm:$0xff]  ;;  %v4928_v49 = vpack.c.bf16 %v183_v40, %v174_v39  ;;  %v4992_v50 = vpack.c.bf16 %v41_v43, %v32_v41 }
  0x1a   :  { %4917 = vmatpush1.bf16.msra.mxu0 %v4916_v12  ;;  %v60_v47 = vld [vmem:[%s8364_s1 + $0xf0] sm:$0xff]  ;;  %v4930_v51 = vpack.c.bf16 %v202_v45, %v193_v44  ;;  %v201_v53 = vld [vmem:[%s8364_s1 + $0x558] sm:$0xff]  ;;  %v50_v54 = vld [vmem:[%s8364_s1 + $0xa0] sm:$0xff] }
  0x1b   :  { %4981 = vmatpush1.bf16.msra.mxu1 %v4980_v13  ;;  %4919 = vmatprep.subr.bf16.mxu0 %v4918_v14  ;;  %v6149_v48 = vld [vmem:[%s8363_s0 + $0x10] sm:$0xff]  ;;  %v4994_v55 = vpack.c.bf16 %v60_v47, %v51_v46  ;;  %v59_v56 = vld [vmem:[%s8364_s1 + $0xe8] sm:$0xff]  ;;  %v69_v59 = vld [vmem:[%s8364_s1 + $0x138] sm:$0xff] }
  0x1c   :  { %4983 = vmatprep.subr.bf16.mxu1 %v4982_v18  ;;  %v192_v52 = vld [vmem:[%s8364_s1 + $0x510] sm:$0xff]  ;;  %v211_v57 = vld [vmem:[%s8364_s1 + $0x5a8] sm:$0xff]  ;;  %v78_v60 = vld [vmem:[%s8364_s1 + $0x180] sm:$0xff]  ;;  %v4996_v62 = vpack.c.bf16 %v59_v56, %v50_v54 }
  0x1d   :  { %v220_v58 = vld [vmem:[%s8364_s1 + $0x5f0] sm:$0xff]  ;;  %v4932_v61 = vpack.c.bf16 %v201_v53, %v192_v52  ;;  %v210_v0 = vld [vmem:[%s8364_s1 + $0x5a0] sm:$0xff]  ;;  %v219_v1 = vld [vmem:[%s8364_s1 + $0x5e8] sm:$0xff]  ;;  %v4998_v3 = vpack.c.bf16 %v78_v60, %v69_v59 }
  0x1e   :  { %4921 = vmatpush1.bf16.msra.mxu0 %v4920_v24  ;;  %v4934_v63 = vpack.c.bf16 %v220_v58, %v211_v57  ;;  %v68_v2 = vld [vmem:[%s8364_s1 + $0x130] sm:$0xff]  ;;  %v77_v4 = vld [vmem:[%s8364_s1 + $0x178] sm:$0xff]  ;;  %v238_v6 = vld [vmem:[%s8364_s1 + $0x680] sm:$0xff]  ;;  %v4936_v10 = vpack.c.bf16 %v219_v1, %v210_v0 }
  0x1f   :  { %4985 = vmatpush1.bf16.msra.mxu1 %v4984_v25  ;;  %4923 = vmatprep.subr.bf16.mxu0 %v4922_v26  ;;  %v229_v5 = vld [vmem:[%s8364_s1 + $0x638] sm:$0xff]  ;;  %v87_v8 = vld [vmem:[%s8364_s1 + $0x1c8] sm:$0xff]  ;;  %v96_v9 = vld [vmem:[%s8364_s1 + $0x210] sm:$0xff]  ;;  %v5000_v11 = vpack.c.bf16 %v77_v4, %v68_v2 }
  0x20   :  { %4987 = vmatprep.subr.bf16.mxu1 %v4986_v30  ;;  %v4938_v12 = vpack.c.bf16 %v238_v6, %v229_v5  ;;  %v228_v13 = vld [vmem:[%s8364_s1 + $0x630] sm:$0xff]  ;;  %v237_v14 = vld [vmem:[%s8364_s1 + $0x678] sm:$0xff]  ;;  %v86_v15 = vld [vmem:[%s8364_s1 + $0x1c0] sm:$0xff]  ;;  %v5002_v16 = vpack.c.bf16 %v96_v9, %v87_v8 }
  0x21   :  { %v95_v17 = vld [vmem:[%s8364_s1 + $0x208] sm:$0xff]  ;;  %v256_v19 = vld [vmem:[%s8364_s1 + $0x710] sm:$0xff]  ;;  %v105_v20 = vld [vmem:[%s8364_s1 + $0x258] sm:$0xff]  ;;  %v4940_v23 = vpack.c.bf16 %v237_v14, %v228_v13 }
  0x22   :  { %4925 = vmatpush1.bf16.msra.mxu0 %v4924_v36  ;;  %v247_v18 = vld [vmem:[%s8364_s1 + $0x6c8] sm:$0xff]  ;;  %v114_v21 = vld [vmem:[%s8364_s1 + $0x2a0] sm:$0xff]  ;;  %v5004_v24 = vpack.c.bf16 %v95_v17, %v86_v15  ;;  %v104_v28 = vld [vmem:[%s8364_s1 + $0x250] sm:$0xff] }
  0x23   :  { %4989 = vmatpush1.bf16.msra.mxu1 %v4988_v37  ;;  %4927 = vmatprep.subr.bf16.mxu0 %v4926_v38  ;;  %v6228_v22 = vld [vmem:[%s8363_s0 + $0x8] sm:$0xff]  ;;  %v4942_v25 = vpack.c.bf16 %v256_v19, %v247_v18  ;;  %v246_v26 = vld [vmem:[%s8364_s1 + $0x6c0] sm:$0xff]  ;;  %v5006_v29 = vpack.c.bf16 %v114_v21, %v105_v20  ;;  %v113_v30 = vld [vmem:[%s8364_s1 + $0x298] sm:$0xff] }
  0x24   :  { %4991 = vmatprep.subr.bf16.mxu1 %v4990_v42  ;;  %526 = vmatprep.mubr.f32.mxu0 %v6228_v22  ;;  %v255_v27 = vld [vmem:[%s8364_s1 + $0x708] sm:$0xff]  ;;  %v265_v31 = vld [vmem:[%s8364_s1 + $0x758] sm:$0xff]  ;;  %v274_v32 = vld [vmem:[%s8364_s1 + $0x7a0] sm:$0xff]  ;;  %v5008_v36 = vpack.c.bf16 %v113_v30, %v104_v28 }
  0x25   :  { %v123_v33 = vld [vmem:[%s8364_s1 + $0x2e8] sm:$0xff]  ;;  %v132_v34 = vld [vmem:[%s8364_s1 + $0x330] sm:$0xff]  ;;  %v4944_v35 = vpack.c.bf16 %v255_v27, %v246_v26  ;;  %v4946_v37 = vpack.c.bf16 %v274_v32, %v265_v31  ;;  %v273_v39 = vld [vmem:[%s8364_s1 + $0x798] sm:$0xff] }
  0x26   :  { %616 = vmatmul.mubr.f32.vlgmr.msra.gmra.mrb[0].mxu1 %v6149_v48  ;;  %4929 = vmatpush1.bf16.msra.mxu0 %v4928_v49  ;;  %v264_v38 = vld [vmem:[%s8364_s1 + $0x750] sm:$0xff]  ;;  %v122_v40 = vld [vmem:[%s8364_s1 + $0x2e0] sm:$0xff]  ;;  %v5010_v41 = vpack.c.bf16 %v132_v34, %v123_v33  ;;  %v131_v42 = vld [vmem:[%s8364_s1 + $0x328] sm:$0xff] }
  0x27   :  { %4993 = vmatpush1.bf16.msra.mxu1 %v4992_v50  ;;  %4931 = vmatprep.subr.bf16.mxu0 %v4930_v51  ;;  %v283_v43 = vld [vmem:[%s8364_s1 + $0x7e8] sm:$0xff]  ;;  %v292_v44 = vld [vmem:[%s8364_s1 + $0x830] sm:$0xff]  ;;  %v141_v45 = vld [vmem:[%s8364_s1 + $0x378] sm:$0xff]  ;;  %v4948_v49 = vpack.c.bf16 %v273_v39, %v264_v38  ;;  %v5012_v51 = vpack.c.bf16 %v131_v42, %v122_v40 }
  0x28   :  { %4995 = vmatprep.subr.bf16.mxu1 %v4994_v55  ;;  %621 = vmatprep.mubr.f32.mxu1 %v8368_v7  ;;  %v150_v46 = vld [vmem:[%s8364_s1 + $0x3c0] sm:$0xff]  ;;  %v6282_v47 = vld [vmem:[%s8363_s0 + $0x28] sm:$0xff]  ;;  %v4950_v52 = vpack.c.bf16 %v292_v44, %v283_v43  ;;  %v140_v54 = vld [vmem:[%s8364_s1 + $0x370] sm:$0xff] }
  0x29   :  { %v282_v50 = vld [vmem:[%s8364_s1 + $0x7e0] sm:$0xff]  ;;  %v291_v53 = vld [vmem:[%s8364_s1 + $0x828] sm:$0xff]  ;;  %v5014_v56 = vpack.c.bf16 %v150_v46, %v141_v45  ;;  %v149_v57 = vld [vmem:[%s8364_s1 + $0x3b8] sm:$0xff] }
  0x2a   :  { %4933 = vmatpush1.bf16.msra.mxu0 %v4932_v61  ;;  %622 = vmatmul.mubr.f32.gmra.mrb[2].mxu1 %v6282_v47  ;;  %v6297_v55 = vld [vmem:[%s8363_s0 + $0x40] sm:$0xff]  ;;  %v301_v58 = vld [vmem:[%s8364_s1 + $0x878] sm:$0xff]  ;;  %v159_v60 = vld [vmem:[%s8364_s1 + $0x408] sm:$0xff] }
  0x2b   :  { %4997 = vmatpush1.bf16.msra.mxu1 %v4996_v62  ;;  %4935 = vmatprep.subr.bf16.mxu0 %v4934_v63  ;;  %v310_v59 = vld [vmem:[%s8364_s1 + $0x8c0] sm:$0xff]  ;;  %v168_v61 = vld [vmem:[%s8364_s1 + $0x450] sm:$0xff]  ;;  %v4952_v62 = vpack.c.bf16 %v291_v53, %v282_v50  ;;  %v5016_v63 = vpack.c.bf16 %v149_v57, %v140_v54  ;;  %v309_v2 = vld [vmem:[%s8364_s1 + $0x8b8] sm:$0xff] }
  0x2c   :  { %4999 = vmatprep.subr.bf16.mxu1 %v4998_v3  ;;  %627 = vmatprep.mubr.f32.mxu1 %v8368_v7  ;;  %v4954_v0 = vpack.c.bf16 %v310_v59, %v301_v58  ;;  %v300_v1 = vld [vmem:[%s8364_s1 + $0x870] sm:$0xff]  ;;  %v6325_v3 = vld [vmem:[%s8363_s0 + $0x58] sm:$0xff]  ;;  %v5018_v4 = vpack.c.bf16 %v168_v61, %v159_v60  ;;  %v158_v5 = vld [vmem:[%s8364_s1 + $0x400] sm:$0xff] }
  0x2d   :  { %v167_v6 = vld [vmem:[%s8364_s1 + $0x448] sm:$0xff]  ;;  %v177_v8 = vld [vmem:[%s8364_s1 + $0x498] sm:$0xff]  ;;  %v186_v9 = vld [vmem:[%s8364_s1 + $0x4e0] sm:$0xff] }
  0x2e   :  { %4937 = vmatpush1.bf16.msra.mxu0 %v4936_v10  ;;  %628 = vmatmul.mubr.f32.gmra.mrb[4].mxu1 %v6297_v55  ;;  %v4956_v10 = vpack.c.bf16 %v309_v2, %v300_v1  ;;  %v176_v13 = vld [vmem:[%s8364_s1 + $0x490] sm:$0xff]  ;;  %v185_v14 = vld [vmem:[%s8364_s1 + $0x4d8] sm:$0xff]  ;;  %v195_v15 = vld [vmem:[%s8364_s1 + $0x528] sm:$0xff] }
  0x2f   :  { %5001 = vmatpush1.bf16.msra.mxu1 %v5000_v11  ;;  %4939 = vmatprep.subr.bf16.mxu0 %v4938_v12  ;;  %v5020_v11 = vpack.c.bf16 %v167_v6, %v158_v5  ;;  %v5022_v12 = vpack.c.bf16 %v186_v9, %v177_v8  ;;  %v6357_v17 = vld [vmem:[%s8363_s0] sm:$0xff]  ;;  %v5024_v18 = vpack.c.bf16 %v185_v14, %v176_v13  ;;  %v6381_v26 = vld [vmem:[%s8363_s0 + $0x18] sm:$0xff]  ;;  %v212_v30 = vld [vmem:[%s8364_s1 + $0x5b0] sm:$0xff] }
  0x30   :  { %5003 = vmatprep.subr.bf16.mxu1 %v5002_v16  ;;  %633 = vmatprep.mubr.f32.mxu1 %v8368_v7  ;;  %v204_v16 = vld [vmem:[%s8364_s1 + $0x570] sm:$0xff]  ;;  %v6362_v19 = vld [vmem:[%s8363_s0 + $0x20] sm:$0xff]  ;;  %v6386_v28 = vld [vmem:[%s8363_s0 + $0x38] sm:$0xff] }
  0x31   :  { %v5026_v20 = vpack.c.bf16 %v204_v16, %v195_v15  ;;  %v194_v21 = vld [vmem:[%s8364_s1 + $0x520] sm:$0xff]  ;;  %v221_v31 = vld [vmem:[%s8364_s1 + $0x5f8] sm:$0xff]  ;;  %v231_v32 = vld [vmem:[%s8364_s1 + $0x648] sm:$0xff] }
  0x32   :  { %4941 = vmatpush1.bf16.msra.mxu0 %v4940_v23  ;;  %634 = vmatmul.mubr.f32.gmra.mrb[6].mxu1 %v6325_v3  ;;  %v203_v23 = vld [vmem:[%s8364_s1 + $0x568] sm:$0xff]  ;;  %v240_v33 = vld [vmem:[%s8364_s1 + $0x690] sm:$0xff]  ;;  %v249_v40 = vld [vmem:[%s8364_s1 + $0x6d8] sm:$0xff] }
  0x33   :  { %5005 = vmatpush1.bf16.msra.mxu1 %v5004_v24  ;;  %4943 = vmatprep.subr.bf16.mxu0 %v4942_v25  ;;  %v213_v24 = vld [vmem:[%s8364_s1 + $0x5b8] sm:$0xff]  ;;  %v222_v25 = vld [vmem:[%s8364_s1 + $0x600] sm:$0xff]  ;;  %v5028_v27 = vpack.c.bf16 %v203_v23, %v194_v21  ;;  %v6405_v34 = vld [vmem:[%s8363_s0 + $0x30] sm:$0xff]  ;;  %v5034_v39 = vpack.c.bf16 %v240_v33, %v231_v32 }
  0x34   :  { %5007 = vmatprep.subr.bf16.mxu1 %v5006_v29  ;;  %704 = vmatprep.mubr.f32.mxu1 %v6228_v22  ;;  %v5030_v29 = vpack.c.bf16 %v222_v25, %v213_v24  ;;  %v6416_v38 = vld [vmem:[%s8363_s0 + $0x50] sm:$0xff]  ;;  %v258_v43 = vld [vmem:[%s8364_s1 + $0x720] sm:$0xff]  ;;  %v43_v46 = vld [vmem:[%s8364_s1 + $0x68] sm:$0xff] }
  0x35   :  { %v44_v42 = vld [vmem:[%s8364_s1 + $0x70] sm:$0xff]  ;;  %v34_v45 = vld [vmem:[%s8364_s1 + $0x20] sm:$0xff]  ;;  %v257_v54 = vld [vmem:[%s8364_s1 + $0x718] sm:$0xff]  ;;  %v5038_v57 = vpack.c.bf16 %v258_v43, %v249_v40 }
  0x36   :  { %4945 = vmatpush1.bf16.msra.mxu0 %v4944_v35  ;;  %v5032_v35 = vpack.c.bf16 %v221_v31, %v212_v30  ;;  %v5088_v50 = vpack.c.bf16 %v43_v46, %v34_v45  ;;  %v248_v53 = vld [vmem:[%s8364_s1 + $0x6d0] sm:$0xff]  ;;  %v267_v58 = vld [vmem:[%s8364_s1 + $0x768] sm:$0xff]  ;;  %v61_v61 = vld [vmem:[%s8364_s1 + $0xf8] sm:$0xff] }
  0x37   :  { %5009 = vmatpush1.bf16.msra.mxu1 %v5008_v36  ;;  %4947 = vmatprep.subr.bf16.mxu0 %v4946_v37  ;;  %v230_v36 = vld [vmem:[%s8364_s1 + $0x640] sm:$0xff]  ;;  %v239_v37 = vld [vmem:[%s8364_s1 + $0x688] sm:$0xff]  ;;  %v52_v60 = vld [vmem:[%s8364_s1 + $0xb0] sm:$0xff]  ;;  %v5040_v5 = vpack.c.bf16 %v257_v54, %v248_v53 }
  0x38   :  { %5011 = vmatprep.subr.bf16.mxu1 %v5010_v41  ;;  %v35_v41 = vld [vmem:[%s8364_s1 + $0x28] sm:$0xff]  ;;  %v80_v1 = vld [vmem:[%s8364_s1 + $0x190] sm:$0xff]  ;;  %v266_v6 = vld [vmem:[%s8364_s1 + $0x760] sm:$0xff] }
  0x39   :  { %v5086_v44 = vpack.c.bf16 %v44_v42, %v35_v41  ;;  %v275_v8 = vld [vmem:[%s8364_s1 + $0x7a8] sm:$0xff]  ;;  %v89_v13 = vld [vmem:[%s8364_s1 + $0x1d8] sm:$0xff]  ;;  %v98_v14 = vld [vmem:[%s8364_s1 + $0x220] sm:$0xff] }
  0x3a   :  { %4949 = vmatpush1.bf16.msra.mxu0 %v4948_v49  ;;  %v6441_v49 = vld [vmem:[%s8363_s0 + $0x48] sm:$0xff]  ;;  %v294_v15 = vld [vmem:[%s8364_s1 + $0x840] sm:$0xff]  ;;  %v5098_v16 = vpack.c.bf16 %v98_v14, %v89_v13  ;;  %v5044_v23 = vpack.c.bf16 %v275_v8, %v266_v6  ;;  %v116_v24 = vld [vmem:[%s8364_s1 + $0x2b0] sm:$0xff] }
  0x3b   :  { %5013 = vmatpush1.bf16.msra.mxu1 %v5012_v51  ;;  %4951 = vmatprep.subr.bf16.mxu0 %v4950_v52  ;;  %v53_v51 = vld [vmem:[%s8364_s1 + $0xb8] sm:$0xff]  ;;  %v5036_v52 = vpack.c.bf16 %v239_v37, %v230_v36  ;;  %v79_v9 = vld [vmem:[%s8364_s1 + $0x188] sm:$0xff]  ;;  %v312_v32 = vld [vmem:[%s8364_s1 + $0x8d0] sm:$0xff] }
  0x3c   :  { %5015 = vmatprep.subr.bf16.mxu1 %v5014_v56  ;;  %v62_v56 = vld [vmem:[%s8364_s1 + $0x100] sm:$0xff]  ;;  %v107_v21 = vld [vmem:[%s8364_s1 + $0x268] sm:$0xff]  ;;  %v125_v37 = vld [vmem:[%s8364_s1 + $0x2f8] sm:$0xff] }
  0x3d   :  { %v5090_v59 = vpack.c.bf16 %v62_v56, %v53_v51  ;;  %v303_v30 = vld [vmem:[%s8364_s1 + $0x888] sm:$0xff]  ;;  %v5102_v33 = vpack.c.bf16 %v116_v24, %v107_v21  ;;  %v302_v42 = vld [vmem:[%s8364_s1 + $0x880] sm:$0xff]  ;;  %v124_v51 = vld [vmem:[%s8364_s1 + $0x2f0] sm:$0xff] }
  0x3e   :  { %4953 = vmatpush1.bf16.msra.mxu0 %v4952_v62  ;;  %v276_v62 = vld [vmem:[%s8364_s1 + $0x7b0] sm:$0xff]  ;;  %v115_v36 = vld [vmem:[%s8364_s1 + $0x2a8] sm:$0xff]  ;;  %v5050_v41 = vpack.c.bf16 %v312_v32, %v303_v30  ;;  %v330_v46 = vld [vmem:[%s8364_s1 + $0x960] sm:$0xff] }
  0x3f   :  { %5017 = vmatpush1.bf16.msra.mxu1 %v5016_v63  ;;  %4955 = vmatprep.subr.bf16.mxu0 %v4954_v0  ;;  %v5092_v63 = vpack.c.bf16 %v61_v61, %v52_v60  ;;  %v71_v0 = vld [vmem:[%s8364_s1 + $0x148] sm:$0xff]  ;;  %v152_v54 = vld [vmem:[%s8364_s1 + $0x3d0] sm:$0xff]  ;;  %v338_v8 = vld [vmem:[%s8364_s1 + $0x9a0] sm:$0xff] }
  0x40   :  { %5019 = vmatprep.subr.bf16.mxu1 %v5018_v4  ;;  %v5094_v2 = vpack.c.bf16 %v80_v1, %v71_v0  ;;  %v70_v4 = vld [vmem:[%s8364_s1 + $0x140] sm:$0xff]  ;;  %v311_v43 = vld [vmem:[%s8364_s1 + $0x8c8] sm:$0xff]  ;;  %v160_v14 = vld [vmem:[%s8364_s1 + $0x410] sm:$0xff] }
  0x41   :  { %v143_v53 = vld [vmem:[%s8364_s1 + $0x388] sm:$0xff]  ;;  %v5052_v56 = vpack.c.bf16 %v311_v43, %v302_v42  ;;  %v142_v0 = vld [vmem:[%s8364_s1 + $0x380] sm:$0xff]  ;;  %v365_v24 = vld [vmem:[%s8364_s1 + $0xa78] sm:$0xff] }
  0x42   :  { %4957 = vmatpush1.bf16.msra.mxu0 %v4956_v10  ;;  %v5042_v10 = vpack.c.bf16 %v276_v62, %v267_v58  ;;  %v320_v58 = vld [vmem:[%s8364_s1 + $0x910] sm:$0xff]  ;;  %v339_v60 = vld [vmem:[%s8364_s1 + $0x9a8] sm:$0xff]  ;;  %v402_v43 = vld [vmem:[%s8364_s1 + $0xba0] sm:$0xff] }
  0x43   :  { %5021 = vmatpush1.bf16.msra.mxu1 %v5020_v11  ;;  %5087 = vmatprep.subr.bf16.mxu0 %v5086_v44  ;;  %v285_v11 = vld [vmem:[%s8364_s1 + $0x7f8] sm:$0xff]  ;;  %v348_v62 = vld [vmem:[%s8364_s1 + $0x9f0] sm:$0xff]  ;;  %v151_v1 = vld [vmem:[%s8364_s1 + $0x3c8] sm:$0xff] }
  0x44   :  { %5023 = vmatprep.subr.bf16.mxu1 %v5022_v12  ;;  %v5096_v12 = vpack.c.bf16 %v79_v9, %v70_v4  ;;  %v5046_v25 = vpack.c.bf16 %v294_v15, %v285_v11  ;;  %v321_v44 = vld [vmem:[%s8364_s1 + $0x918] sm:$0xff]  ;;  %v170_v4 = vld [vmem:[%s8364_s1 + $0x460] sm:$0xff]  ;;  %v5058_v6 = vpack.c.bf16 %v348_v62, %v339_v60  ;;  %v347_v9 = vld [vmem:[%s8364_s1 + $0x9e8] sm:$0xff]  ;;  %v5112_v11 = vpack.c.bf16 %v151_v1, %v142_v0 }
  0x45   :  { %527 = vmatmul.mubr.f32.vlgmr.msra.gmra.mrb[0].mxu0 %v6357_v17  ;;  %v169_v15 = vld [vmem:[%s8364_s1 + $0x458] sm:$0xff]  ;;  %v187_v32 = vld [vmem:[%s8364_s1 + $0x4e8] sm:$0xff]  ;;  %v242_v0 = vld [vmem:[%s8364_s1 + $0x6a0] sm:$0xff] }
  0x46   :  { %532 = vmatprep.mubr.f32.mxu0 %v6362_v19  ;;  %5089 = vmatpush1.bf16.msra.mxu0 %v5088_v50  ;;  %v223_v62 = vld [vmem:[%s8364_s1 + $0x608] sm:$0xff] }
  0x47   :  { %5025 = vmatpush1.bf16.msra.mxu1 %v5024_v18  ;;  %5091 = vmatprep.subr.bf16.mxu0 %v5090_v59  ;;  %v88_v18 = vld [vmem:[%s8364_s1 + $0x1d0] sm:$0xff]  ;;  %v329_v59 = vld [vmem:[%s8364_s1 + $0x958] sm:$0xff] }
  0x48   :  { %5027 = vmatprep.subr.bf16.mxu1 %v5026_v20  ;;  %v97_v20 = vld [vmem:[%s8364_s1 + $0x218] sm:$0xff] }
  0x49   :  { %533 = vmatmul.mubr.f32.gmra.mrb[2].mxu0 %v6381_v26  ;;  %v5100_v31 = vpack.c.bf16 %v97_v20, %v88_v18  ;;  %v188_v18 = vld [vmem:[%s8364_s1 + $0x4f0] sm:$0xff]  ;;  %v5060_v20 = vpack.c.bf16 %v347_v9, %v338_v8  ;;  %v438_v9 = vld [vmem:[%s8364_s1 + $0xcc0] sm:$0xff] }
  0x4a   :  { %538 = vmatprep.mubr.f32.mxu0 %v6386_v28  ;;  %5093 = vmatpush1.bf16.msra.mxu0 %v5092_v63  ;;  %v5110_v63 = vpack.c.bf16 %v152_v54, %v143_v53  ;;  %v392_v54 = vld [vmem:[%s8364_s1 + $0xb50] sm:$0xff] }
  0x4b   :  { %5029 = vmatpush1.bf16.msra.mxu1 %v5028_v27  ;;  %5095 = vmatprep.subr.bf16.mxu0 %v5094_v2  ;;  %v284_v27 = vld [vmem:[%s8364_s1 + $0x7f0] sm:$0xff]  ;;  %v161_v2 = vld [vmem:[%s8364_s1 + $0x418] sm:$0xff] }
  0x4c   :  { %5031 = vmatprep.subr.bf16.mxu1 %v5030_v29  ;;  %v293_v29 = vld [vmem:[%s8364_s1 + $0x838] sm:$0xff]  ;;  %v5114_v13 = vpack.c.bf16 %v170_v4, %v161_v2  ;;  %v410_v4 = vld [vmem:[%s8364_s1 + $0xbe0] sm:$0xff] }
  0x4d   :  { %539 = vmatmul.mubr.f32.gmra.mrb[4].mxu0 %v6405_v34  ;;  %v5048_v40 = vpack.c.bf16 %v293_v29, %v284_v27  ;;  %v5116_v27 = vpack.c.bf16 %v169_v15, %v160_v14  ;;  %v384_v29 = vld [vmem:[%s8364_s1 + $0xb10] sm:$0xff] }
  0x4e   :  { %544 = vmatprep.mubr.f32.mxu0 %v6416_v38  ;;  %5097 = vmatpush1.bf16.msra.mxu0 %v5096_v12  ;;  %v366_v12 = vld [vmem:[%s8364_s1 + $0xa80] sm:$0xff]  ;;  %v260_v14 = vld [vmem:[%s8364_s1 + $0x730] sm:$0xff] }
  0x4f   :  { %5033 = vmatpush1.bf16.msra.mxu1 %v5032_v35  ;;  %5099 = vmatprep.subr.bf16.mxu0 %v5098_v16  ;;  %v106_v35 = vld [vmem:[%s8364_s1 + $0x260] sm:$0xff]  ;;  %v179_v16 = vld [vmem:[%s8364_s1 + $0x4a8] sm:$0xff] }
  0x50   :  { %5035 = vmatprep.subr.bf16.mxu1 %v5034_v39  ;;  %v134_v39 = vld [vmem:[%s8364_s1 + $0x340] sm:$0xff]  ;;  %v5104_v45 = vpack.c.bf16 %v115_v36, %v106_v35  ;;  %v5118_v30 = vpack.c.bf16 %v188_v18, %v179_v16  ;;  %v428_v18 = vld [vmem:[%s8364_s1 + $0xc70] sm:$0xff] }
  0x51   :  { %545 = vmatmul.mubr.f32.gmra.mrb[6].mxu0 %v6441_v49  ;;  %v5106_v50 = vpack.c.bf16 %v134_v39, %v125_v37  ;;  %v206_v35 = vld [vmem:[%s8364_s1 + $0x580] sm:$0xff] }
  0x52   :  { %882 = vmatprep.mubr.f32.mxu0 %v6228_v22  ;;  %5101 = vmatpush1.bf16.msra.mxu0 %v5100_v31  ;;  %v178_v31 = vld [vmem:[%s8364_s1 + $0x4a0] sm:$0xff] }
  0x53   :  { %5037 = vmatpush1.bf16.msra.mxu1 %v5036_v52  ;;  %5103 = vmatprep.subr.bf16.mxu0 %v5102_v33  ;;  %v133_v52 = vld [vmem:[%s8364_s1 + $0x338] sm:$0xff]  ;;  %v374_v39 = vld [vmem:[%s8364_s1 + $0xac0] sm:$0xff]  ;;  %v5120_v42 = vpack.c.bf16 %v187_v32, %v178_v31 }
  0x54   :  { %5039 = vmatprep.subr.bf16.mxu1 %v5038_v57  ;;  %v5054_v57 = vpack.c.bf16 %v330_v46, %v321_v44  ;;  %v5108_v61 = vpack.c.bf16 %v133_v52, %v124_v51  ;;  %v197_v33 = vld [vmem:[%s8364_s1 + $0x538] sm:$0xff]  ;;  %v224_v51 = vld [vmem:[%s8364_s1 + $0x610] sm:$0xff]  ;;  %v278_v31 = vld [vmem:[%s8364_s1 + $0x7c0] sm:$0xff] }
  0x55   :  { %v5122_v44 = vpack.c.bf16 %v206_v35, %v197_v33  ;;  %v205_v46 = vld [vmem:[%s8364_s1 + $0x578] sm:$0xff]  ;;  %v446_v35 = vld [vmem:[%s8364_s1 + $0xd00] sm:$0xff] }
  0x56   :  { %5105 = vmatpush1.bf16.msra.mxu0 %v5104_v45  ;;  %v196_v45 = vld [vmem:[%s8364_s1 + $0x530] sm:$0xff] }
  0x57   :  { %5041 = vmatpush1.bf16.msra.mxu1 %v5040_v5  ;;  %5107 = vmatprep.subr.bf16.mxu0 %v5106_v50  ;;  %v5056_v5 = vpack.c.bf16 %v329_v59, %v320_v58  ;;  %v215_v50 = vld [vmem:[%s8364_s1 + $0x5c8] sm:$0xff]  ;;  %v5124_v58 = vpack.c.bf16 %v205_v46, %v196_v45  ;;  %v420_v59 = vld [vmem:[%s8364_s1 + $0xc30] sm:$0xff] }
  0x58   :  { %5043 = vmatprep.subr.bf16.mxu1 %v5042_v10  ;;  %v357_v10 = vld [vmem:[%s8364_s1 + $0xa38] sm:$0xff]  ;;  %v5126_v60 = vpack.c.bf16 %v224_v51, %v215_v50  ;;  %v296_v45 = vld [vmem:[%s8364_s1 + $0x850] sm:$0xff] }
  0x59   :  { %v5062_v21 = vpack.c.bf16 %v366_v12, %v357_v10  ;;  %v241_v12 = vld [vmem:[%s8364_s1 + $0x698] sm:$0xff]  ;;  %v36_v51 = vld [vmem:[%s8364_s1 + $0x30] sm:$0xff] }
  0x5a   :  { %5109 = vmatpush1.bf16.msra.mxu0 %v5108_v61  ;;  %v214_v61 = vld [vmem:[%s8364_s1 + $0x5c0] sm:$0xff] }
  0x5b   :  { %5045 = vmatpush1.bf16.msra.mxu1 %v5044_v23  ;;  %5111 = vmatprep.subr.bf16.mxu0 %v5110_v63  ;;  %v356_v23 = vld [vmem:[%s8364_s1 + $0xa30] sm:$0xff]  ;;  %v233_v63 = vld [vmem:[%s8364_s1 + $0x658] sm:$0xff]  ;;  %v5128_v8 = vpack.c.bf16 %v223_v62, %v214_v61  ;;  %v314_v61 = vld [vmem:[%s8364_s1 + $0x8e0] sm:$0xff] }
  0x5c   :  { %5047 = vmatprep.subr.bf16.mxu1 %v5046_v25  ;;  %v375_v25 = vld [vmem:[%s8364_s1 + $0xac8] sm:$0xff]  ;;  %v5064_v36 = vpack.c.bf16 %v365_v24, %v356_v23  ;;  %v5130_v10 = vpack.c.bf16 %v242_v0, %v233_v63  ;;  %v456_v24 = vld [vmem:[%s8364_s1 + $0xd50] sm:$0xff]  ;;  %v54_v0 = vld [vmem:[%s8364_s1 + $0xc0] sm:$0xff] }
  0x5d   :  { %v5066_v37 = vpack.c.bf16 %v384_v29, %v375_v25  ;;  %v259_v29 = vld [vmem:[%s8364_s1 + $0x728] sm:$0xff] }
  0x5e   :  { %5113 = vmatpush1.bf16.msra.mxu0 %v5112_v11  ;;  %v232_v11 = vld [vmem:[%s8364_s1 + $0x650] sm:$0xff] }
  0x5f   :  { %5049 = vmatpush1.bf16.msra.mxu1 %v5048_v40  ;;  %5115 = vmatprep.subr.bf16.mxu0 %v5114_v13  ;;  %v383_v40 = vld [vmem:[%s8364_s1 + $0xb08] sm:$0xff]  ;;  %v5132_v23 = vpack.c.bf16 %v241_v12, %v232_v11  ;;  %v332_v11 = vld [vmem:[%s8364_s1 + $0x970] sm:$0xff] }
  0x60   :  { %5051 = vmatprep.subr.bf16.mxu1 %v5050_v41  ;;  %v393_v41 = vld [vmem:[%s8364_s1 + $0xb58] sm:$0xff]  ;;  %v5068_v52 = vpack.c.bf16 %v383_v40, %v374_v39  ;;  %v251_v13 = vld [vmem:[%s8364_s1 + $0x6e8] sm:$0xff]  ;;  %v46_v40 = vld [vmem:[%s8364_s1 + $0x80] sm:$0xff] }
  0x61   :  { %v5070_v53 = vpack.c.bf16 %v402_v43, %v393_v41  ;;  %v5134_v25 = vpack.c.bf16 %v260_v14, %v251_v13  ;;  %v277_v43 = vld [vmem:[%s8364_s1 + $0x7b8] sm:$0xff]  ;;  %v72_v14 = vld [vmem:[%s8364_s1 + $0x150] sm:$0xff] }
  0x62   :  { %5117 = vmatpush1.bf16.msra.mxu0 %v5116_v27  ;;  %v250_v27 = vld [vmem:[%s8364_s1 + $0x6e0] sm:$0xff] }
  0x63   :  { %5053 = vmatpush1.bf16.msra.mxu1 %v5052_v56  ;;  %5119 = vmatprep.subr.bf16.mxu0 %v5118_v30  ;;  %v401_v56 = vld [vmem:[%s8364_s1 + $0xb98] sm:$0xff]  ;;  %v5136_v39 = vpack.c.bf16 %v259_v29, %v250_v27  ;;  %v90_v29 = vld [vmem:[%s8364_s1 + $0x1e0] sm:$0xff] }
  0x64   :  { %5055 = vmatprep.subr.bf16.mxu1 %v5054_v57  ;;  %v411_v57 = vld [vmem:[%s8364_s1 + $0xbe8] sm:$0xff]  ;;  %v5072_v1 = vpack.c.bf16 %v401_v56, %v392_v54  ;;  %v269_v30 = vld [vmem:[%s8364_s1 + $0x778] sm:$0xff]  ;;  %v64_v56 = vld [vmem:[%s8364_s1 + $0x110] sm:$0xff] }
  0x65   :  { %v5074_v2 = vpack.c.bf16 %v420_v59, %v411_v57  ;;  %v5138_v41 = vpack.c.bf16 %v278_v31, %v269_v30  ;;  %v295_v59 = vld [vmem:[%s8364_s1 + $0x848] sm:$0xff]  ;;  %v109_v31 = vld [vmem:[%s8364_s1 + $0x278] sm:$0xff] }
  0x66   :  { %705 = vmatmul.mubr.f32.vlgmr.msra.gmra.mrb[8].mxu1 %v6357_v17  ;;  %5121 = vmatpush1.bf16.msra.mxu0 %v5120_v42  ;;  %v268_v42 = vld [vmem:[%s8364_s1 + $0x770] sm:$0xff]  ;;  %v99_v30 = vld [vmem:[%s8364_s1 + $0x228] sm:$0xff] }
  0x67   :  { %5057 = vmatpush1.bf16.msra.mxu1 %v5056_v5  ;;  %710 = vmatprep.mubr.f32.mxu1 %v6362_v19  ;;  %v419_v5 = vld [vmem:[%s8364_s1 + $0xc28] sm:$0xff]  ;;  %v5140_v54 = vpack.c.bf16 %v277_v43, %v268_v42  ;;  %v108_v42 = vld [vmem:[%s8364_s1 + $0x270] sm:$0xff]  ;;  %v117_v43 = vld [vmem:[%s8364_s1 + $0x2b8] sm:$0xff] }
  0x68   :  { %5059 = vmatprep.subr.bf16.mxu1 %v5058_v6  ;;  %5123 = vmatprep.subr.bf16.mxu0 %v5122_v44  ;;  %v429_v6 = vld [vmem:[%s8364_s1 + $0xc78] sm:$0xff]  ;;  %v5076_v15 = vpack.c.bf16 %v419_v5, %v410_v4  ;;  %v287_v44 = vld [vmem:[%s8364_s1 + $0x808] sm:$0xff]  ;;  %v82_v5 = vld [vmem:[%s8364_s1 + $0x1a0] sm:$0xff] }
  0x69   :  { %v5078_v16 = vpack.c.bf16 %v438_v9, %v429_v6  ;;  %v5142_v57 = vpack.c.bf16 %v296_v45, %v287_v44  ;;  %v313_v9 = vld [vmem:[%s8364_s1 + $0x8d8] sm:$0xff]  ;;  %v127_v44 = vld [vmem:[%s8364_s1 + $0x308] sm:$0xff]  ;;  %v136_v45 = vld [vmem:[%s8364_s1 + $0x350] sm:$0xff] }
  0x6a   :  { %711 = vmatmul.mubr.f32.gmra.mrb[10].mxu1 %v6381_v26  ;;  %5125 = vmatpush1.bf16.msra.mxu0 %v5124_v58  ;;  %v286_v58 = vld [vmem:[%s8364_s1 + $0x800] sm:$0xff] }
  0x6b   :  { %5061 = vmatpush1.bf16.msra.mxu1 %v5060_v20  ;;  %716 = vmatprep.mubr.f32.mxu1 %v6386_v28  ;;  %v437_v20 = vld [vmem:[%s8364_s1 + $0xcb8] sm:$0xff]  ;;  %v5144_v4 = vpack.c.bf16 %v295_v59, %v286_v58 }
  0x6c   :  { %5063 = vmatprep.subr.bf16.mxu1 %v5062_v21  ;;  %5127 = vmatprep.subr.bf16.mxu0 %v5126_v60  ;;  %v447_v21 = vld [vmem:[%s8364_s1 + $0xd08] sm:$0xff]  ;;  %v5080_v32 = vpack.c.bf16 %v437_v20, %v428_v18  ;;  %v305_v60 = vld [vmem:[%s8364_s1 + $0x898] sm:$0xff]  ;;  %v100_v18 = vld [vmem:[%s8364_s1 + $0x230] sm:$0xff] }
  0x6d   :  { %v5082_v33 = vpack.c.bf16 %v456_v24, %v447_v21  ;;  %v5146_v6 = vpack.c.bf16 %v314_v61, %v305_v60  ;;  %v322_v21 = vld [vmem:[%s8364_s1 + $0x920] sm:$0xff] }
  0x6e   :  { %717 = vmatmul.mubr.f32.gmra.mrb[12].mxu1 %v6405_v34  ;;  %5129 = vmatpush1.bf16.msra.mxu0 %v5128_v8  ;;  %v304_v8 = vld [vmem:[%s8364_s1 + $0x890] sm:$0xff] }
  0x6f   :  { %5065 = vmatpush1.bf16.msra.mxu1 %v5064_v36  ;;  %722 = vmatprep.mubr.f32.mxu1 %v6416_v38  ;;  %v455_v36 = vld [vmem:[%s8364_s1 + $0xd48] sm:$0xff] }
  0x70   :  { %5067 = vmatprep.subr.bf16.mxu1 %v5066_v37  ;;  %5131 = vmatprep.subr.bf16.mxu0 %v5130_v10  ;;  %v37_v37 = vld [vmem:[%s8364_s1 + $0x38] sm:$0xff]  ;;  %v5084_v46 = vpack.c.bf16 %v455_v36, %v446_v35  ;;  %v323_v10 = vld [vmem:[%s8364_s1 + $0x928] sm:$0xff]  ;;  %v340_v36 = vld [vmem:[%s8364_s1 + $0x9b0] sm:$0xff] }
  0x71   :  { %v5182_v50 = vpack.c.bf16 %v46_v40, %v37_v37  ;;  %v5150_v20 = vpack.c.bf16 %v332_v11, %v323_v10  ;;  %v349_v37 = vld [vmem:[%s8364_s1 + $0x9f8] sm:$0xff]  ;;  %v359_v40 = vld [vmem:[%s8364_s1 + $0xa48] sm:$0xff] }
  0x72   :  { %723 = vmatmul.mubr.f32.gmra.mrb[14].mxu1 %v6441_v49  ;;  %5133 = vmatpush1.bf16.msra.mxu0 %v5132_v23  ;;  %v331_v23 = vld [vmem:[%s8364_s1 + $0x968] sm:$0xff] }
  0x73   :  { %5069 = vmatpush1.bf16.msra.mxu1 %v5068_v52  ;;  %793 = vmatprep.mubr.f32.mxu1 %v8368_v7  ;;  %v45_v52 = vld [vmem:[%s8364_s1 + $0x78] sm:$0xff] }
  0x74   :  { %5071 = vmatprep.subr.bf16.mxu1 %v5070_v53  ;;  %5135 = vmatprep.subr.bf16.mxu0 %v5134_v25  ;;  %v55_v53 = vld [vmem:[%s8364_s1 + $0xc8] sm:$0xff]  ;;  %v5184_v62 = vpack.c.bf16 %v45_v52, %v36_v51  ;;  %v341_v25 = vld [vmem:[%s8364_s1 + $0x9b8] sm:$0xff] }
  0x75   :  { %v5186_v63 = vpack.c.bf16 %v64_v56, %v55_v53 }
  0x76   :  { %5137 = vmatpush1.bf16.msra.mxu0 %v5136_v39  ;;  %v5196_v39 = vpack.c.bf16 %v99_v30, %v90_v29 }
  0x77   :  { %5073 = vmatpush1.bf16.msra.mxu1 %v5072_v1  ;;  %5139 = vmatprep.subr.bf16.mxu0 %v5138_v41  ;;  %v63_v1 = vld [vmem:[%s8364_s1 + $0x108] sm:$0xff] }
  0x78   :  { %5075 = vmatprep.subr.bf16.mxu1 %v5074_v2  ;;  %v73_v2 = vld [vmem:[%s8364_s1 + $0x158] sm:$0xff]  ;;  %v5188_v12 = vpack.c.bf16 %v63_v1, %v54_v0 }
  0x79   :  { %v5190_v13 = vpack.c.bf16 %v82_v5, %v73_v2 }
  0x7a   :  { %5141 = vmatpush1.bf16.msra.mxu0 %v5140_v54 }
  0x7b   :  { %5077 = vmatpush1.bf16.msra.mxu1 %v5076_v15  ;;  %5143 = vmatprep.subr.bf16.mxu0 %v5142_v57  ;;  %v5148_v15 = vpack.c.bf16 %v313_v9, %v304_v8 }
  0x7c   :  { %5079 = vmatprep.subr.bf16.mxu1 %v5078_v16  ;;  %v91_v16 = vld [vmem:[%s8364_s1 + $0x1e8] sm:$0xff] }
  0x7d   :  { %v5194_v27 = vpack.c.bf16 %v100_v18, %v91_v16 }
  0x7e   :  { %5145 = vmatpush1.bf16.msra.mxu0 %v5144_v4 }
  0x7f   :  { %5081 = vmatpush1.bf16.msra.mxu1 %v5080_v32  ;;  %5147 = vmatprep.subr.bf16.mxu0 %v5146_v6  ;;  %v118_v32 = vld [vmem:[%s8364_s1 + $0x2c0] sm:$0xff] }
  0x80   :  { %5083 = vmatprep.subr.bf16.mxu1 %v5082_v33  ;;  %v5152_v33 = vpack.c.bf16 %v331_v23, %v322_v21  ;;  %v5198_v41 = vpack.c.bf16 %v118_v32, %v109_v31 }
  0x82   :  { %5149 = vmatpush1.bf16.msra.mxu0 %v5148_v15 }
  0x83   :  { %5085 = vmatpush1.bf16.msra.mxu1 %v5084_v46  ;;  %5151 = vmatprep.subr.bf16.mxu0 %v5150_v20  ;;  %v5156_v46 = vpack.c.bf16 %v349_v37, %v340_v36 }
  0x84   :  { %5183 = vmatprep.subr.bf16.mxu1 %v5182_v50 }
  0x85   :  { %883 = vmatmul.mubr.f32.vlgmr.msra.gmra.mrb[8].mxu0 %v6357_v17 }
  0x86   :  { %794 = vmatmul.mubr.f32.vlgmr.msra.gmra.mrb[8].mxu1 %v6149_v48  ;;  %v81_v48 = vld [vmem:[%s8364_s1 + $0x198] sm:$0xff]  ;;  %5153 = vmatpush1.bf16.msra.mxu0 %v5152_v33 }
  0x87   :  { %799 = vmatprep.mubr.f32.mxu1 %v8368_v7  ;;  %5185 = vmatpush1.bf16.msra.mxu1 %v5184_v62  ;;  %v5192_v24 = vpack.c.bf16 %v81_v48, %v72_v14 }
  0x88   :  { %5187 = vmatprep.subr.bf16.mxu1 %v5186_v63  ;;  %888 = vmatprep.mubr.f32.mxu0 %v6362_v19 }
  0x8a   :  { %800 = vmatmul.mubr.f32.gmra.mrb[10].mxu1 %v6282_v47  ;;  %v350_v47 = vld [vmem:[%s8364_s1 + $0xa00] sm:$0xff] }
  0x8b   :  { %805 = vmatprep.mubr.f32.mxu1 %v8368_v7  ;;  %5189 = vmatpush1.bf16.msra.mxu1 %v5188_v12  ;;  %v5154_v35 = vpack.c.bf16 %v350_v47, %v341_v25 }
  0x8c   :  { %5191 = vmatprep.subr.bf16.mxu1 %v5190_v13 }
  0x8e   :  { %806 = vmatmul.mubr.f32.gmra.mrb[12].mxu1 %v6297_v55  ;;  %v368_v55 = vld [vmem:[%s8364_s1 + $0xa90] sm:$0xff] }
  0x8f   :  { %811 = vmatprep.mubr.f32.mxu1 %v8368_v7  ;;  %5193 = vmatpush1.bf16.msra.mxu1 %v5192_v24 }
  0x90   :  { %5195 = vmatprep.subr.bf16.mxu1 %v5194_v27 }
  0x91   :  { %9 = vsyncpa [#allocation3], 0  ;;  %5155 = vmatprep.subr.bf16.mxu0 %v5154_v35  ;;  %v5158_v50 = vpack.c.bf16 %v368_v55, %v359_v40  ;;  %v358_v17 = vld [vmem:[%s8364_s1 + $0xa40] sm:$0xff]  ;;  %v367_v51 = vld [vmem:[%s8364_s1 + $0xa88] sm:$0xff]  ;;  %v5200_v52 = vpack.c.bf16 %v117_v43, %v108_v42  ;;  %v5202_v53 = vpack.c.bf16 %v136_v45, %v127_v44  ;;  %889 = vmatmul.mubr.f32.gmra.mrb[10].mxu0 %v6381_v26  ;;  %vm1351_vm0 = vcmask 523264  }
  0x92   :  { %812 = vmatmul.mubr.f32.gmra.mrb[14].mxu1 %v6325_v3  ;;  %v377_v19 = vld [vmem:[%s8364_s1 + $0xad8] sm:$0xff]  ;;  %v386_v3 = vld [vmem:[%s8364_s1 + $0xb20] sm:$0xff]  ;;  %v135_v56 = vld [vmem:[%s8364_s1 + $0x348] sm:$0xff]  ;;  %5157 = vmatpush1.bf16.msra.mxu0 %v5156_v46  ;;  %v5160_v58 = vpack.c.bf16 %v367_v51, %v358_v17  ;;  %vm1538_vm3 = vcmask 130048  }
  0x93   :  { %5197 = vmatpush1.bf16.msra.mxu1 %v5196_v39  ;;  %1060 = vmatprep.mubr.f32.mxu1 %v6228_v22  ;;  %v126_v54 = vld [vmem:[%s8364_s1 + $0x300] sm:$0xff]  ;;  %v145_v22 = vld [vmem:[%s8364_s1 + $0x398] sm:$0xff]  ;;  %v5162_v59 = vpack.c.bf16 %v386_v3, %v377_v19  ;;  %v376_v60 = vld [vmem:[%s8364_s1 + $0xad0] sm:$0xff] }
  0x94   :  { %5199 = vmatprep.subr.bf16.mxu1 %v5198_v41  ;;  %v154_v57 = vld [vmem:[%s8364_s1 + $0x3e0] sm:$0xff]  ;;  %894 = vmatprep.mubr.f32.mxu0 %v6386_v28  ;;  %v385_v26 = vld [vmem:[%s8364_s1 + $0xb18] sm:$0xff]  ;;  %v5204_v61 = vpack.c.bf16 %v135_v56, %v126_v54  ;;  %v395_v62 = vld [vmem:[%s8364_s1 + $0xb68] sm:$0xff] }
  0x95   :  { %5159 = vmatprep.subr.bf16.mxu0 %v5158_v50  ;;  %v404_v28 = vld [vmem:[%s8364_s1 + $0xbb0] sm:$0xff]  ;;  %v5206_v63 = vpack.c.bf16 %v154_v57, %v145_v22  ;;  %v153_v1 = vld [vmem:[%s8364_s1 + $0x3d8] sm:$0xff]  ;;  %895 = vmatmul.mubr.f32.gmra.mrb[12].mxu0 %v6405_v34  ;;  %v163_v2 = vld [vmem:[%s8364_s1 + $0x428] sm:$0xff]  ;;  %v5164_v5 = vpack.c.bf16 %v385_v26, %v376_v60 }
  0x96   :  { %v144_v0 = vld [vmem:[%s8364_s1 + $0x390] sm:$0xff]  ;;  %5161 = vmatpush1.bf16.msra.mxu0 %v5160_v58  ;;  %900 = vmatprep.mubr.f32.mxu0 %v6416_v38  ;;  %v5166_v6 = vpack.c.bf16 %v404_v28, %v395_v62  ;;  %v394_v8 = vld [vmem:[%s8364_s1 + $0xb60] sm:$0xff]  ;;  %v403_v34 = vld [vmem:[%s8364_s1 + $0xba8] sm:$0xff] }
  0x97   :  { %5201 = vmatpush1.bf16.msra.mxu1 %v5200_v52  ;;  %v172_v4 = vld [vmem:[%s8364_s1 + $0x470] sm:$0xff]  ;;  %5163 = vmatprep.subr.bf16.mxu0 %v5162_v59  ;;  %v5208_v9 = vpack.c.bf16 %v153_v1, %v144_v0  ;;  %v413_v10 = vld [vmem:[%s8364_s1 + $0xbf8] sm:$0xff]  ;;  %v422_v38 = vld [vmem:[%s8364_s1 + $0xc40] sm:$0xff]  ;;  %v5168_v15 = vpack.c.bf16 %v403_v34, %v394_v8 }
  0x98   :  { %5203 = vmatprep.subr.bf16.mxu1 %v5202_v53  ;;  %v5210_v11 = vpack.c.bf16 %v172_v4, %v163_v2  ;;  %v162_v12 = vld [vmem:[%s8364_s1 + $0x420] sm:$0xff]  ;;  %v171_v13 = vld [vmem:[%s8364_s1 + $0x468] sm:$0xff]  ;;  %v181_v14 = vld [vmem:[%s8364_s1 + $0x4b8] sm:$0xff]  ;;  %v5170_v16 = vpack.c.bf16 %v422_v38, %v413_v10 }
  0x99   :  { %901 = vmatmul.mubr.f32.gmra.mrb[14].mxu0 %v6441_v49  ;;  %v190_v48 = vld [vmem:[%s8364_s1 + $0x500] sm:$0xff]  ;;  %v412_v18 = vld [vmem:[%s8364_s1 + $0xbf0] sm:$0xff]  ;;  %v421_v49 = vld [vmem:[%s8364_s1 + $0xc38] sm:$0xff]  ;;  %v5212_v20 = vpack.c.bf16 %v171_v13, %v162_v12 }
  0x9a   :  { %5165 = vmatpush1.bf16.msra.mxu0 %v5164_v5  ;;  %971 = vmatprep.mubr.f32.mxu0 %v8368_v7  ;;  %v431_v21 = vld [vmem:[%s8364_s1 + $0xc88] sm:$0xff]  ;;  %v440_v23 = vld [vmem:[%s8364_s1 + $0xcd0] sm:$0xff]  ;;  %v5214_v24 = vpack.c.bf16 %v190_v48, %v181_v14  ;;  %v189_v47 = vld [vmem:[%s8364_s1 + $0x4f8] sm:$0xff]  ;;  %v5172_v30 = vpack.c.bf16 %v421_v49, %v412_v18 }
  0x9b   :  { %5205 = vmatpush1.bf16.msra.mxu1 %v5204_v61  ;;  %5167 = vmatprep.subr.bf16.mxu0 %v5166_v6  ;;  %v180_v25 = vld [vmem:[%s8364_s1 + $0x4b0] sm:$0xff]  ;;  %v199_v27 = vld [vmem:[%s8364_s1 + $0x548] sm:$0xff]  ;;  %v5174_v31 = vpack.c.bf16 %v440_v23, %v431_v21  ;;  %v430_v32 = vld [vmem:[%s8364_s1 + $0xc80] sm:$0xff] }
  0x9c   :  { %5207 = vmatprep.subr.bf16.mxu1 %v5206_v63  ;;  %v208_v29 = vld [vmem:[%s8364_s1 + $0x590] sm:$0xff]  ;;  %v439_v33 = vld [vmem:[%s8364_s1 + $0xcc8] sm:$0xff]  ;;  %v5216_v35 = vpack.c.bf16 %v189_v47, %v180_v25  ;;  %v449_v36 = vld [vmem:[%s8364_s1 + $0xd18] sm:$0xff] }
  0x9d   :  { %v458_v37 = vld [vmem:[%s8364_s1 + $0xd60] sm:$0xff]  ;;  %v5218_v39 = vpack.c.bf16 %v208_v29, %v199_v27  ;;  %v207_v55 = vld [vmem:[%s8364_s1 + $0x588] sm:$0xff]  ;;  %v217_v41 = vld [vmem:[%s8364_s1 + $0x5d8] sm:$0xff]  ;;  %v5176_v43 = vpack.c.bf16 %v439_v33, %v430_v32 }
  0x9e   :  { %5169 = vmatpush1.bf16.msra.mxu0 %v5168_v15  ;;  %v198_v40 = vld [vmem:[%s8364_s1 + $0x540] sm:$0xff]  ;;  %v5178_v44 = vpack.c.bf16 %v458_v37, %v449_v36  ;;  %v448_v45 = vld [vmem:[%s8364_s1 + $0xd10] sm:$0xff]  ;;  %v457_v46 = vld [vmem:[%s8364_s1 + $0xd58] sm:$0xff] }
  0x9f   :  { %5209 = vmatpush1.bf16.msra.mxu1 %v5208_v9  ;;  %5171 = vmatprep.subr.bf16.mxu0 %v5170_v16  ;;  %v226_v42 = vld [vmem:[%s8364_s1 + $0x620] sm:$0xff]  ;;  %v5220_v50 = vpack.c.bf16 %v207_v55, %v198_v40  ;;  %v191_v51 = vld [vmem:[%s8364_s1 + $0x508] sm:$0xff]  ;;  %v216_v19 = vld [vmem:[%s8364_s1 + $0x5d0] sm:$0xff]  ;;  %v5180_v56 = vpack.c.bf16 %v457_v46, %v448_v45 }
  0xa0   :  { %5211 = vmatprep.subr.bf16.mxu1 %v5210_v11  ;;  %v182_v17 = vld [vmem:[%s8364_s1 + $0x4c0] sm:$0xff]  ;;  %v5222_v52 = vpack.c.bf16 %v226_v42, %v217_v41  ;;  %v225_v3 = vld [vmem:[%s8364_s1 + $0x618] sm:$0xff]  ;;  %v235_v53 = vld [vmem:[%s8364_s1 + $0x668] sm:$0xff] }
  0xa1   :  { %v244_v54 = vld [vmem:[%s8364_s1 + $0x6b0] sm:$0xff]  ;;  %v5278_v22 = vpack.c.bf16 %v191_v51, %v182_v17  ;;  %v38_v57 = vld [vmem:[%s8364_s1 + $0x40] sm:$0xff]  ;;  %v47_v58 = vld [vmem:[%s8364_s1 + $0x88] sm:$0xff]  ;;  %v5224_v59 = vpack.c.bf16 %v225_v3, %v216_v19 }
  0xa2   :  { %5173 = vmatpush1.bf16.msra.mxu0 %v5172_v30  ;;  %v200_v60 = vld [vmem:[%s8364_s1 + $0x550] sm:$0xff]  ;;  %v209_v26 = vld [vmem:[%s8364_s1 + $0x598] sm:$0xff]  ;;  %v5226_v61 = vpack.c.bf16 %v244_v54, %v235_v53  ;;  %v234_v62 = vld [vmem:[%s8364_s1 + $0x660] sm:$0xff]  ;;  %v5280_v1 = vpack.c.bf16 %v47_v58, %v38_v57 }
  0xa3   :  { %5213 = vmatpush1.bf16.msra.mxu1 %v5212_v20  ;;  %5175 = vmatprep.subr.bf16.mxu0 %v5174_v31  ;;  %v243_v28 = vld [vmem:[%s8364_s1 + $0x6a8] sm:$0xff]  ;;  %v253_v63 = vld [vmem:[%s8364_s1 + $0x6f8] sm:$0xff]  ;;  %v262_v0 = vld [vmem:[%s8364_s1 + $0x740] sm:$0xff]  ;;  %v5282_v2 = vpack.c.bf16 %v209_v26, %v200_v60 }
  0xa4   :  { %5215 = vmatprep.subr.bf16.mxu1 %v5214_v24  ;;  %v56_v4 = vld [vmem:[%s8364_s1 + $0xd0] sm:$0xff]  ;;  %v65_v5 = vld [vmem:[%s8364_s1 + $0x118] sm:$0xff]  ;;  %v5228_v6 = vpack.c.bf16 %v243_v28, %v234_v62  ;;  %v218_v8 = vld [vmem:[%s8364_s1 + $0x5e0] sm:$0xff]  ;;  %v5230_v9 = vpack.c.bf16 %v262_v0, %v253_v63 }
  0xa5   :  { %v227_v34 = vld [vmem:[%s8364_s1 + $0x628] sm:$0xff]  ;;  %v252_v10 = vld [vmem:[%s8364_s1 + $0x6f0] sm:$0xff]  ;;  %v261_v38 = vld [vmem:[%s8364_s1 + $0x738] sm:$0xff]  ;;  %v5284_v14 = vpack.c.bf16 %v65_v5, %v56_v4 }
  0xa6   :  { %5177 = vmatpush1.bf16.msra.mxu0 %v5176_v43  ;;  %v7072_v11 = vld [vmem:[%s8363_s0 + $0x10] sm:$0xff]  ;;  %v271_v12 = vld [vmem:[%s8364_s1 + $0x788] sm:$0xff]  ;;  %v5286_v48 = vpack.c.bf16 %v227_v34, %v218_v8  ;;  %v74_v15 = vld [vmem:[%s8364_s1 + $0x160] sm:$0xff]  ;;  %v5232_v18 = vpack.c.bf16 %v261_v38, %v252_v10 }
  0xa7   :  { %5217 = vmatpush1.bf16.msra.mxu1 %v5216_v35  ;;  %5179 = vmatprep.subr.bf16.mxu0 %v5178_v44  ;;  %v280_v13 = vld [vmem:[%s8364_s1 + $0x7d0] sm:$0xff]  ;;  %v83_v16 = vld [vmem:[%s8364_s1 + $0x1a8] sm:$0xff]  ;;  %v245_v20 = vld [vmem:[%s8364_s1 + $0x6b8] sm:$0xff] }
  0xa8   :  { %5219 = vmatprep.subr.bf16.mxu1 %v5218_v39  ;;  %v236_v49 = vld [vmem:[%s8364_s1 + $0x670] sm:$0xff]  ;;  %v5234_v21 = vpack.c.bf16 %v280_v13, %v271_v12  ;;  %v270_v23 = vld [vmem:[%s8364_s1 + $0x780] sm:$0xff]  ;;  %v279_v24 = vld [vmem:[%s8364_s1 + $0x7c8] sm:$0xff]  ;;  %v5288_v29 = vpack.c.bf16 %v83_v16, %v74_v15 }
  0xa9   :  { %v7103_v25 = vld [vmem:[%s8363_s0 + $0x28] sm:$0xff]  ;;  %v289_v47 = vld [vmem:[%s8364_s1 + $0x818] sm:$0xff]  ;;  %v298_v27 = vld [vmem:[%s8364_s1 + $0x860] sm:$0xff]  ;;  %v5290_v30 = vpack.c.bf16 %v245_v20, %v236_v49  ;;  %v5236_v33 = vpack.c.bf16 %v279_v24, %v270_v23 }
  0xaa   :  { %5181 = vmatpush1.bf16.msra.mxu0 %v5180_v56  ;;  %v92_v31 = vld [vmem:[%s8364_s1 + $0x1f0] sm:$0xff]  ;;  %v101_v32 = vld [vmem:[%s8364_s1 + $0x238] sm:$0xff]  ;;  %v254_v35 = vld [vmem:[%s8364_s1 + $0x700] sm:$0xff]  ;;  %v5238_v37 = vpack.c.bf16 %v298_v27, %v289_v47 }
  0xab   :  { %5221 = vmatpush1.bf16.msra.mxu1 %v5220_v50  ;;  %5279 = vmatprep.subr.bf16.mxu0 %v5278_v22  ;;  %v263_v36 = vld [vmem:[%s8364_s1 + $0x748] sm:$0xff]  ;;  %v288_v39 = vld [vmem:[%s8364_s1 + $0x810] sm:$0xff]  ;;  %v297_v40 = vld [vmem:[%s8364_s1 + $0x858] sm:$0xff]  ;;  %v5292_v43 = vpack.c.bf16 %v101_v32, %v92_v31 }
  0xac   :  { %5223 = vmatprep.subr.bf16.mxu1 %v5222_v52  ;;  %v7134_v55 = vld [vmem:[%s8363_s0 + $0x40] sm:$0xff]  ;;  %v307_v41 = vld [vmem:[%s8364_s1 + $0x8a8] sm:$0xff]  ;;  %v316_v42 = vld [vmem:[%s8364_s1 + $0x8f0] sm:$0xff]  ;;  %v5294_v44 = vpack.c.bf16 %v263_v36, %v254_v35  ;;  %v5240_v50 = vpack.c.bf16 %v297_v40, %v288_v39 }
  0xad   :  { %972 = vmatmul.mubr.f32.vlgmr.msra.gmra.mrb[8].mxu0 %v7072_v11  ;;  %v110_v45 = vld [vmem:[%s8364_s1 + $0x280] sm:$0xff]  ;;  %v119_v46 = vld [vmem:[%s8364_s1 + $0x2c8] sm:$0xff]  ;;  %v272_v17 = vld [vmem:[%s8364_s1 + $0x790] sm:$0xff]  ;;  %v5242_v52 = vpack.c.bf16 %v316_v42, %v307_v41 }
  0xae   :  { %5281 = vmatpush3.bf16.msra.mxu0 %v5280_v1  ;;  %977 = vmatprep.mubr.f32.mxu0 %v8368_v7  ;;  %v281_v51 = vld [vmem:[%s8364_s1 + $0x7d8] sm:$0xff]  ;;  %v306_v19 = vld [vmem:[%s8364_s1 + $0x8a0] sm:$0xff]  ;;  %v315_v3 = vld [vmem:[%s8364_s1 + $0x8e8] sm:$0xff]  ;;  %v5296_v22 = vpack.c.bf16 %v119_v46, %v110_v45 }
  0xaf   :  { %5225 = vmatpush1.bf16.msra.mxu1 %v5224_v59  ;;  %5283 = vmatprep.subr.bf16.mxu0 %v5282_v2  ;;  %v7165_v53 = vld [vmem:[%s8363_s0 + $0x58] sm:$0xff]  ;;  %v334_v56 = vld [vmem:[%s8364_s1 + $0x980] sm:$0xff]  ;;  %v5855_v57 = vld [vmem:[%s8363_s0 + $0x8] sm:$0xff]  ;;  %v5298_v58 = vpack.c.bf16 %v281_v51, %v272_v17  ;;  %v5244_v26 = vpack.c.bf16 %v315_v3, %v306_v19 }
  0xb0   :  { %5227 = vmatprep.subr.bf16.mxu1 %v5226_v61  ;;  %v325_v54 = vld [vmem:[%s8364_s1 + $0x938] sm:$0xff]  ;;  %v128_v59 = vld [vmem:[%s8364_s1 + $0x310] sm:$0xff]  ;;  %v290_v61 = vld [vmem:[%s8364_s1 + $0x820] sm:$0xff] }
  0xb1   :  { %978 = vmatmul.mubr.f32.gmra.mrb[10].mxu0 %v7103_v25  ;;  %v137_v60 = vld [vmem:[%s8364_s1 + $0x358] sm:$0xff]  ;;  %v299_v62 = vld [vmem:[%s8364_s1 + $0x868] sm:$0xff]  ;;  %v5246_v28 = vpack.c.bf16 %v334_v56, %v325_v54  ;;  %v324_v63 = vld [vmem:[%s8364_s1 + $0x930] sm:$0xff] }
  0xb2   :  { %5285 = vmatpush3.bf16.msra.mxu0 %v5284_v14  ;;  %983 = vmatprep.mubr.f32.mxu0 %v8368_v7  ;;  %v333_v0 = vld [vmem:[%s8364_s1 + $0x978] sm:$0xff]  ;;  %v343_v1 = vld [vmem:[%s8364_s1 + $0x9c8] sm:$0xff]  ;;  %v352_v2 = vld [vmem:[%s8364_s1 + $0xa10] sm:$0xff]  ;;  %v5300_v4 = vpack.c.bf16 %v137_v60, %v128_v59  ;;  %v5302_v5 = vpack.c.bf16 %v299_v62, %v290_v61 }
  0xb3   :  { %5229 = vmatpush1.bf16.msra.mxu1 %v5228_v6  ;;  %5287 = vmatprep.subr.bf16.mxu0 %v5286_v48  ;;  %v146_v6 = vld [vmem:[%s8364_s1 + $0x3a0] sm:$0xff]  ;;  %v155_v8 = vld [vmem:[%s8364_s1 + $0x3e8] sm:$0xff]  ;;  %v5248_v34 = vpack.c.bf16 %v333_v0, %v324_v63  ;;  %v317_v10 = vld [vmem:[%s8364_s1 + $0x8f8] sm:$0xff]  ;;  %v5250_v38 = vpack.c.bf16 %v352_v2, %v343_v1 }
  0xb4   :  { %5231 = vmatprep.subr.bf16.mxu1 %v5230_v9  ;;  %v308_v9 = vld [vmem:[%s8364_s1 + $0x8b0] sm:$0xff]  ;;  %v342_v12 = vld [vmem:[%s8364_s1 + $0x9c0] sm:$0xff]  ;;  %v351_v13 = vld [vmem:[%s8364_s1 + $0xa08] sm:$0xff]  ;;  %v5304_v15 = vpack.c.bf16 %v155_v8, %v146_v6 }
  0xb5   :  { %984 = vmatmul.mubr.f32.gmra.mrb[12].mxu0 %v7134_v55  ;;  %v361_v14 = vld [vmem:[%s8364_s1 + $0xa58] sm:$0xff]  ;;  %v370_v48 = vld [vmem:[%s8364_s1 + $0xaa0] sm:$0xff]  ;;  %v164_v49 = vld [vmem:[%s8364_s1 + $0x430] sm:$0xff] }
  0xb6   :  { %5289 = vmatpush3.bf16.msra.mxu0 %v5288_v29  ;;  %989 = vmatprep.mubr.f32.mxu0 %v8368_v7  ;;  %v5856_v16 = vld [vmem:[%s8363_s0] sm:$0xff]  ;;  %v173_v20 = vld [vmem:[%s8364_s1 + $0x478] sm:$0xff]  ;;  %v5254_v24 = vpack.c.bf16 %v370_v48, %v361_v14  ;;  %v360_v47 = vld [vmem:[%s8364_s1 + $0xa50] sm:$0xff] }
  0xb7   :  { %5233 = vmatpush1.bf16.msra.mxu1 %v5232_v18  ;;  %5291 = vmatprep.subr.bf16.mxu0 %v5290_v30  ;;  %v5306_v18 = vpack.c.bf16 %v317_v10, %v308_v9  ;;  %v5857_v23 = vld [vmem:[%s8363_s0 + $0x20] sm:$0xff]  ;;  %v369_v27 = vld [vmem:[%s8364_s1 + $0xa98] sm:$0xff]  ;;  %v379_v29 = vld [vmem:[%s8364_s1 + $0xae8] sm:$0xff]  ;;  %v5308_v31 = vpack.c.bf16 %v173_v20, %v164_v49 }
  0xb8   :  { %5235 = vmatprep.subr.bf16.mxu1 %v5234_v21  ;;  %v5252_v21 = vpack.c.bf16 %v351_v13, %v342_v12  ;;  %v388_v30 = vld [vmem:[%s8364_s1 + $0xb30] sm:$0xff]  ;;  %v5858_v32 = vld [vmem:[%s8363_s0 + $0x18] sm:$0xff]  ;;  %v387_v39 = vld [vmem:[%s8364_s1 + $0xb28] sm:$0xff] }
  0xb9   :  { %990 = vmatmul.mubr.f32.gmra.mrb[14].mxu0 %v7165_v53  ;;  %v5859_v35 = vld [vmem:[%s8363_s0 + $0x38] sm:$0xff]  ;;  %v5258_v36 = vpack.c.bf16 %v388_v30, %v379_v29  ;;  %v406_v41 = vld [vmem:[%s8364_s1 + $0xbc0] sm:$0xff]  ;;  %v5860_v42 = vld [vmem:[%s8363_s0 + $0x30] sm:$0xff] }
  0xba   :  { %5293 = vmatpush3.bf16.msra.mxu0 %v5292_v43  ;;  %1238 = vmatprep.mubr.f32.mxu0 %v5855_v57  ;;  %v397_v40 = vld [vmem:[%s8364_s1 + $0xb78] sm:$0xff]  ;;  %v396_v46 = vld [vmem:[%s8364_s1 + $0xb70] sm:$0xff]  ;;  %v415_v17 = vld [vmem:[%s8364_s1 + $0xc08] sm:$0xff] }
  0xbb   :  { %5237 = vmatpush1.bf16.msra.mxu1 %v5236_v33  ;;  %5295 = vmatprep.subr.bf16.mxu0 %v5294_v44  ;;  %v5256_v33 = vpack.c.bf16 %v369_v27, %v360_v47  ;;  %v5861_v44 = vld [vmem:[%s8363_s0 + $0x50] sm:$0xff]  ;;  %v5262_v45 = vpack.c.bf16 %v406_v41, %v397_v40  ;;  %v414_v54 = vld [vmem:[%s8364_s1 + $0xc00] sm:$0xff]  ;;  %v423_v56 = vld [vmem:[%s8364_s1 + $0xc48] sm:$0xff] }
  0xbc   :  { %5239 = vmatprep.subr.bf16.mxu1 %v5238_v37  ;;  %v378_v37 = vld [vmem:[%s8364_s1 + $0xae0] sm:$0xff]  ;;  %v424_v51 = vld [vmem:[%s8364_s1 + $0xc50] sm:$0xff]  ;;  %v451_v61 = vld [vmem:[%s8364_s1 + $0xd28] sm:$0xff] }
  0xbd   :  { %v5260_v43 = vpack.c.bf16 %v387_v39, %v378_v37  ;;  %v5266_v3 = vpack.c.bf16 %v424_v51, %v415_v17  ;;  %v442_v57 = vld [vmem:[%s8364_s1 + $0xce0] sm:$0xff]  ;;  %v432_v60 = vld [vmem:[%s8364_s1 + $0xc90] sm:$0xff]  ;;  %v459_v1 = vld [vmem:[%s8364_s1 + $0xd68] sm:$0xff] }
  0xbe   :  { %5297 = vmatpush3.bf16.msra.mxu0 %v5296_v22  ;;  %v433_v22 = vld [vmem:[%s8364_s1 + $0xc98] sm:$0xff]  ;;  %v460_v62 = vld [vmem:[%s8364_s1 + $0xd70] sm:$0xff]  ;;  %v450_v0 = vld [vmem:[%s8364_s1 + $0xd20] sm:$0xff] }
  0xbf   :  { %5241 = vmatpush1.bf16.msra.mxu1 %v5240_v50  ;;  %5299 = vmatprep.subr.bf16.mxu0 %v5298_v58  ;;  %v405_v50 = vld [vmem:[%s8364_s1 + $0xbb8] sm:$0xff]  ;;  %v5268_v58 = vpack.c.bf16 %v423_v56, %v414_v54  ;;  %v5270_v59 = vpack.c.bf16 %v442_v57, %v433_v22  ;;  %v5274_v63 = vpack.c.bf16 %v460_v62, %v451_v61  ;;  %v326_v2 = vld [vmem:[%s8364_s1 + $0x940] sm:$0xff]  ;;  %v344_v8 = vld [vmem:[%s8364_s1 + $0x9d0] sm:$0xff] }
  0xc0   :  { %5243 = vmatprep.subr.bf16.mxu1 %v5242_v52  ;;  %v5862_v52 = vld [vmem:[%s8363_s0 + $0x48] sm:$0xff]  ;;  %v5264_v19 = vpack.c.bf16 %v405_v50, %v396_v46  ;;  %v362_v10 = vld [vmem:[%s8364_s1 + $0xa60] sm:$0xff]  ;;  %v380_v13 = vld [vmem:[%s8364_s1 + $0xaf0] sm:$0xff] }
  0xc1   :  { %v389_v14 = vld [vmem:[%s8364_s1 + $0xb38] sm:$0xff]  ;;  %v416_v49 = vld [vmem:[%s8364_s1 + $0xc10] sm:$0xff]  ;;  %vm7405_vm1 = vmpackc.low %vm1351_vm0, %vm1351_vm0 }
  0xc2   :  { %5301 = vmatpush3.bf16.msra.mxu0 %v5300_v4  ;;  %v335_v4 = vld [vmem:[%s8364_s1 + $0x988] sm:$0xff]  ;;  %v5322_v48 = vpack.c.bf16 %v389_v14, %v380_v13  ;;  %v425_v20 = vld [vmem:[%s8364_s1 + $0xc58] sm:$0xff]  ;;  %v452_v29 = vld [vmem:[%s8364_s1 + $0xd30] sm:$0xff] }
  0xc3   :  { %5245 = vmatpush1.bf16.msra.mxu1 %v5244_v26  ;;  %5303 = vmatprep.subr.bf16.mxu0 %v5302_v5  ;;  %v441_v26 = vld [vmem:[%s8364_s1 + $0xcd8] sm:$0xff]  ;;  %v5276_v5 = vpack.c.bf16 %v459_v1, %v450_v0  ;;  %v5310_v6 = vpack.c.bf16 %v335_v4, %v326_v2 }
  0xc4   :  { %5247 = vmatprep.subr.bf16.mxu1 %v5246_v28  ;;  %v5272_v28 = vpack.c.bf16 %v441_v26, %v432_v60 }
  0xc6   :  { %1061 = vmatmul.mubr.f32.vlgmr.msra.gmra.mrb[16].mxu1 %v5856_v16  ;;  %5305 = vmatpush3.bf16.msra.mxu0 %v5304_v15  ;;  %v398_v15 = vld [vmem:[%s8364_s1 + $0xb80] sm:$0xff] }
  0xc7   :  { %5249 = vmatpush1.bf16.msra.mxu1 %v5248_v34  ;;  %1066 = vmatprep.mubr.f32.mxu1 %v5857_v23  ;;  %v353_v34 = vld [vmem:[%s8364_s1 + $0xa18] sm:$0xff] }
  0xc8   :  { %5251 = vmatprep.subr.bf16.mxu1 %v5250_v38  ;;  %5307 = vmatprep.subr.bf16.mxu0 %v5306_v18  ;;  %v5314_v9 = vpack.c.bf16 %v353_v34, %v344_v8  ;;  %v371_v38 = vld [vmem:[%s8364_s1 + $0xaa8] sm:$0xff] }
  0xc9   :  { %v5318_v12 = vpack.c.bf16 %v371_v38, %v362_v10 }
  0xca   :  { %1067 = vmatmul.mubr.f32.gmra.mrb[18].mxu1 %v5858_v32  ;;  %5309 = vmatpush3.bf16.msra.mxu0 %v5308_v31 }
  0xcb   :  { %5253 = vmatpush1.bf16.msra.mxu1 %v5252_v21  ;;  %1072 = vmatprep.mubr.f32.mxu1 %v5859_v35  ;;  %v5330_v21 = vpack.c.bf16 %v425_v20, %v416_v49 }
  0xcc   :  { %5255 = vmatprep.subr.bf16.mxu1 %v5254_v24  ;;  %v443_v24 = vld [vmem:[%s8364_s1 + $0xce8] sm:$0xff] }
  0xcd   :  { %1239 = vmatmul.mubr.f32.vlgmr.msra.gmra.mrb[16].mxu0 %v5856_v16  ;;  %v407_v16 = vld [vmem:[%s8364_s1 + $0xbc8] sm:$0xff] }
  0xce   :  { %1073 = vmatmul.mubr.f32.gmra.mrb[20].mxu1 %v5860_v42  ;;  %1243 = vmatprep.mubr.f32.mxu0 %v5857_v23  ;;  %v5326_v18 = vpack.c.bf16 %v407_v16, %v398_v15  ;;  %v434_v23 = vld [vmem:[%s8364_s1 + $0xca0] sm:$0xff] }
  0xcf   :  { %5257 = vmatpush1.bf16.msra.mxu1 %v5256_v33  ;;  %1078 = vmatprep.mubr.f32.mxu1 %v5861_v44  ;;  %v5334_v47 = vpack.c.bf16 %v443_v24, %v434_v23 }
  0xd0   :  { %5259 = vmatprep.subr.bf16.mxu1 %v5258_v36 }
  0xd1   :  { %1244 = vmatmul.mubr.f32.gmra.mrb[18].mxu0 %v5858_v32 }
  0xd2   :  { %1079 = vmatmul.mubr.f32.gmra.mrb[22].mxu1 %v5862_v52  ;;  %1248 = vmatprep.mubr.f32.mxu0 %v5859_v35 }
  0xd3   :  { %5261 = vmatpush1.bf16.msra.mxu1 %v5260_v43  ;;  %1149 = vmatprep.mubr.f32.mxu1 %v8368_v7 }
  0xd4   :  { %5263 = vmatprep.subr.bf16.mxu1 %v5262_v45 }
  0xd5   :  { %1249 = vmatmul.mubr.f32.gmra.mrb[20].mxu0 %v5860_v42 }
  0xd6   :  { %1253 = vmatprep.mubr.f32.mxu0 %v5861_v44 }
  0xd7   :  { %5265 = vmatpush1.bf16.msra.mxu1 %v5264_v19 }
  0xd8   :  { %5267 = vmatprep.subr.bf16.mxu1 %v5266_v3 }
  0xd9   :  { %1254 = vmatmul.mubr.f32.gmra.mrb[22].mxu0 %v5862_v52 }
  0xdb   :  { %5269 = vmatpush1.bf16.msra.mxu1 %v5268_v58 }
  0xdc   :  { %5271 = vmatprep.subr.bf16.mxu1 %v5270_v59 }
  0xdf   :  { %5273 = vmatpush1.bf16.msra.mxu1 %v5272_v28 }
  0xe0   :  { %5275 = vmatprep.subr.bf16.mxu1 %v5274_v63 }
  0xe3   :  { %5277 = vmatpush1.bf16.msra.mxu1 %v5276_v5 }
  0xe4   :  { %5311 = vmatprep.subr.bf16.mxu1 %v5310_v6 }
  0xe6   :  { %1150 = vmatmul.mubr.f32.vlgmr.msra.gmra.mrb[16].mxu1 %v7072_v11 }
  0xe7   :  { %5313 = vmatpush3.bf16.msra.mxu1 %v5310_v6  ;;  %1155 = vmatprep.mubr.f32.mxu1 %v8368_v7 }
  0xe8   :  { %5315 = vmatprep.subr.bf16.mxu1 %v5314_v9 }
  0xea   :  { %1156 = vmatmul.mubr.f32.gmra.mrb[18].mxu1 %v7103_v25 }
  0xeb   :  { %5317 = vmatpush3.bf16.msra.mxu1 %v5314_v9  ;;  %1161 = vmatprep.mubr.f32.mxu1 %v8368_v7 }
  0xec   :  { %5319 = vmatprep.subr.bf16.mxu1 %v5318_v12 }
  0xee   :  { %1162 = vmatmul.mubr.f32.gmra.mrb[20].mxu1 %v7134_v55 }
  0xef   :  { %5321 = vmatpush3.bf16.msra.mxu1 %v5318_v12  ;;  %1167 = vmatprep.mubr.f32.mxu1 %v8368_v7 }
  0xf0   :  { %5323 = vmatprep.subr.bf16.mxu1 %v5322_v48 }
  0xf2   :  { %1168 = vmatmul.mubr.f32.gmra.mrb[22].mxu1 %v7165_v53 }
  0xf3   :  { %5325 = vmatpush3.bf16.msra.mxu1 %v5322_v48  ;;  %4682 = vmatprep.mubr.f32.mxu1 %v7072_v11  ;;  %v461_v11 = vld [vmem:[%s8364_s1 + $0xd78] sm:$0xff]  ;;  %s5888_s1 = smov 64  }
  0xf4   :  { %5327 = vmatprep.subr.bf16.mxu1 %v5326_v18  ;;  %v5338_v31 = vpack.c.bf16 %v461_v11, %v452_v29 }
  0xf7   :  { %5329 = vmatpush3.bf16.msra.mxu1 %v5326_v18 }
  0xf8   :  { %5331 = vmatprep.subr.bf16.mxu1 %v5330_v21 }
  0xf9   :  { %v617_v27 = vpop.f32.mrb[0].mxu1 }
  0xfa   :  { %v619_v30 = vpop.f32.mrb[1].mxu1 }
  0xfb   :  { %5333 = vmatpush3.bf16.msra.mxu1 %v5330_v21 }
  0xfc   :  { %5335 = vmatprep.subr.bf16.mxu1 %v5334_v47 }
  0xfd   :  { %v623_v32 = vpop.f32.mrb[2].mxu1 }
  0xfe   :  { %v625_v33 = vpop.f32.mrb[3].mxu1 }
  0xff   :  { %5337 = vmatpush3.bf16.msra.mxu1 %v5334_v47 }
 0x100   :  { %5339 = vmatprep.subr.bf16.mxu1 %v5338_v31 }
 0x101   :  { %v629_v35 = vpop.f32.mrb[4].mxu1 }
 0x102   :  { %v631_v36 = vpop.f32.mrb[5].mxu1 }
 0x103   :  { %5341 = vmatpush3.bf16.msra.mxu1 %v5338_v31 }
 0x105   :  { %v635_v37 = vpop.f32.mrb[6].mxu1 }
 0x106   :  { %4683 = vmatmul.mubr.f32.vlgmr.msra.gmra.mrb[24].mxu1 %v7103_v25  ;;  %v637_v39 = vpop.f32.mrb[7].mxu1 }
 0x107   :  { %4685 = vmatprep.mubr.f32.mxu1 %v7134_v55 }
 0x10a   :  { %4686 = vmatmul.mubr.f32.gmra.mrb[26].mxu1 %v7165_v53 }
 0x118   :  { %v528_v40 = vpop.f32.mrb[0].mxu0 }
 0x119   :  { %v618_v41 = vadd.f32 %v617_v27, %v528_v40  ;;  %v530_v42 = vpop.f32.mrb[1].mxu0 }
 0x11a   :  { %v7378_v43 = vadd.f32 %v619_v30, %v530_v42 }
 0x11b   :  { %4692 = vmatprep.mubr.msk.f32.mxu1 %vm1351_vm0, %v618_v41 }
 0x11c   :  { %v534_v44 = vpop.f32.mrb[2].mxu0 }
 0x11d   :  { %v7381_v25 = vadd.f32 %v623_v32, %v534_v44  ;;  %v536_v55 = vpop.f32.mrb[3].mxu0 }
 0x11e   :  { %v7383_v45 = vadd.f32 %v625_v33, %v536_v55 }
 0x120   :  { %v540_v53 = vpop.f32.mrb[4].mxu0 }
 0x121   :  { %v7385_v46 = vadd.f32 %v629_v35, %v540_v53  ;;  %v542_v50 = vpop.f32.mrb[5].mxu0 }
 0x122   :  { %v7387_v17 = vadd.f32 %v631_v36, %v542_v50 }
 0x123   :  { %4699 = vmatprep.mubr.msk.f32.mxu0 %vm1351_vm0, %v7385_v46 }
 0x124   :  { %v546_v51 = vpop.f32.mrb[6].mxu0 }
 0x125   :  { %v7391_v52 = vadd.f32 %v635_v37, %v546_v51  ;;  %v548_v19 = vpop.f32.mrb[7].mxu0 }
 0x126   :  { %v7393_v3 = vadd.f32 %v637_v39, %v548_v19 }
 0x159   :  { %v7395_v54 = vpop.f32.mrb[8].mxu1 }
 0x15a   :  { %v7397_v56 = vpop.f32.mrb[9].mxu1 }
 0x15d   :  { %v7399_v22 = vpop.f32.mrb[10].mxu1 }
 0x15e   :  { %v7401_v57 = vpop.f32.mrb[11].mxu1 }
 0x15f   :  { %v5675_v59 = vpack.i.bf16 %v7401_v57, %v7397_v56  ;;  %v5342_v60 = vpack.c.bf16 %v7401_v57, %v7397_v56 }
 0x161   :  { %v7413_v26 = vpop.f32.mrb[12].mxu1  ;;  %5344 = vmatprep.subr.msk.bf16.mxu1 %vm7405_vm1, %v5342_v60 }
 0x162   :  { %v809_v61 = vpop.f32.mrb[13].mxu1  ;;  %5347 = vmatpush3.bf16.xpose.msk.msra.mxu1 %vm7405_vm1, %v5342_v60 }
 0x165   :  { %v7419_v62 = vpop.f32.mrb[14].mxu1 }
 0x166   :  { %v815_v28 = vpop.f32.mrb[15].mxu1 }
 0x167   :  { %v5348_v63 = vpack.c.bf16 %v815_v28, %v809_v61  ;;  %v5680_v0 = vpack.i.bf16 %v815_v28, %v809_v61 }
 0x169   :  { %5681 = vrot.lane.b32.xlu1 %v5680_v0, %s5888_s1  ;;  %4693 = vmatmul.mubr.msk.f32.vlgmr.msra.gmra.mrb[28].mxu1 %vm1351_vm0, %v7381_v25 }
 0x16a   :  { %5350 = vmatprep.subr.msk.bf16.mxu0 %vm7405_vm1, %v5348_v63 }
 0x16b   :  { %5353 = vmatpush3.bf16.xpose.msk.msra.mxu0 %vm7405_vm1, %v5348_v63 }
 0x16d   :  { %1745 = vrot.lane.b32.xlu1 %v618_v41, %s5888_s1 }
 0x172   :  { %4700 = vmatmul.mubr.msk.f32.vlgmr.msra.gmra.mrb[24].mxu0 %vm1351_vm0, %v7391_v52 }
 0x180   :  { %v7431_v1 = vpop.f32.mrb[8].mxu0 }
 0x181   :  { %v7433_v2 = vpop.f32.mrb[9].mxu0 }
 0x184   :  { %v7435_v4 = vpop.f32.mrb[10].mxu0 }
 0x185   :  { %v7441_v6 = vpack.c.bf16 %v7435_v4, %v7431_v1  ;;  %v7443_v8 = vpop.f32.mrb[11].mxu0 }
 0x186   :  { %v7449_v9 = vpack.c.bf16 %v7443_v8, %v7433_v2 }
 0x188   :  { %v7451_v10 = vpop.f32.mrb[12].mxu0 }
 0x189   :  { %v7453_v38 = vpop.f32.mrb[13].mxu0 }
 0x18c   :  { %v7455_v12 = vpop.f32.mrb[14].mxu0 }
 0x18d   :  { %v7461_v14 = vpack.c.bf16 %v7455_v12, %v7451_v10  ;;  %v7463_v48 = vpop.f32.mrb[15].mxu0 }
 0x18e   :  { %v7469_v16 = vpack.c.bf16 %v7463_v48, %v7453_v38 }
 0x1a0   :  { %v4458_v18 = vpop.f32.mrb[16].mxu0 }
 0x1a1   :  { %v4459_v49 = vpop.f32.mrb[17].mxu0 }
 0x1a2   :  { %v4460_v20 = vadd.f32 %v4459_v49, %v4458_v18 }
 0x1a4   :  { %v4461_v21 = vpop.f32.mrb[18].mxu0 }
 0x1a5   :  { %v4462_v23 = vpop.f32.mrb[19].mxu0 }
 0x1a6   :  { %v4463_v24 = vadd.f32 %v4462_v23, %v4461_v21 }
 0x1a8   :  { %v4464_v47 = vpop.f32.mrb[20].mxu0 }
 0x1a9   :  { %v4465_v27 = vpop.f32.mrb[21].mxu0 }
 0x1aa   :  { %v4466_v29 = vadd.f32 %v4465_v27, %v4464_v47 }
 0x1ac   :  { %v4467_v11 = vpop.f32.mrb[22].mxu0 }
 0x1ad   :  { %v4468_v30 = vpop.f32.mrb[23].mxu0 }
 0x1ae   :  { %v4469_v31 = vadd.f32 %v4468_v30, %v4467_v11  ;;  %v1344_v11 = vlaneseq }
 0x1b0   :  { %v7527_v30 = vshrl.u32 %v1344_v11, 7 }
 0x1b9   :  { %v7471_v32 = vpop.f32.mrb[16].mxu1 }
 0x1ba   :  { %v7473_v33 = vpop.f32.mrb[17].mxu1 }
 0x1bd   :  { %v7475_v35 = vpop.f32.mrb[18].mxu1 }
 0x1be   :  { %v5354_v37 = vpack.c.bf16 %v7475_v35, %v7471_v32  ;;  %v7481_v39 = vpop.f32.mrb[19].mxu1 }
 0x1bf   :  { %v7487_v41 = vpack.c.bf16 %v7481_v39, %v7473_v33 }
 0x1c0   :  { %5355 = vmatprep.subr.bf16.mxu0 %v5354_v37 }
 0x1c1   :  { %5357 = vmatpush3.bf16.msra.mxu0 %v5354_v37  ;;  %v7489_v42 = vpop.f32.mrb[20].mxu1  ;;  %v1348_v37 = vand.u32 127, %v1344_v11 }
 0x1c2   :  { %v7491_v44 = vpop.f32.mrb[21].mxu1 }
 0x1c3   :  { %vm7531_vm2 = vcmp.le.s32.totalorder %v1348_v37, %v7527_v30 }
 0x1c5   :  { %v7493_v55 = vpop.f32.mrb[22].mxu1 }
 0x1c6   :  { %v5690_v53 = vpack.i.bf16 %v7493_v55, %v7489_v42  ;;  %v5358_v50 = vpack.c.bf16 %v7493_v55, %v7489_v42  ;;  %v7499_v51 = vpop.f32.mrb[23].mxu1 }
 0x1c7   :  { %v7505_v60 = vpack.c.bf16 %v7499_v51, %v7491_v44 }
 0x1c8   :  { %5359 = vmatprep.subr.bf16.mxu1 %v5358_v50 }
 0x1c9   :  { %5361 = vmatpush3.bf16.msra.mxu1 %v5358_v50  ;;  %v1346_v50 = vadd.s32 8, %v7527_v30 }
 0x1cb   :  { %vm7535_vm4 = vcmp.le.s32.totalorder %v1348_v37, %v1346_v50 }
 0x1d9   :  { %v4684_v61 = vpop.f32.mrb[24].mxu1 }
 0x1da   :  { %v7507_v28 = vadd.f32 %v4684_v61, %v4463_v24  ;;  %v1325_v63 = vpop.f32.mrb[25].mxu1 }
 0x1db   :  { %v7509_v0 = vadd.f32 %v4460_v20, %v1325_v63 }
 0x1dd   :  { %v7515_v49 = vpack.c.bf16 %v7507_v28, %v7509_v0  ;;  %v4687_v21 = vpop.f32.mrb[26].mxu1 }
 0x1de   :  { %v7517_v23 = vadd.f32 %v4687_v21, %v4469_v31  ;;  %v1335_v47 = vpop.f32.mrb[27].mxu1 }
 0x1df   :  { %v7519_v27 = vadd.f32 %v4466_v29, %v1335_v47 }
 0x1e1   :  { %v7525_v20 = vpack.c.bf16 %v7517_v23, %v7519_v27 }
 0x23c   :  { %v4694_v61 = vpop.f32.mrb[28].mxu1 }
 0x23d   :  { %v1430_v63 = vpop.f32.mrb[29].mxu1  ;;  %v1527_v29 = vmul.f32 0.05103104, %v4694_v61 }
 0x23e   :  { %v1526_v21 = vmul.f32 0.05103104, %v1430_v63 }
 0x23f   :  { %v1535_v18 = vsel %vm7535_vm4, %v1527_v29, -inf }
 0x240   :  { %v1534_v7 = vsel %vm7531_vm2, %v1526_v21, -inf  ;;  %v1542_v34 = vsel %vm1538_vm3, %v1535_v18, -inf }
 0x241   :  { %v1539_v11 = vsel %vm1538_vm3, %v1534_v7, -inf }
 0x242   :  { %1540 = vmax.xlane.f32.xlu0 %v1539_v11 }
 0x245   :  { %v4701_v24 = vpop.f32.mrb[24].mxu0 }
 0x246   :  { %v1517_v15 = vpop.f32.mrb[25].mxu0  ;;  %1543 = vmax.xlane.f32.xlu0 %v1542_v34 }
 0x247   :  { %v1528_v37 = vmul.f32 0.05103104, %v1517_v15 }
 0x249   :  { %v1536_v50 = vsel %vm7531_vm2, %v1528_v37, -inf }
 0x24a   :  { %v1545_v61 = vsel %vm1538_vm3, %v1536_v50, -inf }
 0x25c   :  { %5676 = vrot.lane.b32.xlu0 %v5675_v59, %s5888_s1 }
 0x260   :  { %1836 = vrot.lane.b32.xlu0 %v7385_v46, %s5888_s1 }
 0x27f   :  { %1546 = vmax.xlane.f32.xlu0 %v1545_v61  ;;  %v5682_v61 = vpop.permute.xlu1 %5681 }
 0x2cf   :  { %v1541_v63 = vpop.xlane.xlu0 %1540 }
 0x2d0   :  { %v1551_v29 = vsub.f32 %v1534_v7, %v1541_v63  ;;  %v1746_v63 = vpop.permute.xlu1 %1745 }
 0x2d2   :  { %v1555_v34 = vmul.f32 1.442695, %v1551_v29 }
 0x2d3   :  { %v1544_v21 = vpop.xlane.xlu0 %1543 }
 0x2d4   :  { %v1552_v11 = vsub.f32 %v1535_v18, %v1544_v21 }
 0x2d6   :  { %v1557_v40 = vmul.f32 1.442695, %v1552_v11 }
 0x2d7   :  { %v5677_v19 = vpop.permute.xlu0 %5676 }
 0x2d8   :  { %5755 = vpow2.f32 %v1557_v40  ;;  %v5679_v56 = vunpack.i.h.bf16 %v5677_v19  ;;  %v5678_v57 = vunpack.i.l.bf16 %v5677_v19  ;;  %v1529_v40 = vmul.f32 0.05103104, %v4701_v24 }
 0x2d9   :  { %5757 = vpow2.f32 %v1555_v34 }
 0x2da   :  { %v5362_v59 = vpack.c.bf16 %v5679_v56, %v5678_v57  ;;  %v1537_v19 = vsel %vm7535_vm4, %v1529_v40, -inf  ;;  %v5684_v56 = vunpack.i.h.bf16 %v5682_v61 }
 0x2db   :  { %v1548_v18 = vsel %vm1538_vm3, %v1537_v19, -inf }
 0x2dc   :  { %5364 = vmatprep.subr.msk.bf16.mxu0 %vm7405_vm1, %v5362_v59 }
 0x2e2   :  { %v5756_v46 = vpop.eup %5755 }
 0x2e3   :  { %v1566_v15 = vsel %vm1538_vm3, %v5756_v46, 0.0  ;;  %v5758_v37 = vpop.eup %5757 }
 0x2e4   :  { %1567 = vadd.xlane.f32.xlu1 %v1566_v15  ;;  %v1563_v7 = vsel %vm1538_vm3, %v5758_v37, 0.0 }
 0x2e8   :  { %1564 = vadd.xlane.f32.xlu1 %v1563_v7  ;;  %v1837_v7 = vpop.permute.xlu0 %1836 }
 0x2f9   :  { %1747 = vrot.lane.b32.xlu1 %v7381_v25, %s5888_s1  ;;  %v5683_v25 = vunpack.i.l.bf16 %v5682_v61 }
 0x2fd   :  { %1838 = vrot.lane.b32.xlu1 %v7391_v52, %s5888_s1  ;;  %v5368_v52 = vpack.c.bf16 %v5684_v56, %v5683_v25 }
 0x321   :  { %1549 = vmax.xlane.f32.xlu1 %v1548_v18 }
 0x371   :  { %v1568_v29 = vpop.xlane.xlu1 %1567 }
 0x372   :  { %5759 = vrcp.f32 %v1568_v29 }
 0x375   :  { %v1565_v21 = vpop.xlane.xlu1 %1564 }
 0x376   :  { %5761 = vrcp.f32 %v1565_v21 }
 0x379   :  { %v1748_v24 = vpop.permute.xlu1 %1747 }
 0x37c   :  { %v5760_v11 = vpop.eup %5759 }
 0x37d   :  { %v1580_v15 = vmul.f32 %v5760_v11, %v5756_v46  ;;  %v1839_v46 = vpop.permute.xlu1 %1838 }
 0x380   :  { %v5762_v34 = vpop.eup %5761 }
 0x381   :  { %v1579_v57 = vmul.f32 %v5762_v34, %v5758_v37 }
 0x383   :  { %4706 = vmatprep.mubr.msk.f32.mxu0 %vm1538_vm3, %v1579_v57 }
 0x384   :  { %4707 = vmatmul.mubr.msk.f32.vlgmr.msra.gmra.mrb[26].mxu0 %vm1538_vm3, %v1580_v15 }
 0x385   :  { %5367 = vmatpush3.bf16.xpose.msk.msra.mxu0 %vm7405_vm1, %v5362_v59  ;;  %4720 = vmatprep.mubr.msk.f32.mxu0 %vm1351_vm0, %v1746_v63  ;;  %v1547_v59 = vpop.xlane.xlu0 %1546 }
 0x386   :  { %5370 = vmatprep.subr.msk.bf16.mxu0 %vm7405_vm1, %v5368_v52  ;;  %v1553_v63 = vsub.f32 %v1536_v50, %v1547_v59 }
 0x388   :  { %v1559_v21 = vmul.f32 1.442695, %v1553_v63 }
 0x38c   :  { %4721 = vmatmul.mubr.msk.f32.vlgmr.msra.gmra.mrb[28].mxu0 %vm1351_vm0, %v1748_v24 }
 0x38d   :  { %5373 = vmatpush3.bf16.xpose.msk.msra.mxu0 %vm7405_vm1, %v5368_v52  ;;  %4727 = vmatprep.mubr.msk.f32.mxu0 %vm1351_vm0, %v1837_v7 }
 0x394   :  { %4728 = vmatmul.mubr.msk.f32.vlgmr.msra.gmra.mrb[30].mxu0 %vm1351_vm0, %v1839_v46 }
 0x3ae   :  { %v1550_v37 = vpop.xlane.xlu1 %1549 }
 0x3af   :  { %v1554_v61 = vsub.f32 %v1537_v19, %v1550_v37 }
 0x3b1   :  { %v1561_v29 = vmul.f32 1.442695, %v1554_v61 }
 0x3b3   :  { %5763 = vpow2.f32 %v1561_v29 }
 0x3b4   :  { %5765 = vpow2.f32 %v1559_v21 }
 0x3bd   :  { %v5764_v63 = vpop.eup %5763 }
 0x3be   :  { %v5766_v21 = vpop.eup %5765 }
 0x457   :  { %v7577_v40 = vpop.f32.mrb[26].mxu0 }
 0x458   :  { %v7579_v18 = vpop.f32.mrb[27].mxu0 }
 0x45f   :  { %v4722_v11 = vpop.f32.mrb[28].mxu0 }
 0x460   :  { %v1827_v34 = vpop.f32.mrb[29].mxu0  ;;  %v1928_v56 = vmul.f32 0.05103104, %v4722_v11  ;;  %v1572_v11 = vsel %vm1538_vm3, %v5764_v63, 0.0 }
 0x461   :  { %v1927_v25 = vmul.f32 0.05103104, %v1827_v34  ;;  %v1569_v34 = vsel %vm1538_vm3, %v5766_v21, 0.0 }
 0x462   :  { %v1932_v52 = vsel %vm7535_vm4, %v1928_v56, -inf }
 0x463   :  { %v1931_v57 = vsel %vm7531_vm2, %v1927_v25, -inf  ;;  %v1938_v7 = vsel %vm1538_vm3, %v1932_v52, -inf }
 0x464   :  { %v1935_v15 = vsel %vm1538_vm3, %v1931_v57, -inf }
 0x465   :  { %1936 = vmax.xlane.f32.xlu0 %v1935_v15 }
 0x467   :  { %v4729_v24 = vpop.f32.mrb[30].mxu0 }
 0x468   :  { %v1930_v19 = vmul.f32 0.05103104, %v4729_v24  ;;  %v1918_v50 = vpop.f32.mrb[31].mxu0 }
 0x469   :  { %v1929_v46 = vmul.f32 0.05103104, %v1918_v50  ;;  %1939 = vmax.xlane.f32.xlu0 %v1938_v7 }
 0x46a   :  { %v1934_v37 = vsel %vm7535_vm4, %v1930_v19, -inf }
 0x46b   :  { %v1944_v59 = vsel %vm1538_vm3, %v1934_v37, -inf  ;;  %v1933_v61 = vsel %vm7531_vm2, %v1929_v46, -inf }
 0x46c   :  { %1945 = vmax.xlane.f32.xlu1 %v1944_v59  ;;  %v1941_v29 = vsel %vm1538_vm3, %v1933_v61, -inf }
 0x46d   :  { %1942 = vmax.xlane.f32.xlu0 %v1941_v29 }
 0x470   :  { %1573 = vadd.xlane.f32.xlu1 %v1572_v11 }
 0x471   :  { %1570 = vadd.xlane.f32.xlu0 %v1569_v34 }
 0x4f2   :  { %v1937_v56 = vpop.xlane.xlu0 %1936 }
 0x4f3   :  { %v1947_v25 = vsub.f32 %v1931_v57, %v1937_v56 }
 0x4f5   :  { %v1951_v15 = vmul.f32 1.442695, %v1947_v25 }
 0x4f6   :  { %v1940_v24 = vpop.xlane.xlu0 %1939 }
 0x4f7   :  { %5767 = vpow2.f32 %v1951_v15  ;;  %v1948_v19 = vsub.f32 %v1932_v52, %v1940_v24 }
 0x4f9   :  { %v1953_v50 = vmul.f32 1.442695, %v1948_v19  ;;  %v1946_v7 = vpop.xlane.xlu1 %1945  ;;  %v8376_v19 = vpack.i.bf16 %v7475_v35, %v7471_v32 }
 0x4fa   :  { %v1950_v46 = vsub.f32 %v1934_v37, %v1946_v7  ;;  %v1943_v59 = vpop.xlane.xlu0 %1942 }
 0x4fb   :  { %5769 = vpow2.f32 %v1953_v50  ;;  %v1949_v5 = vsub.f32 %v1933_v61, %v1943_v59 }
 0x4fc   :  { %v1957_v13 = vmul.f32 1.442695, %v1950_v46 }
 0x4fd   :  { %v1955_v29 = vmul.f32 1.442695, %v1949_v5  ;;  %v1574_v36 = vpop.xlane.xlu1 %1573 }
 0x4fe   :  { %5771 = vpow2.f32 %v1957_v13  ;;  %v1571_v11 = vpop.xlane.xlu0 %1570 }
 0x4ff   :  { %5773 = vpow2.f32 %v1955_v29 }
 0x500   :  { %5775 = vrcp.f32 %v1574_v36 }
 0x501   :  { %v5768_v34 = vpop.eup %5767  ;;  %5777 = vrcp.f32 %v1571_v11 }
 0x502   :  { %v1959_v57 = vsel %vm1538_vm3, %v5768_v34, 0.0 }
 0x503   :  { %1960 = vadd.xlane.f32.xlu0 %v1959_v57 }
 0x505   :  { %v5770_v56 = vpop.eup %5769 }
 0x506   :  { %v1962_v52 = vsel %vm1538_vm3, %v5770_v56, 0.0 }
 0x507   :  { %1963 = vadd.xlane.f32.xlu1 %v1962_v52 }
 0x508   :  { %v5772_v37 = vpop.eup %5771 }
 0x509   :  { %v5774_v25 = vpop.eup %5773  ;;  %v1968_v61 = vsel %vm1538_vm3, %v5772_v37, 0.0 }
 0x50a   :  { %v5776_v15 = vpop.eup %5775  ;;  %v1965_v5 = vsel %vm1538_vm3, %v5774_v25, 0.0 }
 0x50b   :  { %v5778_v13 = vpop.eup %5777  ;;  %1969 = vadd.xlane.f32.xlu1 %v1968_v61  ;;  %1966 = vadd.xlane.f32.xlu0 %v1965_v5  ;;  %v1582_v24 = vmul.f32 %v5776_v15, %v5764_v63 }
 0x50c   :  { %v1581_v36 = vmul.f32 %v5778_v13, %v5766_v21 }
 0x50e   :  { %4713 = vmatprep.mubr.msk.f32.mxu1 %vm1538_vm3, %v1581_v36 }
 0x50f   :  { %4714 = vmatmul.mubr.msk.f32.vlgmr.msra.gmra.mrb[30].mxu1 %vm1538_vm3, %v1582_v24 }
 0x51c   :  { %5691 = vrot.lane.b32.xlu1 %v5690_v53, %s5888_s1 }
 0x521   :  { %5686 = vrot.lane.b32.xlu0 %v8376_v19, %s5888_s1 }
 0x590   :  { %v1961_v50 = vpop.xlane.xlu0 %1960 }
 0x591   :  { %5779 = vrcp.f32 %v1961_v50 }
 0x594   :  { %v1964_v7 = vpop.xlane.xlu1 %1963 }
 0x595   :  { %5781 = vrcp.f32 %v1964_v7 }
 0x598   :  { %v1970_v21 = vpop.xlane.xlu1 %1969  ;;  %v1967_v63 = vpop.xlane.xlu0 %1966 }
 0x599   :  { %5783 = vrcp.f32 %v1970_v21 }
 0x59a   :  { %5785 = vrcp.f32 %v1967_v63 }
 0x59b   :  { %v5780_v46 = vpop.eup %5779 }
 0x59c   :  { %v5692_v59 = vpop.permute.xlu1 %5691  ;;  %v5687_v29 = vpop.permute.xlu0 %5686  ;;  %v1975_v11 = vmul.f32 %v5780_v46, %v5768_v34 }
 0x59d   :  { %v5694_v57 = vunpack.i.h.bf16 %v5692_v59  ;;  %v5693_v42 = vunpack.i.l.bf16 %v5692_v59  ;;  %v5689_v55 = vunpack.i.h.bf16 %v5687_v29  ;;  %v5688_v53 = vunpack.i.l.bf16 %v5687_v29 }
 0x59e   :  { %4734 = vmatprep.mubr.msk.f32.mxu0 %vm1538_vm3, %v1975_v11 }
 0x59f   :  { %v5378_v32 = vpack.c.bf16 %v5694_v57, %v5693_v42  ;;  %v5374_v35 = vpack.c.bf16 %v5689_v55, %v5688_v53  ;;  %v5782_v52 = vpop.eup %5781 }
 0x5a0   :  { %v1976_v15 = vmul.f32 %v5782_v52, %v5770_v56 }
 0x5a1   :  { %5375 = vmatprep.subr.bf16.mxu0 %v5374_v35  ;;  %5379 = vmatprep.subr.bf16.mxu1 %v5378_v32 }
 0x5a2   :  { %5377 = vmatpush3.bf16.msra.mxu0 %v5374_v35  ;;  %5381 = vmatpush3.bf16.msra.mxu1 %v5378_v32 }
 0x5a3   :  { %v5784_v61 = vpop.eup %5783  ;;  %5384 = vmatprep.subr.msk.bf16.mxu0 %vm7405_vm1, %v7441_v6  ;;  %5390 = vmatprep.subr.msk.bf16.mxu1 %vm7405_vm1, %v7461_v14 }
 0x5a4   :  { %v5786_v34 = vpop.eup %5785  ;;  %v1978_v5 = vmul.f32 %v5784_v61, %v5772_v37 }
 0x5a5   :  { %4735 = vmatmul.mubr.msk.f32.vlgmr.msra.gmra.mrb[32].mxu0 %vm1538_vm3, %v1976_v15  ;;  %v1977_v13 = vmul.f32 %v5786_v34, %v5774_v25 }
 0x5a6   :  { %4748 = vmatprep.mubr.msk.f32.mxu0 %vm1351_vm0, %v7378_v43 }
 0x5a7   :  { %4741 = vmatprep.mubr.msk.f32.mxu1 %vm1538_vm3, %v1977_v13 }
 0x5a8   :  { %4742 = vmatmul.mubr.msk.f32.vlgmr.msra.gmra.mrb[32].mxu1 %vm1538_vm3, %v1978_v5 }
 0x5a9   :  { %4755 = vmatprep.mubr.msk.f32.mxu1 %vm1351_vm0, %v7387_v17 }
 0x5ab   :  { %5387 = vmatpush3.bf16.xpose.msk.msra.mxu0 %vm7405_vm1, %v7441_v6  ;;  %5393 = vmatpush3.bf16.xpose.msk.msra.mxu1 %vm7405_vm1, %v7461_v14 }
 0x5ac   :  { %5395 = vmatprep.subr.bf16.mxu0 %v7487_v41  ;;  %5399 = vmatprep.subr.bf16.mxu1 %v7505_v60 }
 0x5b2   :  { %4749 = vmatmul.mubr.msk.f32.vlgmr.msra.gmra.mrb[34].mxu0 %vm1351_vm0, %v7383_v45  ;;  %4756 = vmatmul.mubr.msk.f32.vlgmr.msra.gmra.mrb[34].mxu1 %vm1351_vm0, %v7393_v3 }
 0x5b3   :  { %5397 = vmatpush3.bf16.msra.mxu0 %v7487_v41  ;;  %5401 = vmatpush3.bf16.msra.mxu1 %v7505_v60 }
 0x5e2   :  { %v7637_v56 = vpop.f32.mrb[30].mxu1 }
 0x5e3   :  { %v7639_v6 = vpop.f32.mrb[31].mxu1 }
 0x678   :  { %v7641_v37 = vpop.f32.mrb[32].mxu0 }
 0x679   :  { %v7643_v14 = vpop.f32.mrb[33].mxu0 }
 0x67b   :  { %v7645_v25 = vpop.f32.mrb[32].mxu1 }
 0x67c   :  { %v7647_v36 = vpop.f32.mrb[33].mxu1 }
 0x685   :  { %v4750_v24 = vpop.f32.mrb[34].mxu0  ;;  %v4757_v19 = vpop.f32.mrb[34].mxu1 }
 0x686   :  { %v2332_v50 = vmul.f32 0.05103104, %v4750_v24  ;;  %v2235_v7 = vpop.f32.mrb[35].mxu0  ;;  %v2322_v21 = vpop.f32.mrb[35].mxu1  ;;  %v2334_v41 = vmul.f32 0.05103104, %v4757_v19 }
 0x687   :  { %v2331_v63 = vmul.f32 0.05103104, %v2235_v7  ;;  %v2333_v60 = vmul.f32 0.05103104, %v2322_v21 }
 0x688   :  { %v2336_v46 = vsel %vm7535_vm4, %v2332_v50, -inf  ;;  %v2338_v42 = vsel %vm7535_vm4, %v2334_v41, -inf }
 0x689   :  { %v2342_v59 = vsel %vm1538_vm3, %v2336_v46, -inf  ;;  %v2335_v29 = vsel %vm7531_vm2, %v2331_v63, -inf  ;;  %v2337_v57 = vsel %vm7531_vm2, %v2333_v60, -inf  ;;  %v2348_v53 = vsel %vm1538_vm3, %v2338_v42, -inf }
 0x68a   :  { %2343 = vmax.xlane.f32.xlu0 %v2342_v59  ;;  %v2339_v11 = vsel %vm1538_vm3, %v2335_v29, -inf  ;;  %v2345_v55 = vsel %vm1538_vm3, %v2337_v57, -inf }
 0x68b   :  { %2340 = vmax.xlane.f32.xlu1 %v2339_v11 }
 0x68e   :  { %2346 = vmax.xlane.f32.xlu0 %v2345_v55 }
 0x68f   :  { %2349 = vmax.xlane.f32.xlu1 %v2348_v53 }
 0x717   :  { %v2344_v32 = vpop.xlane.xlu0 %2343 }
 0x718   :  { %v2352_v35 = vsub.f32 %v2336_v46, %v2344_v32  ;;  %v2341_v52 = vpop.xlane.xlu1 %2340 }
 0x719   :  { %v2351_v61 = vsub.f32 %v2335_v29, %v2341_v52 }
 0x71a   :  { %v2357_v15 = vmul.f32 1.442695, %v2352_v35 }
 0x71b   :  { %v2355_v34 = vmul.f32 1.442695, %v2351_v61  ;;  %v2347_v5 = vpop.xlane.xlu0 %2346 }
 0x71c   :  { %5787 = vpow2.f32 %v2357_v15  ;;  %v2353_v13 = vsub.f32 %v2337_v57, %v2347_v5  ;;  %v2350_v24 = vpop.xlane.xlu1 %2349  ;;  %v8377_v57 = vpack.i.bf16 %v7455_v12, %v7451_v10 }
 0x71d   :  { %5789 = vpow2.f32 %v2355_v34  ;;  %v2354_v19 = vsub.f32 %v2338_v42, %v2350_v24  ;;  %v8378_v42 = vpack.i.bf16 %v7435_v4, %v7431_v1 }
 0x71e   :  { %v2359_v50 = vmul.f32 1.442695, %v2353_v13 }
 0x71f   :  { %v2361_v7 = vmul.f32 1.442695, %v2354_v19 }
 0x720   :  { %5791 = vpow2.f32 %v2359_v50 }
 0x721   :  { %5793 = vpow2.f32 %v2361_v7 }
 0x726   :  { %v5788_v21 = vpop.eup %5787 }
 0x727   :  { %v5790_v41 = vpop.eup %5789  ;;  %v2366_v63 = vsel %vm1538_vm3, %v5788_v21, 0.0 }
 0x728   :  { %2367 = vadd.xlane.f32.xlu1 %v2366_v63  ;;  %v2363_v60 = vsel %vm1538_vm3, %v5790_v41, 0.0 }
 0x729   :  { %2364 = vadd.xlane.f32.xlu0 %v2363_v60 }
 0x72a   :  { %v5792_v46 = vpop.eup %5791 }
 0x72b   :  { %v5794_v59 = vpop.eup %5793  ;;  %v2369_v29 = vsel %vm1538_vm3, %v5792_v46, 0.0 }
 0x72c   :  { %v2372_v11 = vsel %vm1538_vm3, %v5794_v59, 0.0 }
 0x72d   :  { %2373 = vadd.xlane.f32.xlu1 %v2372_v11  ;;  %2370 = vadd.xlane.f32.xlu0 %v2369_v29 }
 0x73e   :  { %5701 = vrot.lane.b32.xlu1 %v8377_v57, %s5888_s1 }
 0x742   :  { %2545 = vrot.lane.b32.xlu1 %v7378_v43, %s5888_s1 }
 0x743   :  { %5696 = vrot.lane.b32.xlu0 %v8378_v42, %s5888_s1 }
 0x746   :  { %2547 = vrot.lane.b32.xlu1 %v7383_v45, %s5888_s1 }
 0x747   :  { %2636 = vrot.lane.b32.xlu0 %v7387_v17, %s5888_s1 }
 0x74a   :  { %2638 = vrot.lane.b32.xlu1 %v7393_v3, %s5888_s1 }
 0x7b5   :  { %v2368_v55 = vpop.xlane.xlu1 %2367 }
 0x7b6   :  { %5795 = vrcp.f32 %v2368_v55  ;;  %v2365_v10 = vpop.xlane.xlu0 %2364 }
 0x7b7   :  { %5797 = vrcp.f32 %v2365_v10 }
 0x7ba   :  { %v2374_v12 = vpop.xlane.xlu1 %2373  ;;  %v2371_v43 = vpop.xlane.xlu0 %2370 }
 0x7bb   :  { %5799 = vrcp.f32 %v2374_v12 }
 0x7bc   :  { %5801 = vrcp.f32 %v2371_v43 }
 0x7be   :  { %v5702_v53 = vpop.permute.xlu1 %5701  ;;  %v5697_v1 = vpop.permute.xlu0 %5696 }
 0x7bf   :  { %v5704_v4 = vunpack.i.h.bf16 %v5702_v53  ;;  %v5703_v32 = vunpack.i.l.bf16 %v5702_v53  ;;  %v5699_v35 = vunpack.i.h.bf16 %v5697_v1  ;;  %v5698_v45 = vunpack.i.l.bf16 %v5697_v1 }
 0x7c0   :  { %v5796_v52 = vpop.eup %5795 }
 0x7c1   :  { %v5798_v61 = vpop.eup %5797  ;;  %v5408_v17 = vpack.c.bf16 %v5704_v4, %v5703_v32  ;;  %v5402_v15 = vpack.c.bf16 %v5699_v35, %v5698_v45  ;;  %v2380_v3 = vmul.f32 %v5796_v52, %v5788_v21 }
 0x7c2   :  { %v2379_v34 = vmul.f32 %v5798_v61, %v5790_v41  ;;  %v2546_v13 = vpop.permute.xlu1 %2545  ;;  %v2637_v7 = vpop.permute.xlu0 %2636 }
 0x7c3   :  { %5404 = vmatprep.subr.msk.bf16.mxu0 %vm7405_vm1, %v5402_v15  ;;  %5410 = vmatprep.subr.msk.bf16.mxu1 %vm7405_vm1, %v5408_v17 }
 0x7c4   :  { %4762 = vmatprep.mubr.msk.f32.mxu0 %vm1538_vm3, %v2379_v34 }
 0x7c5   :  { %v5800_v5 = vpop.eup %5799  ;;  %4763 = vmatmul.mubr.msk.f32.vlgmr.msra.gmra.mrb[36].mxu0 %vm1538_vm3, %v2380_v3 }
 0x7c6   :  { %v5802_v24 = vpop.eup %5801  ;;  %v2382_v19 = vmul.f32 %v5800_v5, %v5794_v59  ;;  %5407 = vmatpush3.bf16.xpose.msk.msra.mxu0 %vm7405_vm1, %v5402_v15  ;;  %4776 = vmatprep.mubr.msk.f32.mxu0 %vm1351_vm0, %v2546_v13  ;;  %v2548_v21 = vpop.permute.xlu1 %2547 }
 0x7c7   :  { %v2381_v50 = vmul.f32 %v5802_v24, %v5792_v46 }
 0x7c9   :  { %4769 = vmatprep.mubr.msk.f32.mxu1 %vm1538_vm3, %v2381_v50 }
 0x7ca   :  { %4770 = vmatmul.mubr.msk.f32.vlgmr.msra.gmra.mrb[36].mxu1 %vm1538_vm3, %v2382_v19  ;;  %v2639_v41 = vpop.permute.xlu1 %2638 }
 0x7cb   :  { %5413 = vmatpush3.bf16.xpose.msk.msra.mxu1 %vm7405_vm1, %v5408_v17  ;;  %4783 = vmatprep.mubr.msk.f32.mxu1 %vm1351_vm0, %v2637_v7 }
 0x7cd   :  { %4777 = vmatmul.mubr.msk.f32.vlgmr.msra.gmra.mrb[38].mxu0 %vm1351_vm0, %v2548_v21 }
 0x7d2   :  { %4784 = vmatmul.mubr.msk.f32.vlgmr.msra.gmra.mrb[38].mxu1 %vm1351_vm0, %v2639_v41 }
 0x898   :  { %v7697_v63 = vpop.f32.mrb[36].mxu0 }
 0x899   :  { %v7699_v60 = vpop.f32.mrb[37].mxu0 }
 0x89d   :  { %v7701_v46 = vpop.f32.mrb[36].mxu1 }
 0x89e   :  { %v7703_v59 = vpop.f32.mrb[37].mxu1 }
 0x8a0   :  { %v4778_v29 = vpop.f32.mrb[38].mxu0 }
 0x8a1   :  { %v2728_v11 = vmul.f32 0.05103104, %v4778_v29  ;;  %v2627_v57 = vpop.f32.mrb[39].mxu0 }
 0x8a2   :  { %v2727_v42 = vmul.f32 0.05103104, %v2627_v57 }
 0x8a3   :  { %v2732_v55 = vsel %vm7535_vm4, %v2728_v11, -inf }
 0x8a4   :  { %v2738_v10 = vsel %vm1538_vm3, %v2732_v55, -inf  ;;  %v2731_v12 = vsel %vm7531_vm2, %v2727_v42, -inf }
 0x8a5   :  { %v4785_v43 = vpop.f32.mrb[38].mxu1  ;;  %2739 = vmax.xlane.f32.xlu1 %v2738_v10  ;;  %v2735_v53 = vsel %vm1538_vm3, %v2731_v12, -inf }
 0x8a6   :  { %v2718_v1 = vpop.f32.mrb[39].mxu1  ;;  %2736 = vmax.xlane.f32.xlu0 %v2735_v53  ;;  %v2730_v4 = vmul.f32 0.05103104, %v4785_v43  ;;  %v8379_v53 = vpack.i.bf16 %v7499_v51, %v7491_v44 }
 0x8a7   :  { %v2729_v32 = vmul.f32 0.05103104, %v2718_v1  ;;  %v8380_v1 = vpack.i.bf16 %v7481_v39, %v7473_v33 }
 0x8a8   :  { %v2734_v52 = vsel %vm7535_vm4, %v2730_v4, -inf }
 0x8a9   :  { %v2733_v35 = vsel %vm7531_vm2, %v2729_v32, -inf  ;;  %v2744_v61 = vsel %vm1538_vm3, %v2734_v52, -inf }
 0x8aa   :  { %v2741_v45 = vsel %vm1538_vm3, %v2733_v35, -inf }
 0x8ab   :  { %2742 = vmax.xlane.f32.xlu0 %v2741_v45 }
 0x8af   :  { %2745 = vmax.xlane.f32.xlu0 %v2744_v61 }
 0x932   :  { %v2740_v17 = vpop.xlane.xlu1 %2739 }
 0x933   :  { %v2748_v15 = vsub.f32 %v2732_v55, %v2740_v17  ;;  %v2737_v34 = vpop.xlane.xlu0 %2736 }
 0x934   :  { %v2747_v3 = vsub.f32 %v2731_v12, %v2737_v34 }
 0x935   :  { %v2753_v5 = vmul.f32 1.442695, %v2748_v15 }
 0x936   :  { %v2751_v13 = vmul.f32 1.442695, %v2747_v3 }
 0x937   :  { %5803 = vpow2.f32 %v2753_v5 }
 0x938   :  { %5805 = vpow2.f32 %v2751_v13  ;;  %v2743_v24 = vpop.xlane.xlu0 %2742 }
 0x939   :  { %v2749_v19 = vsub.f32 %v2733_v35, %v2743_v24 }
 0x93b   :  { %v2755_v50 = vmul.f32 1.442695, %v2749_v19 }
 0x93c   :  { %v2746_v7 = vpop.xlane.xlu0 %2745 }
 0x93d   :  { %5807 = vpow2.f32 %v2755_v50  ;;  %v2750_v21 = vsub.f32 %v2734_v52, %v2746_v7 }
 0x93f   :  { %v2757_v41 = vmul.f32 1.442695, %v2750_v21 }
 0x941   :  { %v5804_v29 = vpop.eup %5803  ;;  %5809 = vpow2.f32 %v2757_v41 }
 0x942   :  { %v5806_v11 = vpop.eup %5805  ;;  %v2762_v57 = vsel %vm1538_vm3, %v5804_v29, 0.0 }
 0x943   :  { %2763 = vadd.xlane.f32.xlu1 %v2762_v57  ;;  %v2759_v42 = vsel %vm1538_vm3, %v5806_v11, 0.0 }
 0x944   :  { %2760 = vadd.xlane.f32.xlu0 %v2759_v42 }
 0x947   :  { %v5808_v55 = vpop.eup %5807 }
 0x948   :  { %v2765_v10 = vsel %vm1538_vm3, %v5808_v55, 0.0 }
 0x949   :  { %2766 = vadd.xlane.f32.xlu0 %v2765_v10 }
 0x94b   :  { %v5810_v12 = vpop.eup %5809 }
 0x94c   :  { %v2768_v43 = vsel %vm1538_vm3, %v5810_v12, 0.0 }
 0x94d   :  { %2769 = vadd.xlane.f32.xlu1 %v2768_v43 }
 0x95e   :  { %5711 = vrot.lane.b32.xlu1 %v8379_v53, %s5888_s1 }
 0x95f   :  { %5706 = vrot.lane.b32.xlu0 %v8380_v1, %s5888_s1 }
 0x9d0   :  { %v2764_v4 = vpop.xlane.xlu1 %2763 }
 0x9d1   :  { %v2761_v32 = vpop.xlane.xlu0 %2760 }
 0x9d2   :  { %5811 = vrcp.f32 %v2761_v32 }
 0x9d3   :  { %5813 = vrcp.f32 %v2764_v4 }
 0x9d6   :  { %v2767_v35 = vpop.xlane.xlu0 %2766 }
 0x9d7   :  { %5815 = vrcp.f32 %v2767_v35 }
 0x9da   :  { %v2770_v45 = vpop.xlane.xlu1 %2769  ;;  %v5707_v52 = vpop.permute.xlu0 %5706 }
 0x9db   :  { %5817 = vrcp.f32 %v2770_v45  ;;  %v5709_v61 = vunpack.i.h.bf16 %v5707_v52  ;;  %v5708_v17 = vunpack.i.l.bf16 %v5707_v52 }
 0x9dc   :  { %v5812_v15 = vpop.eup %5811 }
 0x9dd   :  { %v5414_v34 = vpack.c.bf16 %v5709_v61, %v5708_v17  ;;  %v2775_v44 = vmul.f32 %v5812_v15, %v5806_v11  ;;  %v5814_v51 = vpop.eup %5813 }
 0x9de   :  { %v5712_v3 = vpop.permute.xlu1 %5711  ;;  %v2776_v39 = vmul.f32 %v5814_v51, %v5804_v29 }
 0x9df   :  { %v5714_v5 = vunpack.i.h.bf16 %v5712_v3  ;;  %v5713_v13 = vunpack.i.l.bf16 %v5712_v3  ;;  %5415 = vmatprep.subr.bf16.mxu0 %v5414_v34  ;;  %4790 = vmatprep.mubr.msk.f32.mxu0 %vm1538_vm3, %v2775_v44 }
 0x9e0   :  { %5417 = vmatpush3.bf16.msra.mxu0 %v5414_v34 }
 0x9e1   :  { %v5816_v33 = vpop.eup %5815  ;;  %v5418_v24 = vpack.c.bf16 %v5714_v5, %v5713_v13  ;;  %5424 = vmatprep.subr.msk.bf16.mxu0 %vm7405_vm1, %v7449_v9 }
 0x9e2   :  { %v2777_v19 = vmul.f32 %v5816_v33, %v5808_v55 }
 0x9e3   :  { %4791 = vmatmul.mubr.msk.f32.vlgmr.msra.gmra.mrb[40].mxu0 %vm1538_vm3, %v2776_v39  ;;  %5419 = vmatprep.subr.bf16.mxu1 %v5418_v24 }
 0x9e4   :  { %5421 = vmatpush3.bf16.msra.mxu1 %v5418_v24  ;;  %4797 = vmatprep.mubr.msk.f32.mxu1 %vm1538_vm3, %v2777_v19 }
 0x9e5   :  { %v5818_v50 = vpop.eup %5817  ;;  %4804 = vmatprep.mubr.msk.f32.mxu0 %vm1351_vm0, %v7395_v54  ;;  %5430 = vmatprep.subr.msk.bf16.mxu1 %vm7405_vm1, %v7469_v16 }
 0x9e6   :  { %v2778_v7 = vmul.f32 %v5818_v50, %v5810_v12 }
 0x9e8   :  { %4798 = vmatmul.mubr.msk.f32.vlgmr.msra.gmra.mrb[40].mxu1 %vm1538_vm3, %v2778_v7 }
 0x9e9   :  { %5427 = vmatpush3.bf16.xpose.msk.msra.mxu0 %vm7405_vm1, %v7449_v9  ;;  %4811 = vmatprep.mubr.msk.f32.mxu1 %vm1351_vm0, %v7413_v26 }
 0x9ea   :  { %5435 = vmatprep.subr.bf16.mxu0 %v7515_v49 }
 0x9ed   :  { %5433 = vmatpush3.bf16.xpose.msk.msra.mxu1 %vm7405_vm1, %v7469_v16 }
 0x9ee   :  { %5439 = vmatprep.subr.bf16.mxu1 %v7525_v20 }
 0x9f0   :  { %4805 = vmatmul.mubr.msk.f32.vlgmr.msra.gmra.mrb[42].mxu0 %vm1351_vm0, %v7399_v22 }
 0x9f1   :  { %5437 = vmatpush3.bf16.msra.mxu0 %v7515_v49 }
 0x9f4   :  { %4812 = vmatmul.mubr.msk.f32.vlgmr.msra.gmra.mrb[42].mxu1 %vm1351_vm0, %v7419_v62 }
 0x9f5   :  { %5441 = vmatpush3.bf16.msra.mxu1 %v7525_v20 }
 0xab6   :  { %v7757_v9 = vpop.f32.mrb[40].mxu0 }
 0xab7   :  { %v5740_v21 = vpack.i.bf16 %v7641_v37, %v7757_v9  ;;  %v7761_v41 = vpop.f32.mrb[41].mxu0  ;;  %v3821_v37 = vld [vmem:[%s8365_s2 + $0x20] sm:$0xff] }
 0xab8   :  { %v5735_v16 = vpack.i.bf16 %v7643_v14, %v7761_v41 }
 0xabb   :  { %v7765_v29 = vpop.f32.mrb[40].mxu1 }
 0xabc   :  { %v5750_v49 = vpack.i.bf16 %v7645_v25, %v7765_v29  ;;  %v7769_v11 = vpop.f32.mrb[41].mxu1  ;;  %v3817_v29 = vld [vmem:[%s8365_s2] sm:$0xff] }
 0xabd   :  { %v5745_v20 = vpack.i.bf16 %v7647_v36, %v7769_v11  ;;  %v3818_v36 = vld [vmem:[%s8365_s2 + $0x8] sm:$0xff] }
 0xac3   :  { %v4806_v57 = vpop.f32.mrb[42].mxu0 }
 0xac4   :  { %v3132_v42 = vmul.f32 0.05103104, %v4806_v57  ;;  %v3035_v55 = vpop.f32.mrb[43].mxu0 }
 0xac5   :  { %v3131_v10 = vmul.f32 0.05103104, %v3035_v55 }
 0xac6   :  { %v3136_v12 = vsel %vm7535_vm4, %v3132_v42, -inf }
 0xac7   :  { %v4813_v43 = vpop.f32.mrb[42].mxu1  ;;  %v3142_v53 = vsel %vm1538_vm3, %v3136_v12, -inf  ;;  %v3135_v1 = vsel %vm7531_vm2, %v3131_v10, -inf }
 0xac8   :  { %v3134_v4 = vmul.f32 0.05103104, %v4813_v43  ;;  %v3122_v32 = vpop.f32.mrb[43].mxu1  ;;  %3143 = vmax.xlane.f32.xlu0 %v3142_v53  ;;  %v3139_v35 = vsel %vm1538_vm3, %v3135_v1, -inf }
 0xac9   :  { %v3133_v45 = vmul.f32 0.05103104, %v3122_v32  ;;  %3140 = vmax.xlane.f32.xlu1 %v3139_v35  ;;  %v8382_v32 = vpack.i.bf16 %v7443_v8, %v7433_v2 }
 0xaca   :  { %v3138_v52 = vsel %vm7535_vm4, %v3134_v4, -inf  ;;  %v8381_v4 = vpack.i.bf16 %v7463_v48, %v7453_v38 }
 0xacb   :  { %v3137_v61 = vsel %vm7531_vm2, %v3133_v45, -inf  ;;  %v3148_v17 = vsel %vm1538_vm3, %v3138_v52, -inf }
 0xacc   :  { %v3145_v15 = vsel %vm1538_vm3, %v3137_v61, -inf }
 0xacd   :  { %3146 = vmax.xlane.f32.xlu0 %v3145_v15  ;;  %3149 = vmax.xlane.f32.xlu1 %v3148_v17 }
 0xb55   :  { %v3144_v34 = vpop.xlane.xlu0 %3143 }
 0xb56   :  { %v3152_v44 = vsub.f32 %v3136_v12, %v3144_v34  ;;  %v3141_v51 = vpop.xlane.xlu1 %3140 }
 0xb57   :  { %v3151_v3 = vsub.f32 %v3135_v1, %v3141_v51 }
 0xb58   :  { %v3157_v5 = vmul.f32 1.442695, %v3152_v44 }
 0xb59   :  { %v3155_v13 = vmul.f32 1.442695, %v3151_v3 }
 0xb5a   :  { %5819 = vpow2.f32 %v3157_v5  ;;  %v3147_v33 = vpop.xlane.xlu0 %3146  ;;  %v3150_v39 = vpop.xlane.xlu1 %3149 }
 0xb5b   :  { %5821 = vpow2.f32 %v3155_v13  ;;  %v3153_v24 = vsub.f32 %v3137_v61, %v3147_v33  ;;  %v3154_v19 = vsub.f32 %v3138_v52, %v3150_v39 }
 0xb5d   :  { %v3159_v50 = vmul.f32 1.442695, %v3153_v24  ;;  %v3161_v7 = vmul.f32 1.442695, %v3154_v19 }
 0xb5f   :  { %5823 = vpow2.f32 %v3159_v50 }
 0xb60   :  { %5825 = vpow2.f32 %v3161_v7 }
 0xb64   :  { %v5820_v57 = vpop.eup %5819 }
 0xb65   :  { %v5822_v42 = vpop.eup %5821  ;;  %v3166_v55 = vsel %vm1538_vm3, %v5820_v57, 0.0 }
 0xb66   :  { %3167 = vadd.xlane.f32.xlu1 %v3166_v55  ;;  %v3163_v10 = vsel %vm1538_vm3, %v5822_v42, 0.0 }
 0xb67   :  { %3164 = vadd.xlane.f32.xlu0 %v3163_v10 }
 0xb69   :  { %v5824_v12 = vpop.eup %5823 }
 0xb6a   :  { %v5826_v43 = vpop.eup %5825  ;;  %v3169_v53 = vsel %vm1538_vm3, %v5824_v12, 0.0 }
 0xb6b   :  { %3170 = vadd.xlane.f32.xlu0 %v3169_v53  ;;  %v3172_v1 = vsel %vm1538_vm3, %v5826_v43, 0.0 }
 0xb6c   :  { %3173 = vadd.xlane.f32.xlu1 %v3172_v1 }
 0xb7d   :  { %5721 = vrot.lane.b32.xlu1 %v8381_v4, %s5888_s1 }
 0xb81   :  { %3345 = vrot.lane.b32.xlu1 %v7395_v54, %s5888_s1  ;;  %5716 = vrot.lane.b32.xlu0 %v8382_v32, %s5888_s1 }
 0xb85   :  { %3347 = vrot.lane.b32.xlu1 %v7399_v22, %s5888_s1  ;;  %3436 = vrot.lane.b32.xlu0 %v7413_v26, %s5888_s1 }
 0xb89   :  { %3438 = vrot.lane.b32.xlu1 %v7419_v62, %s5888_s1 }
 0xbf3   :  { %v3168_v35 = vpop.xlane.xlu1 %3167 }
 0xbf4   :  { %5827 = vrcp.f32 %v3168_v35  ;;  %v3165_v38 = vpop.xlane.xlu0 %3164 }
 0xbf5   :  { %5829 = vrcp.f32 %v3165_v38 }
 0xbf8   :  { %v3171_v48 = vpop.xlane.xlu0 %3170 }
 0xbf9   :  { %5831 = vrcp.f32 %v3171_v48  ;;  %v3174_v54 = vpop.xlane.xlu1 %3173 }
 0xbfa   :  { %5833 = vrcp.f32 %v3174_v54 }
 0xbfc   :  { %v5717_v45 = vpop.permute.xlu0 %5716 }
 0xbfd   :  { %v5719_v2 = vunpack.i.h.bf16 %v5717_v45  ;;  %v5718_v8 = vunpack.i.l.bf16 %v5717_v45  ;;  %v5722_v52 = vpop.permute.xlu1 %5721 }
 0xbfe   :  { %v5828_v61 = vpop.eup %5827  ;;  %v5724_v22 = vunpack.i.h.bf16 %v5722_v52  ;;  %v5723_v17 = vunpack.i.l.bf16 %v5722_v52 }
 0xbff   :  { %v5830_v15 = vpop.eup %5829  ;;  %v5442_v26 = vpack.c.bf16 %v5719_v2, %v5718_v8  ;;  %v3180_v62 = vmul.f32 %v5828_v61, %v5820_v57 }
 0xc00   :  { %v5448_v34 = vpack.c.bf16 %v5724_v22, %v5723_v17  ;;  %v3179_v44 = vmul.f32 %v5830_v15, %v5822_v42  ;;  %v3437_v39 = vpop.permute.xlu0 %3436 }
 0xc01   :  { %5444 = vmatprep.subr.msk.bf16.mxu0 %vm7405_vm1, %v5442_v26  ;;  %v3346_v51 = vpop.permute.xlu1 %3345 }
 0xc02   :  { %5450 = vmatprep.subr.msk.bf16.mxu1 %vm7405_vm1, %v5448_v34  ;;  %4818 = vmatprep.mubr.msk.f32.mxu0 %vm1538_vm3, %v3179_v44 }
 0xc03   :  { %v5832_v3 = vpop.eup %5831  ;;  %4819 = vmatmul.mubr.msk.f32.vlgmr.msra.gmra.mrb[44].mxu0 %vm1538_vm3, %v3180_v62 }
 0xc04   :  { %v5834_v5 = vpop.eup %5833  ;;  %5447 = vmatpush3.bf16.xpose.msk.msra.mxu0 %vm7405_vm1, %v5442_v26  ;;  %4832 = vmatprep.mubr.msk.f32.mxu0 %vm1351_vm0, %v3346_v51  ;;  %v3181_v13 = vmul.f32 %v5832_v3, %v5824_v12 }
 0xc05   :  { %v3182_v33 = vmul.f32 %v5834_v5, %v5826_v43  ;;  %v3348_v24 = vpop.permute.xlu1 %3347 }
 0xc06   :  { %4825 = vmatprep.mubr.msk.f32.mxu1 %vm1538_vm3, %v3181_v13 }
 0xc07   :  { %4826 = vmatmul.mubr.msk.f32.vlgmr.msra.gmra.mrb[44].mxu1 %vm1538_vm3, %v3182_v33 }
 0xc08   :  { %5453 = vmatpush3.bf16.xpose.msk.msra.mxu1 %vm7405_vm1, %v5448_v34  ;;  %4839 = vmatprep.mubr.msk.f32.mxu1 %vm1351_vm0, %v3437_v39 }
 0xc09   :  { %v3439_v19 = vpop.permute.xlu1 %3438 }
 0xc0b   :  { %4833 = vmatmul.mubr.msk.f32.vlgmr.msra.gmra.mrb[46].mxu0 %vm1351_vm0, %v3348_v24 }
 0xc0f   :  { %4840 = vmatmul.mubr.msk.f32.vlgmr.msra.gmra.mrb[46].mxu1 %vm1351_vm0, %v3439_v19 }
 0xcd6   :  { %v7821_v50 = vpop.f32.mrb[44].mxu0 }
 0xcd7   :  { %v7823_v7 = vpop.f32.mrb[45].mxu0 }
 0xcda   :  { %v7825_v57 = vpop.f32.mrb[44].mxu1 }
 0xcdb   :  { %v7827_v42 = vpop.f32.mrb[45].mxu1 }
 0xcde   :  { %v4834_v55 = vpop.f32.mrb[46].mxu0 }
 0xcdf   :  { %v3528_v10 = vmul.f32 0.05103104, %v4834_v55  ;;  %v3427_v12 = vpop.f32.mrb[47].mxu0 }
 0xce0   :  { %v3527_v58 = vmul.f32 0.05103104, %v3427_v12  ;;  %v8384_v12 = vpack.i.bf16 %v7507_v28, %v7509_v0 }
 0xce1   :  { %v3532_v43 = vsel %vm7535_vm4, %v3528_v10, -inf  ;;  %v8383_v10 = vpack.i.bf16 %v7517_v23, %v7519_v27 }
 0xce2   :  { %v4841_v53 = vpop.f32.mrb[46].mxu1  ;;  %v3538_v1 = vsel %vm1538_vm3, %v3532_v43, -inf  ;;  %v3531_v4 = vsel %vm7531_vm2, %v3527_v58, -inf  ;;  %v3820_v58 = vld [vmem:[%s8365_s2 + $0x18] sm:$0xff] }
 0xce3   :  { %3539 = vmax.xlane.f32.xlu1 %v3538_v1  ;;  %v3518_v32 = vpop.f32.mrb[47].mxu1  ;;  %v3535_v35 = vsel %vm1538_vm3, %v3531_v4, -inf  ;;  %v3530_v38 = vmul.f32 0.05103104, %v4841_v53  ;;  %v3870_v53 = vld [vmem:[%s8365_s2 + $0x1a8] sm:$0xff] }
 0xce4   :  { %v3529_v48 = vmul.f32 0.05103104, %v3518_v32  ;;  %3536 = vmax.xlane.f32.xlu0 %v3535_v35  ;;  %v3824_v32 = vld [vmem:[%s8365_s2 + $0x38] sm:$0xff]  ;;  %v3827_v35 = vld [vmem:[%s8365_s2 + $0x50] sm:$0xff] }
 0xce5   :  { %v3534_v2 = vsel %vm7535_vm4, %v3530_v38, -inf }
 0xce6   :  { %v3533_v54 = vsel %vm7531_vm2, %v3529_v48, -inf  ;;  %v3544_v8 = vsel %vm1538_vm3, %v3534_v2, -inf }
 0xce7   :  { %v3541_v45 = vsel %vm1538_vm3, %v3533_v54, -inf }
 0xce8   :  { %3542 = vmax.xlane.f32.xlu0 %v3541_v45  ;;  %v5464_v45 = vpack.c.bf16 %v3820_v58, %v3817_v29  ;;  %v3845_v29 = vld [vmem:[%s8365_s2 + $0xe0] sm:$0xff] }
 0xcec   :  { %3545 = vmax.xlane.f32.xlu0 %v3544_v8  ;;  %v3823_v8 = vld [vmem:[%s8365_s2 + $0x30] sm:$0xff] }
 0xd70   :  { %v3540_v52 = vpop.xlane.xlu1 %3539 }
 0xd71   :  { %v3548_v61 = vsub.f32 %v3532_v43, %v3540_v52  ;;  %v3537_v22 = vpop.xlane.xlu0 %3536  ;;  %v3867_v43 = vld [vmem:[%s8365_s2 + $0x190] sm:$0xff] }
 0xd72   :  { %v3547_v17 = vsub.f32 %v3531_v4, %v3537_v22  ;;  %v5466_v22 = vpack.c.bf16 %v3827_v35, %v3824_v32  ;;  %v3837_v32 = vld [vmem:[%s8365_s2 + $0xa0] sm:$0xff]  ;;  %v3840_v35 = vld [vmem:[%s8365_s2 + $0xb8] sm:$0xff] }
 0xd73   :  { %v3553_v15 = vmul.f32 1.442695, %v3548_v61 }
 0xd74   :  { %v3551_v26 = vmul.f32 1.442695, %v3547_v17  ;;  %v3826_v17 = vld [vmem:[%s8365_s2 + $0x48] sm:$0xff] }
 0xd75   :  { %5835 = vpow2.f32 %v3553_v15  ;;  %v3543_v34 = vpop.xlane.xlu0 %3542  ;;  %v3819_v15 = vld [vmem:[%s8365_s2 + $0x10] sm:$0xff] }
 0xd76   :  { %5837 = vpow2.f32 %v3551_v26  ;;  %v3549_v31 = vsub.f32 %v3533_v54, %v3543_v34  ;;  %v3822_v26 = vld [vmem:[%s8365_s2 + $0x28] sm:$0xff] }
 0xd78   :  { %v3555_v44 = vmul.f32 1.442695, %v3549_v31  ;;  %v3830_v31 = vld [vmem:[%s8365_s2 + $0x68] sm:$0xff] }
 0xd79   :  { %v3546_v62 = vpop.xlane.xlu0 %3545 }
 0xd7a   :  { %5839 = vpow2.f32 %v3555_v44  ;;  %v3550_v51 = vsub.f32 %v3534_v2, %v3546_v62  ;;  %v5558_v2 = vpack.c.bf16 %v3870_v53, %v3867_v43  ;;  %v3833_v44 = vld [vmem:[%s8365_s2 + $0x80] sm:$0xff]  ;;  %v3844_v53 = vld [vmem:[%s8365_s2 + $0xd8] sm:$0xff] }
 0xd7b   :  { %v3873_v62 = vld [vmem:[%s8365_s2 + $0x1c0] sm:$0xff] }
 0xd7c   :  { %v3557_v3 = vmul.f32 1.442695, %v3550_v51  ;;  %v3876_v51 = vld [vmem:[%s8365_s2 + $0x1d8] sm:$0xff]  ;;  %v3841_v43 = vld [vmem:[%s8365_s2 + $0xc0] sm:$0xff] }
 0xd7e   :  { %5841 = vpow2.f32 %v3557_v3 }
 0xd7f   :  { %v5836_v47 = vpop.eup %5835 }
 0xd80   :  { %v5838_v5 = vpop.eup %5837  ;;  %v3562_v13 = vsel %vm1538_vm3, %v5836_v47, 0.0 }
 0xd81   :  { %3563 = vadd.xlane.f32.xlu1 %v3562_v13  ;;  %v3559_v33 = vsel %vm1538_vm3, %v5838_v5, 0.0  ;;  %v5560_v13 = vpack.c.bf16 %v3822_v26, %v3819_v15  ;;  %v3843_v26 = vld [vmem:[%s8365_s2 + $0xd0] sm:$0xff] }
 0xd82   :  { %3560 = vadd.xlane.f32.xlu0 %v3559_v33  ;;  %v3829_v33 = vld [vmem:[%s8365_s2 + $0x60] sm:$0xff] }
 0xd84   :  { %v5840_v39 = vpop.eup %5839 }
 0xd85   :  { %v3565_v24 = vsel %vm1538_vm3, %v5840_v39, 0.0 }
 0xd86   :  { %3566 = vadd.xlane.f32.xlu0 %v3565_v24 }
 0xd88   :  { %v7844_v19 = vpop.eup %5841 }
 0xd89   :  { %v3568_v55 = vsel %vm1538_vm3, %v7844_v19, 0.0 }
 0xd8a   :  { %3569 = vadd.xlane.f32.xlu1 %v3568_v55  ;;  %v5470_v55 = vpack.c.bf16 %v3833_v44, %v3830_v31  ;;  %v3854_v31 = vld [vmem:[%s8365_s2 + $0x128] sm:$0xff]  ;;  %v3857_v44 = vld [vmem:[%s8365_s2 + $0x140] sm:$0xff] }
 0xd9b   :  { %5731 = vrot.lane.b32.xlu1 %v8383_v10, %s5888_s1  ;;  %v3828_v10 = vld [vmem:[%s8365_s2 + $0x58] sm:$0xff] }
 0xd9c   :  { %5726 = vrot.lane.b32.xlu0 %v8384_v12, %s5888_s1  ;;  %v3836_v12 = vld [vmem:[%s8365_s2 + $0x98] sm:$0xff] }
 0xd9f   :  { %5736 = vrot.lane.b32.xlu1 %v5735_v16, %s5888_s1  ;;  %v5462_v16 = vpack.c.bf16 %v3821_v37, %v3818_v36  ;;  %v3835_v36 = vld [vmem:[%s8365_s2 + $0x90] sm:$0xff]  ;;  %v3838_v37 = vld [vmem:[%s8365_s2 + $0xa8] sm:$0xff] }
 0xda0   :  { %5746 = vrot.lane.b32.xlu0 %v5745_v20, %s5888_s1 }
 0xda3   :  { %5741 = vrot.lane.b32.xlu1 %v5740_v21, %s5888_s1 }
 0xda7   :  { %5751 = vrot.lane.b32.xlu1 %v5750_v49, %s5888_s1 }
 0xe0e   :  { %v3564_v28 = vpop.xlane.xlu1 %3563 }
 0xe0f   :  { %v3561_v0 = vpop.xlane.xlu0 %3560 }
 0xe10   :  { %5843 = vrcp.f32 %v3561_v0  ;;  %v3879_v0 = vld [vmem:[%s8365_s2 + $0x1f0] sm:$0xff] }
 0xe11   :  { %5845 = vrcp.f32 %v3564_v28  ;;  %v5562_v28 = vpack.c.bf16 %v3876_v51, %v3873_v62  ;;  %v3897_v62 = vld [vmem:[%s8365_s2 + $0x280] sm:$0xff]  ;;  %v3900_v51 = vld [vmem:[%s8365_s2 + $0x298] sm:$0xff] }
 0xe13   :  { %v3567_v23 = vpop.xlane.xlu0 %3566 }
 0xe14   :  { %5847 = vrcp.f32 %v3567_v23  ;;  %v3882_v23 = vld [vmem:[%s8365_s2 + $0x208] sm:$0xff] }
 0xe17   :  { %v3570_v27 = vpop.xlane.xlu1 %3569  ;;  %v5727_v14 = vpop.permute.xlu0 %5726 }
 0xe18   :  { %5849 = vrcp.f32 %v3570_v27  ;;  %v5729_v9 = vunpack.i.h.bf16 %v5727_v14  ;;  %v5728_v25 = vunpack.i.l.bf16 %v5727_v14 }
 0xe1a   :  { %v5844_v21 = vpop.eup %5843  ;;  %v5454_v41 = vpack.c.bf16 %v5729_v9, %v5728_v25  ;;  %v5566_v25 = vpack.c.bf16 %v3882_v23, %v3879_v0  ;;  %v3859_v23 = vld [vmem:[%s8365_s2 + $0x150] sm:$0xff] }
 0xe1b   :  { %v5846_v49 = vpop.eup %5845  ;;  %v5732_v11 = vpop.permute.xlu1 %5731  ;;  %v3575_v20 = vmul.f32 %v5844_v21, %v5838_v5  ;;  %v5468_v5 = vpack.c.bf16 %v3826_v17, %v3823_v8  ;;  %v3831_v21 = vld [vmem:[%s8365_s2 + $0x70] sm:$0xff]  ;;  %v5572_v8 = vpack.c.bf16 %v3840_v35, %v3837_v32 }
 0xe1c   :  { %v5734_v1 = vunpack.i.h.bf16 %v5732_v11  ;;  %v5733_v4 = vunpack.i.l.bf16 %v5732_v11  ;;  %5455 = vmatprep.subr.bf16.mxu0 %v5454_v41  ;;  %v3576_v48 = vmul.f32 %v5846_v49, %v5836_v47  ;;  %v3885_v49 = vld [vmem:[%s8365_s2 + $0x220] sm:$0xff]  ;;  %v3888_v11 = vld [vmem:[%s8365_s2 + $0x238] sm:$0xff]  ;;  %v3875_v32 = vld [vmem:[%s8365_s2 + $0x1d0] sm:$0xff] }
 0xe1d   :  { %5457 = vmatpush3.bf16.msra.mxu0 %v5454_v41  ;;  %4846 = vmatprep.mubr.msk.f32.mxu0 %vm1538_vm3, %v3575_v20  ;;  %v3834_v41 = vld [vmem:[%s8365_s2 + $0x88] sm:$0xff]  ;;  %v5476_v20 = vpack.c.bf16 %v3838_v37, %v3835_v36  ;;  %v3855_v37 = vld [vmem:[%s8365_s2 + $0x130] sm:$0xff] }
 0xe1e   :  { %v5848_v38 = vpop.eup %5847  ;;  %v5458_v54 = vpack.c.bf16 %v5734_v1, %v5733_v4  ;;  %5463 = vmatprep.subr.bf16.mxu0 %v5462_v16  ;;  %v3842_v16 = vld [vmem:[%s8365_s2 + $0xc8] sm:$0xff]  ;;  %v5568_v58 = vpack.c.bf16 %v3834_v41, %v3831_v21  ;;  %v5570_v4 = vpack.c.bf16 %v3888_v11, %v3885_v49  ;;  %v3869_v21 = vld [vmem:[%s8365_s2 + $0x1a0] sm:$0xff] }
 0xe1f   :  { %v7900_v52 = vpop.permute.xlu1 %5736  ;;  %v3577_v61 = vmul.f32 %v5848_v38, %v5840_v39  ;;  %v3832_v39 = vld [vmem:[%s8365_s2 + $0x78] sm:$0xff]  ;;  %v5478_v1 = vpack.c.bf16 %v3845_v29, %v3842_v16  ;;  %v3909_v41 = vld [vmem:[%s8365_s2 + $0x2e0] sm:$0xff] }
 0xe20   :  { %v5738_v34 = vunpack.i.l.bf16 %v7900_v52  ;;  %4847 = vmatmul.mubr.msk.f32.vlgmr.msra.gmra.mrb[48].mxu0 %vm1538_vm3, %v3576_v48  ;;  %5459 = vmatprep.subr.bf16.mxu1 %v5458_v54  ;;  %v5472_v27 = vpack.c.bf16 %v3832_v39, %v3829_v33  ;;  %v3848_v38 = vld [vmem:[%s8365_s2 + $0xf8] sm:$0xff]  ;;  %v3851_v48 = vld [vmem:[%s8365_s2 + $0x110] sm:$0xff]  ;;  %v5486_v33 = vpack.c.bf16 %v3857_v44, %v3854_v31  ;;  %v5578_v39 = vpack.c.bf16 %v3900_v51, %v3897_v62  ;;  %v3865_v11 = vld [vmem:[%s8365_s2 + $0x180] sm:$0xff] }
 0xe21   :  { %5461 = vmatpush3.bf16.msra.mxu1 %v5458_v54  ;;  %4853 = vmatprep.mubr.msk.f32.mxu1 %vm1538_vm3, %v3577_v61  ;;  %v3891_v54 = vld [vmem:[%s8365_s2 + $0x250] sm:$0xff]  ;;  %v5482_v17 = vpack.c.bf16 %v3851_v48, %v3848_v38  ;;  %v3912_v16 = vld [vmem:[%s8365_s2 + $0x2f8] sm:$0xff]  ;;  %v3877_v31 = vld [vmem:[%s8365_s2 + $0x1e0] sm:$0xff] }
 0xe22   :  { %v5850_v3 = vpop.eup %5849  ;;  %5465 = vmatpush1.bf16.msra.mxu0 %v5464_v45  ;;  %v3809_v47 = vsel %vm1351_vm0, %v7699_v60, %v5738_v34  ;;  %5559 = vmatprep.subr.bf16.mxu1 %v5558_v2  ;;  %v3825_v60 = vld [vmem:[%s8365_s2 + $0x40] sm:$0xff]  ;;  %v3894_v45 = vld [vmem:[%s8365_s2 + $0x268] sm:$0xff]  ;;  %v5480_v2 = vpack.c.bf16 %v3844_v53, %v3841_v43  ;;  %v3847_v61 = vld [vmem:[%s8365_s2 + $0xf0] sm:$0xff] }
 0xe23   :  { %v3578_v24 = vmul.f32 %v5850_v3, %v7844_v19  ;;  %4042 = vmatprep.mubr.f32.mxu0 %v3809_v47  ;;  %5467 = vmatprep.subr.bf16.mxu0 %v5466_v22  ;;  %v3839_v19 = vld [vmem:[%s8365_s2 + $0xb0] sm:$0xff]  ;;  %v5564_v14 = vpack.c.bf16 %v3828_v10, %v3825_v60  ;;  %v3850_v22 = vld [vmem:[%s8365_s2 + $0x108] sm:$0xff]  ;;  %v5574_v15 = vpack.c.bf16 %v3894_v45, %v3891_v54  ;;  %v3860_v60 = vld [vmem:[%s8365_s2 + $0x158] sm:$0xff]  ;;  %v5742_v35 = vpop.permute.xlu1 %5741 }
 0xe24   :  { %v5474_v9 = vpack.c.bf16 %v3839_v19, %v3836_v12  ;;  %v3846_v34 = vld [vmem:[%s8365_s2 + $0xe8] sm:$0xff]  ;;  %v5484_v3 = vpack.c.bf16 %v3850_v22, %v3847_v61  ;;  %v3863_v10 = vld [vmem:[%s8365_s2 + $0x170] sm:$0xff]  ;;  %v3868_v43 = vld [vmem:[%s8365_s2 + $0x198] sm:$0xff]  ;;  %v5744_v44 = vunpack.i.h.bf16 %v5742_v35 }
 0xe25   :  { %4854 = vmatmul.mubr.msk.f32.vlgmr.msra.gmra.mrb[48].mxu1 %vm1538_vm3, %v3578_v24  ;;  %v3849_v24 = vld [vmem:[%s8365_s2 + $0x100] sm:$0xff]  ;;  %v3903_v12 = vld [vmem:[%s8365_s2 + $0x2b0] sm:$0xff]  ;;  %v5496_v38 = vpack.c.bf16 %v3868_v43, %v3865_v11  ;;  %v3878_v61 = vld [vmem:[%s8365_s2 + $0x1e8] sm:$0xff] }
 0xe26   :  { %5469 = vmatpush1.bf16.msra.mxu0 %v5468_v5  ;;  %5561 = vmatpush3.bf16.msra.mxu1 %v5560_v13  ;;  %v3853_v5 = vld [vmem:[%s8365_s2 + $0x120] sm:$0xff]  ;;  %v3856_v13 = vld [vmem:[%s8365_s2 + $0x138] sm:$0xff]  ;;  %v3871_v45 = vld [vmem:[%s8365_s2 + $0x1b0] sm:$0xff] }
 0xe27   :  { %4220 = vmatprep.mubr.f32.mxu1 %v3809_v47  ;;  %5471 = vmatprep.subr.bf16.mxu0 %v5470_v55  ;;  %v5576_v47 = vpack.c.bf16 %v3846_v34, %v3843_v26  ;;  %v3852_v55 = vld [vmem:[%s8365_s2 + $0x118] sm:$0xff]  ;;  %v5488_v19 = vpack.c.bf16 %v3856_v13, %v3853_v5  ;;  %v3861_v53 = vld [vmem:[%s8365_s2 + $0x160] sm:$0xff]  ;;  %v5752_v13 = vpop.permute.xlu1 %5751 }
 0xe28   :  { %5563 = vmatprep.subr.bf16.mxu1 %v5562_v28  ;;  %v3906_v28 = vld [vmem:[%s8365_s2 + $0x2c8] sm:$0xff]  ;;  %v5580_v0 = vpack.c.bf16 %v3852_v55, %v3849_v24  ;;  %v3881_v22 = vld [vmem:[%s8365_s2 + $0x200] sm:$0xff]  ;;  %v3884_v51 = vld [vmem:[%s8365_s2 + $0x218] sm:$0xff] }
 0xe29   :  { %v5582_v36 = vpack.c.bf16 %v3906_v28, %v3903_v12  ;;  %v5502_v34 = vpack.c.bf16 %v3881_v22, %v3878_v61  ;;  %v3886_v24 = vld [vmem:[%s8365_s2 + $0x228] sm:$0xff]  ;;  %v5753_v12 = vunpack.i.l.bf16 %v5752_v13  ;;  %v3901_v11 = vld [vmem:[%s8365_s2 + $0x2a0] sm:$0xff] }
 0xe2a   :  { %5473 = vmatpush1.bf16.msra.mxu0 %v5472_v27  ;;  %5565 = vmatpush3.bf16.msra.mxu1 %v5564_v14  ;;  %v3862_v27 = vld [vmem:[%s8365_s2 + $0x168] sm:$0xff]  ;;  %v5490_v14 = vpack.c.bf16 %v3863_v10, %v3860_v60  ;;  %v3806_v60 = vsel %vm1351_vm0, %v7577_v40, %v5744_v44  ;;  %v3893_v10 = vld [vmem:[%s8365_s2 + $0x260] sm:$0xff] }
 0xe2b   :  { %5475 = vmatprep.subr.bf16.mxu0 %v5474_v9  ;;  %5567 = vmatprep.subr.bf16.mxu1 %v5566_v25  ;;  %v3858_v9 = vld [vmem:[%s8365_s2 + $0x148] sm:$0xff]  ;;  %v5492_v29 = vpack.c.bf16 %v3862_v27, %v3859_v23  ;;  %v3889_v40 = vld [vmem:[%s8365_s2 + $0x240] sm:$0xff]  ;;  %v3892_v23 = vld [vmem:[%s8365_s2 + $0x258] sm:$0xff]  ;;  %v5754_v27 = vunpack.i.h.bf16 %v5752_v13 }
 0xe2c   :  { %v3866_v25 = vld [vmem:[%s8365_s2 + $0x188] sm:$0xff]  ;;  %v5584_v49 = vpack.c.bf16 %v3858_v9, %v3855_v37  ;;  %v3812_v37 = vsel %vm1351_vm0, %v7701_v46, %v5753_v12  ;;  %v5512_v9 = vpack.c.bf16 %v3892_v23, %v3889_v40  ;;  %v3921_v44 = vld [vmem:[%s8365_s2 + $0x340] sm:$0xff]  ;;  %v3936_v12 = vld [vmem:[%s8365_s2 + $0x3b8] sm:$0xff] }
 0xe2d   :  { %v3902_v46 = vld [vmem:[%s8365_s2 + $0x2a8] sm:$0xff]  ;;  %v3925_v13 = vld [vmem:[%s8365_s2 + $0x360] sm:$0xff] }
 0xe2e   :  { %5477 = vmatpush1.bf16.msra.mxu0 %v5476_v20  ;;  %5569 = vmatpush3.bf16.msra.mxu1 %v5568_v58  ;;  %v5494_v20 = vpack.c.bf16 %v3869_v21, %v3866_v25  ;;  %v5586_v58 = vpack.c.bf16 %v3912_v16, %v3909_v41  ;;  %v3898_v21 = vld [vmem:[%s8365_s2 + $0x288] sm:$0xff]  ;;  %v3808_v41 = vsel %vm1351_vm0, %v7637_v56, %v5754_v27  ;;  %v3905_v16 = vld [vmem:[%s8365_s2 + $0x2c0] sm:$0xff]  ;;  %v3904_v56 = vld [vmem:[%s8365_s2 + $0x2b8] sm:$0xff] }
 0xe2f   :  { %5479 = vmatprep.subr.bf16.mxu0 %v5478_v1  ;;  %5571 = vmatprep.subr.bf16.mxu1 %v5570_v4  ;;  %v3864_v1 = vld [vmem:[%s8365_s2 + $0x178] sm:$0xff]  ;;  %v5520_v43 = vpack.c.bf16 %v3904_v56, %v3901_v11  ;;  %v3918_v61 = vld [vmem:[%s8365_s2 + $0x328] sm:$0xff]  ;;  %v3943_v56 = vld [vmem:[%s8365_s2 + $0x3f0] sm:$0xff] }
 0xe30   :  { %v3872_v4 = vld [vmem:[%s8365_s2 + $0x1b8] sm:$0xff]  ;;  %v5588_v48 = vpack.c.bf16 %v3864_v1, %v3861_v53  ;;  %v3907_v1 = vld [vmem:[%s8365_s2 + $0x2d0] sm:$0xff]  ;;  %v3934_v40 = vld [vmem:[%s8365_s2 + $0x3a8] sm:$0xff] }
 0xe31   :  { %v5498_v54 = vpack.c.bf16 %v3875_v32, %v3872_v4  ;;  %v3910_v4 = vld [vmem:[%s8365_s2 + $0x2e8] sm:$0xff] }
 0xe32   :  { %5481 = vmatpush1.bf16.msra.mxu0 %v5480_v2  ;;  %5573 = vmatpush3.bf16.msra.mxu1 %v5572_v8  ;;  %v3874_v2 = vld [vmem:[%s8365_s2 + $0x1c8] sm:$0xff]  ;;  %v5739_v8 = vunpack.i.h.bf16 %v7900_v52  ;;  %v3880_v52 = vld [vmem:[%s8365_s2 + $0x1f8] sm:$0xff]  ;;  %v5524_v32 = vpack.c.bf16 %v3910_v4, %v3907_v1  ;;  %v3951_v1 = vld [vmem:[%s8365_s2 + $0x430] sm:$0xff] }
 0xe33   :  { %5483 = vmatprep.subr.bf16.mxu0 %v5482_v17  ;;  %5575 = vmatprep.subr.bf16.mxu1 %v5574_v15  ;;  %v5743_v17 = vunpack.i.l.bf16 %v5742_v35  ;;  %v5747_v15 = vpop.permute.xlu0 %5746  ;;  %v5500_v26 = vpack.c.bf16 %v3874_v2, %v3871_v45  ;;  %v8385_v35 = vmov 0.0   ;;  %v3916_v2 = vld [vmem:[%s8365_s2 + $0x318] sm:$0xff]  ;;  %v3938_v27 = vld [vmem:[%s8365_s2 + $0x3c8] sm:$0xff] }
 0xe34   :  { %v3805_v62 = vsel %vm1351_vm0, %v7579_v18, %v5739_v8  ;;  %v3883_v18 = vld [vmem:[%s8365_s2 + $0x210] sm:$0xff]  ;;  %v5749_v55 = vunpack.i.h.bf16 %v5747_v15  ;;  %v3954_v4 = vld [vmem:[%s8365_s2 + $0x448] sm:$0xff] }
 0xe35   :  { %v3810_v5 = vsel %vm1351_vm0, %v7697_v63, %v5743_v17  ;;  %v3890_v63 = vld [vmem:[%s8365_s2 + $0x248] sm:$0xff]  ;;  %v3915_v8 = vld [vmem:[%s8365_s2 + $0x310] sm:$0xff] }
 0xe36   :  { %5485 = vmatpush1.bf16.msra.mxu0 %v5484_v3  ;;  %5577 = vmatpush3.bf16.msra.mxu1 %v5576_v47  ;;  %v3887_v3 = vld [vmem:[%s8365_s2 + $0x230] sm:$0xff]  ;;  %v5748_v47 = vunpack.i.l.bf16 %v5747_v15  ;;  %v5590_v17 = vpack.c.bf16 %v3918_v61, %v3915_v8  ;;  %v3920_v15 = vld [vmem:[%s8365_s2 + $0x338] sm:$0xff]  ;;  %v3957_v61 = vld [vmem:[%s8365_s2 + $0x460] sm:$0xff] }
 0xe37   :  { %5487 = vmatprep.subr.bf16.mxu0 %v5486_v33  ;;  %5579 = vmatprep.subr.bf16.mxu1 %v5578_v39  ;;  %v5504_v33 = vpack.c.bf16 %v3880_v52, %v3877_v31  ;;  %v5506_v39 = vpack.c.bf16 %v3887_v3, %v3884_v51  ;;  %v3922_v52 = vld [vmem:[%s8365_s2 + $0x348] sm:$0xff]  ;;  %v3959_v8 = vld [vmem:[%s8365_s2 + $0x470] sm:$0xff] }
 0xe38   :  { %v3811_v28 = vsel %vm1351_vm0, %v7703_v59, %v5748_v47  ;;  %v3896_v59 = vld [vmem:[%s8365_s2 + $0x278] sm:$0xff]  ;;  %v3926_v47 = vld [vmem:[%s8365_s2 + $0x368] sm:$0xff] }
 0xe3a   :  { %5489 = vmatpush1.bf16.msra.mxu0 %v5488_v19  ;;  %5581 = vmatpush3.bf16.msra.mxu1 %v5580_v0  ;;  %v5508_v19 = vpack.c.bf16 %v3886_v24, %v3883_v18  ;;  %v5510_v0 = vpack.c.bf16 %v3893_v10, %v3890_v63  ;;  %v3927_v18 = vld [vmem:[%s8365_s2 + $0x370] sm:$0xff]  ;;  %v3930_v24 = vld [vmem:[%s8365_s2 + $0x388] sm:$0xff]  ;;  %v3933_v10 = vld [vmem:[%s8365_s2 + $0x3a0] sm:$0xff] }
 0xe3b   :  { %5491 = vmatprep.subr.bf16.mxu0 %v5490_v14  ;;  %5583 = vmatprep.subr.bf16.mxu1 %v5582_v36  ;;  %v3807_v14 = vsel %vm1351_vm0, %v7639_v6, %v5749_v55  ;;  %v3899_v36 = vld [vmem:[%s8365_s2 + $0x290] sm:$0xff]  ;;  %v5598_v55 = vpack.c.bf16 %v3930_v24, %v3927_v18  ;;  %v5602_v23 = vpack.c.bf16 %v3936_v12, %v3933_v10 }
 0xe3c   :  { %v5514_v25 = vpack.c.bf16 %v3899_v36, %v3896_v59  ;;  %v3895_v6 = vld [vmem:[%s8365_s2 + $0x270] sm:$0xff]  ;;  %v3942_v36 = vld [vmem:[%s8365_s2 + $0x3e8] sm:$0xff] }
 0xe3d   :  { %v3935_v63 = vld [vmem:[%s8365_s2 + $0x3b0] sm:$0xff] }
 0xe3e   :  { %5493 = vmatpush1.bf16.msra.mxu0 %v5492_v29  ;;  %5585 = vmatpush3.bf16.msra.mxu1 %v5584_v49  ;;  %v5516_v29 = vpack.c.bf16 %v3898_v21, %v3895_v6  ;;  %v5518_v49 = vpack.c.bf16 %v3905_v16, %v3902_v46  ;;  %v3939_v59 = vld [vmem:[%s8365_s2 + $0x3d0] sm:$0xff]  ;;  %v3940_v6 = vld [vmem:[%s8365_s2 + $0x3d8] sm:$0xff]  ;;  %v3945_v16 = vld [vmem:[%s8365_s2 + $0x400] sm:$0xff] }
 0xe3f   :  { %5495 = vmatprep.subr.bf16.mxu0 %v5494_v20  ;;  %5587 = vmatprep.subr.bf16.mxu1 %v5586_v58  ;;  %v3908_v20 = vld [vmem:[%s8365_s2 + $0x2d8] sm:$0xff]  ;;  %v3911_v58 = vld [vmem:[%s8365_s2 + $0x2f0] sm:$0xff]  ;;  %v5606_v21 = vpack.c.bf16 %v3942_v36, %v3939_v59  ;;  %v3961_v36 = vld [vmem:[%s8366_s3] sm:$0x7]  ;;  %s5889_s3 = smov [#allocation2]  }
 0xe40   :  { %v5522_v53 = vpack.c.bf16 %v3911_v58, %v3908_v20  ;;  %v3947_v46 = vld [vmem:[%s8365_s2 + $0x410] sm:$0xff]  ;;  %v3946_v20 = vld [vmem:[%s8365_s2 + $0x408] sm:$0xff]  ;;  %s4343_s6 = sshll.u32 %s5889_s3, 4  ;;  %s4344_s6 = int_to_ptr.vmem [resolvable:$true] %s4343_s6 }
 0xe41   :  { %s5863_s7 = scalar_lea.vmem %s4344_s6, 1536  ;;  %p5868_p1 = scmp.lt.s32.totalorder %s4344_s6, %s4344_s6 }
 0xe42   :  { %5497 = vmatpush1.bf16.msra.mxu0 %v5496_v38  ;;  %5589 = vmatpush3.bf16.msra.mxu1 %v5588_v48  ;;  %v3914_v38 = vld [vmem:[%s8365_s2 + $0x308] sm:$0xff]  ;;  %v3917_v48 = vld [vmem:[%s8365_s2 + $0x320] sm:$0xff]  ;;  %p5864_p0 = scmp.ne.s32.totalorder %s4344_s6, %s5863_s7  ;;  %p5869_p2 = scmp.lt.s32.totalorder %s5863_s7, %s5863_s7 }
 0xe43   :  { %5499 = vmatprep.subr.bf16.mxu0 %v5498_v54  ;;  %v3913_v54 = vld [vmem:[%s8365_s2 + $0x300] sm:$0xff]  ;;  %v5526_v45 = vpack.c.bf16 %v3917_v48, %v3914_v38  ;;  %5591 = vmatprep.subr.bf16.mxu1 %v5590_v17 }
 0xe44   :  { %v5528_v22 = vpack.c.bf16 %v3916_v2, %v3913_v54  ;;  %v3949_v48 = vld [vmem:[%s8365_s2 + $0x420] sm:$0xff]  ;;  %v3952_v54 = vld [vmem:[%s8365_s2 + $0x438] sm:$0xff]  ;;  %p5870_p3 = por %p5869_p2, %p5868_p1 }
 0xe45   :  { %4221 = vmatmul.mubr.f32.vlgmr.msra.gmra.mrb[50].mxu1 %v3805_v62  ;;  %v3956_v2 = vld [vmem:[%s8365_s2 + $0x458] sm:$0xff] }
 0xe46   :  { %5501 = vmatpush1.bf16.msra.mxu0 %v5500_v26  ;;  %4225 = vmatprep.mubr.f32.mxu1 %v3810_v5  ;;  %v3923_v26 = vld [vmem:[%s8365_s2 + $0x350] sm:$0xff]  ;;  %p5871_p4 = pnand %p5870_p3, %p5864_p0 }
 0xe47   :  { %5503 = vmatprep.subr.bf16.mxu0 %v5502_v34  ;;  %v3919_v34 = vld [vmem:[%s8365_s2 + $0x330] sm:$0xff]  ;;  %v5530_v31 = vpack.c.bf16 %v3923_v26, %v3920_v15  ;;  %5593 = vmatpush3.bf16.msra.mxu1 %v5590_v17  ;;  %v5552_v17 = vpack.c.bf16 %v3952_v54, %v3949_v48  ;;  %v5554_v15 = vpack.c.bf16 %v3959_v8, %v3956_v2 }
 0xe48   :  { %v5532_v51 = vpack.c.bf16 %v3922_v52, %v3919_v34  ;;  %v3955_v26 = vld [vmem:[%s8365_s2 + $0x450] sm:$0xff]  ;;  %v3958_v34 = vld [vmem:[%s8365_s2 + $0x468] sm:$0xff] }
 0xe49   :  { %4226 = vmatmul.mubr.f32.gmra.mrb[52].mxu1 %v3806_v60  ;;  %v5556_v52 = vpack.c.bf16 %v3958_v34, %v3955_v26 }
 0xe4a   :  { %5505 = vmatpush1.bf16.msra.mxu0 %v5504_v33  ;;  %4230 = vmatprep.mubr.f32.mxu1 %v3811_v28 }
 0xe4b   :  { %5507 = vmatprep.subr.bf16.mxu0 %v5506_v39  ;;  %v3928_v39 = vld [vmem:[%s8365_s2 + $0x378] sm:$0xff] }
 0xe4d   :  { %4231 = vmatmul.mubr.f32.gmra.mrb[54].mxu1 %v3807_v14 }
 0xe4e   :  { %5509 = vmatpush1.bf16.msra.mxu0 %v5508_v19  ;;  %4235 = vmatprep.mubr.f32.mxu1 %v3812_v37 }
 0xe4f   :  { %5511 = vmatprep.subr.bf16.mxu0 %v5510_v0  ;;  %v3931_v0 = vld [vmem:[%s8365_s2 + $0x390] sm:$0xff] }
 0xe51   :  { %4236 = vmatmul.mubr.f32.gmra.mrb[56].mxu1 %v3808_v41 }
 0xe52   :  { %5513 = vmatpush1.bf16.msra.mxu0 %v5512_v9 }
 0xe53   :  { %5515 = vmatprep.subr.bf16.mxu0 %v5514_v25  ;;  %v3937_v25 = vld [vmem:[%s8365_s2 + $0x3c0] sm:$0xff] }
 0xe56   :  { %5517 = vmatpush1.bf16.msra.mxu0 %v5516_v29  ;;  %v3948_v29 = vld [vmem:[%s8365_s2 + $0x418] sm:$0xff] }
 0xe57   :  { %5519 = vmatprep.subr.bf16.mxu0 %v5518_v49  ;;  %v5544_v49 = vpack.c.bf16 %v3940_v6, %v3937_v25  ;;  %v5610_v58 = vpack.c.bf16 %v3948_v29, %v3945_v16 }
 0xe5a   :  { %5521 = vmatpush1.bf16.msra.mxu0 %v5520_v43  ;;  %v3950_v43 = vld [vmem:[%s8365_s2 + $0x428] sm:$0xff] }
 0xe5b   :  { %5523 = vmatprep.subr.bf16.mxu0 %v5522_v53  ;;  %v3953_v53 = vld [vmem:[%s8365_s2 + $0x440] sm:$0xff] }
 0xe5c   :  { %v5550_v38 = vpack.c.bf16 %v3953_v53, %v3950_v43 }
 0xe5e   :  { %5525 = vmatpush1.bf16.msra.mxu0 %v5524_v32  ;;  %v5548_v32 = vpack.c.bf16 %v3946_v20, %v3943_v56 }
 0xe5f   :  { %5527 = vmatprep.subr.bf16.mxu0 %v5526_v45  ;;  %v5614_v45 = vpack.c.bf16 %v3954_v4, %v3951_v1 }
 0xe61   :  { %4043 = vmatmul.mubr.f32.vlgmr.msra.gmra.mrb[50].mxu0 %v3805_v62  ;;  %v3924_v62 = vld [vmem:[%s8365_s2 + $0x358] sm:$0xff] }
 0xe62   :  { %4048 = vmatprep.mubr.f32.mxu0 %v3810_v5  ;;  %5529 = vmatpush1.bf16.msra.mxu0 %v5528_v22  ;;  %v5594_v3 = vpack.c.bf16 %v3924_v62, %v3921_v44  ;;  %v3929_v5 = vld [vmem:[%s8365_s2 + $0x380] sm:$0xff]  ;;  %v3960_v22 = vld [vmem:[%s8365_s2 + $0x478] sm:$0xff] }
 0xe63   :  { %5531 = vmatprep.subr.bf16.mxu0 %v5530_v31  ;;  %v5534_v33 = vpack.c.bf16 %v3929_v5, %v3926_v47  ;;  %v5618_v31 = vpack.c.bf16 %v3960_v22, %v3957_v61 }
 0xe64   :  { %5595 = vmatprep.subr.bf16.mxu1 %v5594_v3 }
 0xe65   :  { %4049 = vmatmul.mubr.f32.gmra.mrb[52].mxu0 %v3806_v60  ;;  %v3932_v60 = vld [vmem:[%s8365_s2 + $0x398] sm:$0xff]  ;;  %5597 = vmatpush3.bf16.msra.mxu1 %v5594_v3 }
 0xe66   :  { %4054 = vmatprep.mubr.f32.mxu0 %v3811_v28  ;;  %5533 = vmatpush1.bf16.msra.mxu0 %v5532_v51  ;;  %v5536_v28 = vpack.c.bf16 %v3928_v39, %v3925_v13  ;;  %v5538_v19 = vpack.c.bf16 %v3935_v63, %v3932_v60 }
 0xe67   :  { %5535 = vmatprep.subr.bf16.mxu0 %v5534_v33  ;;  %5599 = vmatprep.subr.bf16.mxu1 %v5598_v55 }
 0xe69   :  { %4055 = vmatmul.mubr.f32.gmra.mrb[54].mxu0 %v3807_v14  ;;  %v3941_v14 = vld [vmem:[%s8365_s2 + $0x3e0] sm:$0xff]  ;;  %5601 = vmatpush3.bf16.msra.mxu1 %v5598_v55 }
 0xe6a   :  { %4060 = vmatprep.mubr.f32.mxu0 %v3812_v37  ;;  %5537 = vmatpush1.bf16.msra.mxu0 %v5536_v28  ;;  %v5540_v37 = vpack.c.bf16 %v3934_v40, %v3931_v0  ;;  %v5542_v9 = vpack.c.bf16 %v3941_v14, %v3938_v27 }
 0xe6b   :  { %5539 = vmatprep.subr.bf16.mxu0 %v5538_v19  ;;  %5603 = vmatprep.subr.bf16.mxu1 %v5602_v23 }
 0xe6d   :  { %4061 = vmatmul.mubr.f32.gmra.mrb[56].mxu0 %v3808_v41  ;;  %v3944_v41 = vld [vmem:[%s8365_s2 + $0x3f8] sm:$0xff]  ;;  %5605 = vmatpush3.bf16.msra.mxu1 %v5602_v23 }
 0xe6e   :  { %4131 = vmatprep.mubr.f32.mxu0 %v8385_v35  ;;  %5541 = vmatpush1.bf16.msra.mxu0 %v5540_v37  ;;  %v5546_v11 = vpack.c.bf16 %v3947_v46, %v3944_v41 }
 0xe6f   :  { %5543 = vmatprep.subr.bf16.mxu0 %v5542_v9  ;;  %5607 = vmatprep.subr.bf16.mxu1 %v5606_v21 }
 0xe71   :  { %5609 = vmatpush3.bf16.msra.mxu1 %v5606_v21 }
 0xe72   :  { %5545 = vmatpush1.bf16.msra.mxu0 %v5544_v49  ;;  %5611 = vmatprep.subr.bf16.mxu1 %v5610_v58 }
 0xe73   :  { %5547 = vmatprep.subr.bf16.mxu0 %v5546_v11 }
 0xe75   :  { %5613 = vmatpush3.bf16.msra.mxu1 %v5610_v58 }
 0xe76   :  { %5549 = vmatpush1.bf16.msra.mxu0 %v5548_v32  ;;  %5615 = vmatprep.subr.bf16.mxu1 %v5614_v45 }
 0xe77   :  { %5551 = vmatprep.subr.bf16.mxu0 %v5550_v38 }
 0xe79   :  { %5617 = vmatpush3.bf16.msra.mxu1 %v5614_v45 }
 0xe7a   :  { %5553 = vmatpush1.bf16.msra.mxu0 %v5552_v17  ;;  %5619 = vmatprep.subr.bf16.mxu1 %v5618_v31 }
 0xe7b   :  { %5555 = vmatprep.subr.bf16.mxu0 %v5554_v15 }
 0xe7d   :  { %5621 = vmatpush3.bf16.msra.mxu1 %v5618_v31 }
 0xe7e   :  { %5557 = vmatpush1.bf16.msra.mxu0 %v5556_v52 }
 0xef3   :  { %v4848_v44 = vpop.f32.mrb[48].mxu0 }
 0xef4   :  { %3795 = vrot.lane.b32.xlu1 %v4848_v44, %s5888_s1  ;;  %v3659_v62 = vpop.f32.mrb[49].mxu0 }
 0xef5   :  { %3793 = vrot.lane.b32.xlu0 %v3659_v62, %s5888_s1 }
 0xef8   :  { %v4855_v51 = vpop.f32.mrb[48].mxu1 }
 0xef9   :  { %v3748_v3 = vpop.f32.mrb[49].mxu1  ;;  %3799 = vrot.lane.b32.xlu1 %v4855_v51, %s5888_s1 }
 0xefa   :  { %3797 = vrot.lane.b32.xlu0 %v3748_v3, %s5888_s1 }
 0xf18   :  { %v4618_v47 = vpop.f32.mrb[50].mxu1 }
 0xf19   :  { %v4619_v5 = vpop.f32.mrb[51].mxu1 }
 0xf1a   :  { %v4620_v13 = vadd.f32 %v4619_v5, %v4618_v47 }
 0xf1c   :  { %v4621_v33 = vpop.f32.mrb[52].mxu1 }
 0xf1d   :  { %v4622_v39 = vpop.f32.mrb[53].mxu1 }
 0xf1e   :  { %v4623_v18 = vadd.f32 %v4622_v39, %v4621_v33 }
 0xf20   :  { %v4624_v24 = vpop.f32.mrb[54].mxu1 }
 0xf21   :  { %v4625_v55 = vpop.f32.mrb[55].mxu1 }
 0xf22   :  { %v4626_v60 = vadd.f32 %v4625_v55, %v4624_v24 }
 0xf24   :  { %v4627_v63 = vpop.f32.mrb[56].mxu1 }
 0xf25   :  { %v4628_v10 = vpop.f32.mrb[57].mxu1 }
 0xf26   :  { %v4629_v12 = vadd.f32 %v4628_v10, %v4627_v63 }
 0xf66   :  { %v3796_v28 = vpop.permute.xlu1 %3795 }
 0xf67   :  { %v3794_v19 = vpop.permute.xlu0 %3793  ;;  %v3814_v40 = vsel %vm1351_vm0, %v7821_v50, %v3796_v28  ;;  %v3965_v50 = vsub.s32 0, %v7527_v30 }
 0xf68   :  { %v3813_v0 = vsel %vm1351_vm0, %v7823_v7, %v3794_v19  ;;  %v3973_v7 = vsub.s32 2, %v7527_v30 }
 0xf69   :  { %4132 = vmatmul.mubr.f32.vlgmr.msra.gmra.mrb[50].mxu0 %v3813_v0  ;;  %4888 = vmatprep.mubr.f32.mxu1 %v3813_v0  ;;  %v3966_v37 = vrot.slane %v3961_v36, %v3965_v50 }
 0xf6a   :  { %4889 = vmatmul.mubr.f32.vlgmr.msra.gmra.mrb[58].mxu1 %v3814_v40  ;;  %4137 = vmatprep.mubr.f32.mxu0 %v8385_v35  ;;  %v3974_v9 = vrot.slane %v3961_v36, %v3973_v7 }
 0xf6b   :  { %v3800_v23 = vpop.permute.xlu1 %3799 }
 0xf6c   :  { %v3798_v27 = vpop.permute.xlu0 %3797  ;;  %v3816_v59 = vsel %vm1351_vm0, %v7825_v57, %v3800_v23  ;;  %v4228_v6 = vadd.f32 %v4623_v18, %v3974_v9  ;;  %v4238_v58 = vadd.f32 %v4629_v12, %v3974_v9  ;;  %v4233_v1 = vadd.f32 %v4626_v60, %v3974_v9 }
 0xf6d   :  { %4138 = vmatmul.mubr.f32.gmra.mrb[52].mxu0 %v3814_v40  ;;  %v3815_v14 = vsel %vm1351_vm0, %v7827_v42, %v3798_v27  ;;  %v3969_v42 = vsub.s32 1, %v7527_v30 }
 0xf6e   :  { %4891 = vmatprep.mubr.f32.mxu1 %v3815_v14  ;;  %4143 = vmatprep.mubr.f32.mxu0 %v8385_v35 }
 0xf6f   :  { %4892 = vmatmul.mubr.f32.gmra.mrb[60].mxu1 %v3816_v59  ;;  %v3970_v57 = vrot.slane %v3961_v36, %v3969_v42 }
 0xf71   :  { %4144 = vmatmul.mubr.f32.gmra.mrb[54].mxu0 %v3815_v14 }
 0xf72   :  { %4149 = vmatprep.mubr.f32.mxu0 %v8385_v35  ;;  %v4223_v35 = vadd.f32 %v4620_v13, %v3974_v9 }
 0xf75   :  { %4150 = vmatmul.mubr.f32.gmra.mrb[56].mxu0 %v3816_v59 }
0x103c   :  { %v4133_v25 = vpop.f32.mrb[50].mxu0 }
0x103d   :  { %v5630_v21 = vadd.f32 %v4133_v25, %v3966_v37  ;;  %v4135_v41 = vpop.f32.mrb[51].mxu0  ;;  %v4890_v46 = vpop.f32.mrb[58].mxu1 }
0x103e   :  { %v5631_v16 = vadd.f32 %v4135_v41, %v3970_v57  ;;  %v4313_v29 = vadd.f32 %v4890_v46, %v4228_v6  ;;  %v4307_v49 = vpop.f32.mrb[59].mxu1 }
0x103f   :  { %4326 = vst [vmem:[#allocation2] sm:$0xff] %v5630_v21  ;;  %v4308_v11 = vadd.f32 %v4307_v49, %v4223_v35 }
0x1040   :  { %4327 = vst [vmem:[#allocation2 + $0x8] sm:$0xff] %v5631_v16  ;;  %4331 = vst [vmem:[#allocation2 + $0x28] sm:$0xff] %v4313_v29  ;;  %v4139_v56 = vpop.f32.mrb[52].mxu0 }
0x1041   :  { %4328 = vst [vmem:[#allocation2 + $0x10] sm:$0xff] %v4308_v11  ;;  %v5632_v20 = vadd.f32 %v4139_v56, %v3966_v37  ;;  %v4141_v30 = vpop.f32.mrb[53].mxu0 }
0x1042   :  { %v5633_v43 = vadd.f32 %v4141_v30, %v3970_v57  ;;  %v4893_v53 = vpop.f32.mrb[60].mxu1 }
0x1043   :  { %4329 = vst [vmem:[#allocation2 + $0x18] sm:$0xff] %v5632_v20  ;;  %v4323_v4 = vadd.f32 %v4893_v53, %v4238_v58  ;;  %v4317_v32 = vpop.f32.mrb[61].mxu1 }
0x1044   :  { %4330 = vst [vmem:[#allocation2 + $0x20] sm:$0xff] %v5633_v43  ;;  %v4318_v38 = vadd.f32 %v4317_v32, %v4233_v1  ;;  %v4145_v48 = vpop.f32.mrb[54].mxu0 }
0x1045   :  { %4337 = vst [vmem:[#allocation2 + $0x58] sm:$0xff] %v4323_v4  ;;  %v5634_v54 = vadd.f32 %v4145_v48, %v3966_v37  ;;  %v4147_v45 = vpop.f32.mrb[55].mxu0 }
0x1046   :  { %4334 = vst [vmem:[#allocation2 + $0x40] sm:$0xff] %v4318_v38  ;;  %v5635_v2 = vadd.f32 %v4147_v45, %v3970_v57 }
0x1047   :  { %4332 = vst [vmem:[#allocation2 + $0x30] sm:$0xff] %v5634_v54 }
0x1048   :  { %4333 = vst [vmem:[#allocation2 + $0x38] sm:$0xff] %v5635_v2  ;;  %v4151_v8 = vpop.f32.mrb[56].mxu0 }
0x1049   :  { %v5636_v61 = vadd.f32 %v4151_v8, %v3966_v37  ;;  %v4153_v22 = vpop.f32.mrb[57].mxu0 }
0x104a   :  { %v5637_v17 = vadd.f32 %v4153_v22, %v3970_v57 }
0x104b   :  { %4335 = vst [vmem:[#allocation2 + $0x48] sm:$0xff] %v5636_v61 }
0x104c   :  { %4336 = vst [vmem:[#allocation2 + $0x50] sm:$0xff] %v5637_v17 }
0x104d   :  { %5874 = shalt.err (!%p5871_p4)
}
0x104e   :  { %s5875_s10 = scalar_lea.hbm %s8367_s4, 1536 }
0x104f   :  { %p5876_p5 = scmp.ne.s32.totalorder %s8367_s4, %s5875_s10  ;;  %p5879_p6 = scmp.lt.u32.totalorder %s5875_s10, %s8367_s4 }
0x1051   :  { %p5881_p7 = pnand %p5879_p6, %p5876_p5 }
0x1053   :  { %5884 = shalt.err (!%p5881_p7)
}
0x1054   :  { %s5890_s15 = smov 384   ;;  %s5891_s16 = smov 24  }
0x1055   :  { %4349 = dma.vmem_to_hbm [thread:$0]  %s4344_s6, 1536, %s8367_s4, [#allocation3], %s5890_s15, %s5890_s15, %s5891_s16  }
0x1056   :  { %5885 = dma.done.wait [#allocation3], 1536  }
0x1057   :  { %5886 = vsyncadd [#allocation3], 4294965760 }
0x1058   :  { %4353 = vsyncpa [#allocation3], 1 }

</bundles_post_ra>
